<compile_context>
chip_gen: v7x
topology: tpu7x:2x2x1
jax: 0.10.0
libtpu: 0.0.40
codegen_flags: <defaults>
</compile_context>

<pallas_src>
import functools

import jax
import jax.numpy as jnp
from jax import lax
from jax.experimental import pallas as pl
from jax.experimental.pallas import tpu as pltpu

# ----------------------------- model dims (small, deterministic) -----------------------------
BATCH = 16              # multiple of 8/16 so per-step slices are sublane aligned; scale to 64-128
CHANNELS = 3
IMG_HW = 16
SEQ_LEN = 8
FEAT_DIM = 512          # resnet18 feature size hard-coded in fc_input (512 + embedding_dim)
EMBED_DIM = 128
HIDDEN_DIM = 128
VOCAB_SIZE = 256


# ----------------------------- fused kernel -----------------------------
def fused_scst_kernel(B, T,
                      img_ref, cap_ref,
                      cnn_w_ref, cnn_b_ref,
                      w_img_ref, emb_tbl_ref, b_gate_ref,
                      w_hh_ref, fc_w_ref, fc_b_ref,
                      out_ref,
                      h_scr):
    """Whole SCSTModel.forward in one kernel invocation (no grid)."""
    Hd = w_hh_ref.shape[0]
    V = fc_w_ref.shape[1]

    # ---- stand-in CNN features: global average pool + linear (bf16 operands, f32 accum) ----
    pooled = jnp.mean(img_ref[...], axis=-1)                                    # (B, C) f32
    feats = (jnp.dot(pooled.astype(jnp.bfloat16), cnn_w_ref[...],
                     preferred_element_type=jnp.float32) + cnn_b_ref[...])      # (B, 512) f32
    # Per-image gate contribution feats @ (Wf @ W_ih) plus the folded bias; computed once and
    # added per-step below (replaces the old T-way sublane concat of feats_proj).
    gates_img = (jnp.dot(feats.astype(jnp.bfloat16), w_img_ref[...],
                         preferred_element_type=jnp.float32)
                 + b_gate_ref[...])                                             # (B, 4H) f32

    # ---- fused embedding gather: one-hot(ids) @ (embedding @ We @ W_ih) table ----
    # cap_ref holds time-major token ids (row r = t*B + b).  One-hot entries and bf16 table
    # rows are exact, so this MXU pass equals a row gather of the folded table.
    onehot = (cap_ref[...] ==
              lax.broadcasted_iota(jnp.int32, (T * B, V), 1)).astype(jnp.bfloat16)
    gates_emb = jnp.dot(onehot, emb_tbl_ref[...],
                        preferred_element_type=jnp.float32)                     # (T*B, 4H) f32

    # ---- LSTM recurrence (all input-to-hidden work hoisted above) ----
    h = jnp.zeros((B, Hd), jnp.float32)
    c = jnp.zeros((B, Hd), jnp.float32)
    # T is small and static: fully-unrolled loop (single basic block, static aligned slices).
    for t in range(T):
        g = (gates_emb[t * B:(t + 1) * B, :]            # aligned B-row slice (B % 8 == 0)
             + gates_img
             + jnp.dot(h.astype(jnp.bfloat16), w_hh_ref[...],
                       preferred_element_type=jnp.float32))                     # (B, 4H) f32
        # torch LSTM gate order [i, f, g, o]; elementwise math stays f32 (v5e-safe)
        i_g = jax.nn.sigmoid(g[:, 0 * Hd:1 * Hd])
        f_g = jax.nn.sigmoid(g[:, 1 * Hd:2 * Hd])
        g_g = jnp.tanh(g[:, 2 * Hd:3 * Hd])
        o_g = jax.nn.sigmoid(g[:, 3 * Hd:4 * Hd])
        c = f_g * c + i_g * g_g
        h = o_g * jnp.tanh(c)
        h_scr[t * B:(t + 1) * B, :] = h                  # time-major VMEM scratch, aligned

    # ---- final fc: one fat (T*B, H)@(H, V) matmul ... ----
    logits = (jnp.dot(h_scr[...].astype(jnp.bfloat16), fc_w_ref[...],
                      preferred_element_type=jnp.float32) + fc_b_ref[...])      # (T*B, V) f32
    # ... reordered to batch-major while storing: T lane-aligned (B, V) column stores into the
    # (B, T*V) output (memory layout == (B, T, V)) -> no wrapper-side transpose exists at all.
    for t in range(T):
        out_ref[:, t * V:(t + 1) * V] = logits[t * B:(t + 1) * B, :].astype(out_ref.dtype)


# ----------------------------- pallas_call wrapper -----------------------------
def scst_fused(img_flat, cap_tm, w, *, B, T):
    V = VOCAB_SIZE
    vmem = pl.BlockSpec(memory_space=pltpu.MemorySpace.VMEM)   # whole array, VMEM-resident
    kernel = functools.partial(fused_scst_kernel, B, T)
    return pl.pallas_call(
        kernel,
        out_shape=jax.ShapeDtypeStruct((B, T * V), jnp.float32),   # lane-dense, batch-major
        in_specs=[vmem] * 10,
        out_specs=vmem,
        scratch_shapes=[pltpu.VMEM((T * B, HIDDEN_DIM), jnp.float32)],  # hidden-state buffer
    )(img_flat, cap_tm,
      w["cnn_w"], w["cnn_b"],
      w["w_img"], w["emb_tbl"], w["b_gate"],
      w["w_hh"], w["fc_w"], w["fc_b"])


# ----------------------------- parameters -----------------------------
def init_params(key):
    ks = jax.random.split(key, 10)
    s = 0.02
    return {
        # CNN stand-in: GAP(C) -> 512
        "cnn_w": jax.random.normal(ks[0], (CHANNELS, FEAT_DIM), jnp.float32) * s,
        "cnn_b": jax.random.normal(ks[1], (FEAT_DIM,), jnp.float32) * s,
        # nn.Embedding(vocab_size, embedding_dim)
        "embedding": jax.random.normal(ks[2], (VOCAB_SIZE, EMBED_DIM), jnp.float32) * s,
        # fc_input: Linear(512 + E, E), stored (in, out); cat order is [features, emb]
        "fc_in_w": jax.random.normal(ks[3], (FEAT_DIM + EMBED_DIM, EMBED_DIM), jnp.float32) * s,
        "fc_in_b": jax.random.normal(ks[4], (EMBED_DIM,), jnp.float32) * s,
        # LSTM(E, H), 1 layer, batch_first; gate order [i, f, g, o]; (in, out) layout
        # (torch stores weight_ih/weight_hh as (4H, in) - transpose when loading real weights)
        "w_ih": jax.random.normal(ks[5], (EMBED_DIM, 4 * HIDDEN_DIM), jnp.float32) * s,
        "w_hh": jax.random.normal(ks[6], (HIDDEN_DIM, 4 * HIDDEN_DIM), jnp.float32) * s,
        "b_lstm": jax.random.normal(ks[7], (4 * HIDDEN_DIM,), jnp.float32) * s,  # b_ih + b_hh
        # fc: Linear(H, vocab)
        "fc_w": jax.random.normal(ks[8], (HIDDEN_DIM, VOCAB_SIZE), jnp.float32) * s,
        "fc_b": jax.random.normal(ks[9], (VOCAB_SIZE,), jnp.float32) * s,
    }


def prepare_params(p):
    """One-time fold + bf16 cast of weights into the kernel-resident form.

    Runs once at load time (NOT per forward call).  fc_input is folded into the LSTM
    input projection (valid: no nonlinearity sits between them in the original module),
    the embedding table is pre-multiplied through the same path, and biases are combined.
    Folds are done in f32; only the final tables are cast to bf16.
    """
    F, E, Hd, V = FEAT_DIM, EMBED_DIM, HIDDEN_DIM, VOCAB_SIZE
    wf = p["fc_in_w"][:F]                      # feature half of fc_input   (512, E)
    we = p["fc_in_w"][F:]                      # embedding half of fc_input (E, E)
    w_ih = p["w_ih"]                           # (E, 4H)
    return {
        "cnn_w": p["cnn_w"].astype(jnp.bfloat16),
        "cnn_b": p["cnn_b"].reshape(1, F),
        "w_img": (wf @ w_ih).astype(jnp.bfloat16),                          # (512, 4H)
        "emb_tbl": (p["embedding"] @ we @ w_ih).astype(jnp.bfloat16),       # (V, 4H)
        "b_gate": (p["fc_in_b"] @ w_ih + p["b_lstm"]).reshape(1, 4 * Hd),   # f32
        "w_hh": p["w_hh"].astype(jnp.bfloat16),
        "fc_w": p["fc_w"].astype(jnp.bfloat16),
        "fc_b": p["fc_b"].reshape(1, V),
    }


# ----------------------------- forward (matches SCSTModel.forward) -----------------------------
@jax.jit
def scst_forward(images, captions, prep):
    B, C, Hi, Wi = images.shape
    T = captions.shape[1]
    img_flat = images.reshape(B, C, Hi * Wi)                    # free (contiguous) reshape
    # time-major token ids (row r = t*B + b); the only non-fused wrapper op (4*T*B bytes)
    cap_tm = captions.T.reshape(T * B, 1).astype(jnp.int32)
    logits_bm = scst_fused(img_flat, cap_tm, prep, B=B, T=T)    # (B, T*V) batch-major
    return logits_bm.reshape(B, T, VOCAB_SIZE)                  # free reshape, no transpose


# ----------------------------- pure-JAX f32 reference (unfolded params) -----------------------------
def scst_reference(images, captions, p):
    B, C, Hi, Wi = images.shape
    T = captions.shape[1]
    Hd = HIDDEN_DIM
    pooled = images.reshape(B, C, Hi * Wi).mean(axis=-1)
    feats = pooled @ p["cnn_w"] + p["cnn_b"]                                   # (B, 512)
    emb = p["embedding"][captions]                                             # (B, T, E)
    feats_rep = jnp.broadcast_to(feats[:, None, :], (B, T, FEAT_DIM))
    x = jnp.concatenate([feats_rep, emb], axis=-1) @ p["fc_in_w"] + p["fc_in_b"]
    h = jnp.zeros((B, Hd), jnp.float32)
    c = jnp.zeros((B, Hd), jnp.float32)
    outs = []
    for t in range(T):
        g = x[:, t, :] @ p["w_ih"] + h @ p["w_hh"] + p["b_lstm"]
        i_g = jax.nn.sigmoid(g[:, :Hd])
        f_g = jax.nn.sigmoid(g[:, Hd:2 * Hd])
        g_g = jnp.tanh(g[:, 2 * Hd:3 * Hd])
        o_g = jax.nn.sigmoid(g[:, 3 * Hd:])
        c = f_g * c + i_g * g_g
        h = o_g * jnp.tanh(c)
        outs.append(h @ p["fc_w"] + p["fc_b"])
    return jnp.stack(outs, axis=1)                                             # (B, T, V)


if __name__ == "__main__":
    key = jax.random.PRNGKey(0)
    k_img, k_cap, k_par = jax.random.split(key, 3)

    images = jax.random.normal(k_img, (BATCH, CHANNELS, IMG_HW, IMG_HW), jnp.float32)
    captions = jax.random.randint(k_cap, (BATCH, SEQ_LEN), 0, VOCAB_SIZE, jnp.int32)
    params = init_params(k_par)
    prep = prepare_params(params)          # one-time weight fold / bf16 cast (not per call)

    out = scst_forward(images, captions, prep)
    out = jax.block_until_ready(out)

    assert out.shape == (BATCH, SEQ_LEN, VOCAB_SIZE)
    assert bool(jnp.all(jnp.isfinite(out)))
    ref = scst_reference(images, captions, params)
    err = float(jnp.max(jnp.abs(out - ref)))
    assert err < 1e-2, f"mismatch vs f32 reference: max abs err {err}"
    print("KERNEL_OK")
</pallas_src>

<mosaic_0001>
module attributes {stable_mosaic.version = 11 : i64} {
  func.func @fused_scst_kernel(%arg0: memref<16x3x256xf32, #tpu.memory_space<vmem>>, %arg1: memref<128x1xi32, #tpu.memory_space<vmem>>, %arg2: memref<3x512xbf16, #tpu.memory_space<vmem>>, %arg3: memref<1x512xf32, #tpu.memory_space<vmem>>, %arg4: memref<512x512xbf16, #tpu.memory_space<vmem>>, %arg5: memref<256x512xbf16, #tpu.memory_space<vmem>>, %arg6: memref<1x512xf32, #tpu.memory_space<vmem>>, %arg7: memref<128x512xbf16, #tpu.memory_space<vmem>>, %arg8: memref<128x256xbf16, #tpu.memory_space<vmem>>, %arg9: memref<1x256xf32, #tpu.memory_space<vmem>>, %arg10: memref<16x2048xf32, #tpu.memory_space<vmem>>, %arg11: memref<128x128xf32, #tpu.memory_space<vmem>>) attributes {dimension_semantics = [], scalar_prefetch = 0 : i64, scratch_operands = 1 : i64, tpu.core_type = #tpu.core_type<tc>} {
    %c0 = arith.constant 0 : index
    %c0_0 = arith.constant 0 : index
    %c0_1 = arith.constant 0 : index
    %0 = vector.load %arg0[%c0, %c0_0, %c0_1] : memref<16x3x256xf32, #tpu.memory_space<vmem>>, vector<16x3x256xf32>
    %cst = arith.constant dense<0.000000e+00> : vector<16x3xf32>
    %1 = vector.multi_reduction <add>, %0, %cst [2] : vector<16x3x256xf32> to vector<16x3xf32>
    %cst_2 = arith.constant 2.560000e+02 : f32
    %2 = vector.broadcast %cst_2 : f32 to vector<16x3xf32>
    %3 = arith.divf %1, %2 : vector<16x3xf32>
    %4 = arith.truncf %3 : vector<16x3xf32> to vector<16x3xbf16>
    %c0_3 = arith.constant 0 : index
    %c0_4 = arith.constant 0 : index
    %5 = vector.load %arg2[%c0_3, %c0_4] : memref<3x512xbf16, #tpu.memory_space<vmem>>, vector<3x512xbf16>
    %cst_5 = arith.constant dense<0.000000e+00> : vector<16x512xf32>
    %6 = tpu.matmul %4, %5, %cst_5 {dimension_numbers = #tpu.dot_dimension_numbers<[1], [0], [0], [1], [0, 0, 1, 1], [], []>} : vector<16x3xbf16>, vector<3x512xbf16>, vector<16x512xf32> -> vector<16x512xf32>
    %c0_6 = arith.constant 0 : index
    %c0_7 = arith.constant 0 : index
    %7 = vector.load %arg3[%c0_6, %c0_7] : memref<1x512xf32, #tpu.memory_space<vmem>>, vector<1x512xf32>
    %8 = vector.broadcast %7 : vector<1x512xf32> to vector<16x512xf32>
    %9 = arith.addf %6, %8 : vector<16x512xf32>
    %10 = arith.truncf %9 : vector<16x512xf32> to vector<16x512xbf16>
    %c0_8 = arith.constant 0 : index
    %c0_9 = arith.constant 0 : index
    %11 = vector.load %arg4[%c0_8, %c0_9] : memref<512x512xbf16, #tpu.memory_space<vmem>>, vector<512x512xbf16>
    %cst_10 = arith.constant dense<0.000000e+00> : vector<16x512xf32>
    %12 = tpu.matmul %10, %11, %cst_10 {dimension_numbers = #tpu.dot_dimension_numbers<[1], [0], [0], [1], [0, 0, 1, 1], [], []>} : vector<16x512xbf16>, vector<512x512xbf16>, vector<16x512xf32> -> vector<16x512xf32>
    %c0_11 = arith.constant 0 : index
    %c0_12 = arith.constant 0 : index
    %13 = vector.load %arg6[%c0_11, %c0_12] : memref<1x512xf32, #tpu.memory_space<vmem>>, vector<1x512xf32>
    %14 = vector.broadcast %13 : vector<1x512xf32> to vector<16x512xf32>
    %15 = arith.addf %12, %14 : vector<16x512xf32>
    %c0_13 = arith.constant 0 : index
    %c0_14 = arith.constant 0 : index
    %16 = vector.load %arg1[%c0_13, %c0_14] : memref<128x1xi32, #tpu.memory_space<vmem>>, vector<128x1xi32>
    %17 = tpu.iota {dimensions = array<i32: 1>} : vector<128x256xi32>
    %18 = vector.broadcast %16 : vector<128x1xi32> to vector<128x256xi32>
    %19 = arith.cmpi eq, %18, %17 : vector<128x256xi32>
    %20 = arith.extui %19 : vector<128x256xi1> to vector<128x256xi32>
    %21 = arith.sitofp %20 : vector<128x256xi32> to vector<128x256xf32>
    %22 = arith.truncf %21 : vector<128x256xf32> to vector<128x256xbf16>
    %c0_15 = arith.constant 0 : index
    %c0_16 = arith.constant 0 : index
    %23 = vector.load %arg5[%c0_15, %c0_16] : memref<256x512xbf16, #tpu.memory_space<vmem>>, vector<256x512xbf16>
    %cst_17 = arith.constant dense<0.000000e+00> : vector<128x512xf32>
    %24 = tpu.matmul %22, %23, %cst_17 {dimension_numbers = #tpu.dot_dimension_numbers<[1], [0], [0], [1], [0, 0, 1, 1], [], []>} : vector<128x256xbf16>, vector<256x512xbf16>, vector<128x512xf32> -> vector<128x512xf32>
    %cst_18 = arith.constant 0.000000e+00 : f32
    %25 = vector.broadcast %cst_18 : f32 to vector<16x128xf32>
    %cst_19 = arith.constant 0.000000e+00 : f32
    %26 = vector.broadcast %cst_19 : f32 to vector<16x128xf32>
    %27 = vector.extract_strided_slice %24 {offsets = [0, 0], sizes = [16, 512], strides = [1, 1]} : vector<128x512xf32> to vector<16x512xf32>
    %28 = arith.addf %27, %15 : vector<16x512xf32>
    %29 = arith.truncf %25 : vector<16x128xf32> to vector<16x128xbf16>
    %c0_20 = arith.constant 0 : index
    %c0_21 = arith.constant 0 : index
    %30 = vector.load %arg7[%c0_20, %c0_21] : memref<128x512xbf16, #tpu.memory_space<vmem>>, vector<128x512xbf16>
    %cst_22 = arith.constant dense<0.000000e+00> : vector<16x512xf32>
    %31 = tpu.matmul %29, %30, %cst_22 {dimension_numbers = #tpu.dot_dimension_numbers<[1], [0], [0], [1], [0, 0, 1, 1], [], []>} : vector<16x128xbf16>, vector<128x512xbf16>, vector<16x512xf32> -> vector<16x512xf32>
    %32 = arith.addf %28, %31 : vector<16x512xf32>
    %33 = vector.extract_strided_slice %32 {offsets = [0, 0], sizes = [16, 128], strides = [1, 1]} : vector<16x512xf32> to vector<16x128xf32>
    %34 = arith.negf %33 : vector<16x128xf32>
    %35 = math.exp %34 : vector<16x128xf32>
    %cst_23 = arith.constant 1.000000e+00 : f32
    %36 = vector.broadcast %cst_23 : f32 to vector<16x128xf32>
    %37 = arith.addf %36, %35 : vector<16x128xf32>
    %38 = arith.divf %36, %37 : vector<16x128xf32>
    %39 = vector.extract_strided_slice %32 {offsets = [0, 128], sizes = [16, 128], strides = [1, 1]} : vector<16x512xf32> to vector<16x128xf32>
    %40 = arith.negf %39 : vector<16x128xf32>
    %41 = math.exp %40 : vector<16x128xf32>
    %cst_24 = arith.constant 1.000000e+00 : f32
    %42 = vector.broadcast %cst_24 : f32 to vector<16x128xf32>
    %43 = arith.addf %42, %41 : vector<16x128xf32>
    %44 = arith.divf %42, %43 : vector<16x128xf32>
    %45 = vector.extract_strided_slice %32 {offsets = [0, 256], sizes = [16, 128], strides = [1, 1]} : vector<16x512xf32> to vector<16x128xf32>
    %46 = math.tanh %45 : vector<16x128xf32>
    %47 = vector.extract_strided_slice %32 {offsets = [0, 384], sizes = [16, 128], strides = [1, 1]} : vector<16x512xf32> to vector<16x128xf32>
    %48 = arith.negf %47 : vector<16x128xf32>
    %49 = math.exp %48 : vector<16x128xf32>
    %cst_25 = arith.constant 1.000000e+00 : f32
    %50 = vector.broadcast %cst_25 : f32 to vector<16x128xf32>
    %51 = arith.addf %50, %49 : vector<16x128xf32>
    %52 = arith.divf %50, %51 : vector<16x128xf32>
    %53 = arith.mulf %44, %26 : vector<16x128xf32>
    %54 = arith.mulf %38, %46 : vector<16x128xf32>
    %55 = arith.addf %53, %54 : vector<16x128xf32>
    %56 = math.tanh %55 : vector<16x128xf32>
    %57 = arith.mulf %52, %56 : vector<16x128xf32>
    %c0_26 = arith.constant 0 : index
    %c0_27 = arith.constant 0 : index
    %58 = vector.load %arg11[%c0_26, %c0_27] : memref<128x128xf32, #tpu.memory_space<vmem>>, vector<16x128xf32>
    tpu.vector_store %arg11[%c0_26, %c0_27], %57 {strides = array<i32>} : memref<128x128xf32, #tpu.memory_space<vmem>>, vector<16x128xf32>,
    %59 = vector.extract_strided_slice %24 {offsets = [16, 0], sizes = [16, 512], strides = [1, 1]} : vector<128x512xf32> to vector<16x512xf32>
    %60 = arith.addf %59, %15 : vector<16x512xf32>
    %61 = arith.truncf %57 : vector<16x128xf32> to vector<16x128xbf16>
    %c0_28 = arith.constant 0 : index
    %c0_29 = arith.constant 0 : index
    %62 = vector.load %arg7[%c0_28, %c0_29] : memref<128x512xbf16, #tpu.memory_space<vmem>>, vector<128x512xbf16>
    %cst_30 = arith.constant dense<0.000000e+00> : vector<16x512xf32>
    %63 = tpu.matmul %61, %62, %cst_30 {dimension_numbers = #tpu.dot_dimension_numbers<[1], [0], [0], [1], [0, 0, 1, 1], [], []>} : vector<16x128xbf16>, vector<128x512xbf16>, vector<16x512xf32> -> vector<16x512xf32>
    %64 = arith.addf %60, %63 : vector<16x512xf32>
    %65 = vector.extract_strided_slice %64 {offsets = [0, 0], sizes = [16, 128], strides = [1, 1]} : vector<16x512xf32> to vector<16x128xf32>
    %66 = arith.negf %65 : vector<16x128xf32>
    %67 = math.exp %66 : vector<16x128xf32>
    %cst_31 = arith.constant 1.000000e+00 : f32
    %68 = vector.broadcast %cst_31 : f32 to vector<16x128xf32>
    %69 = arith.addf %68, %67 : vector<16x128xf32>
    %70 = arith.divf %68, %69 : vector<16x128xf32>
    %71 = vector.extract_strided_slice %64 {offsets = [0, 128], sizes = [16, 128], strides = [1, 1]} : vector<16x512xf32> to vector<16x128xf32>
    %72 = arith.negf %71 : vector<16x128xf32>
    %73 = math.exp %72 : vector<16x128xf32>
    %cst_32 = arith.constant 1.000000e+00 : f32
    %74 = vector.broadcast %cst_32 : f32 to vector<16x128xf32>
    %75 = arith.addf %74, %73 : vector<16x128xf32>
    %76 = arith.divf %74, %75 : vector<16x128xf32>
    %77 = vector.extract_strided_slice %64 {offsets = [0, 256], sizes = [16, 128], strides = [1, 1]} : vector<16x512xf32> to vector<16x128xf32>
    %78 = math.tanh %77 : vector<16x128xf32>
    %79 = vector.extract_strided_slice %64 {offsets = [0, 384], sizes = [16, 128], strides = [1, 1]} : vector<16x512xf32> to vector<16x128xf32>
    %80 = arith.negf %79 : vector<16x128xf32>
    %81 = math.exp %80 : vector<16x128xf32>
    %cst_33 = arith.constant 1.000000e+00 : f32
    %82 = vector.broadcast %cst_33 : f32 to vector<16x128xf32>
    %83 = arith.addf %82, %81 : vector<16x128xf32>
    %84 = arith.divf %82, %83 : vector<16x128xf32>
    %85 = arith.mulf %76, %55 : vector<16x128xf32>
    %86 = arith.mulf %70, %78 : vector<16x128xf32>
    %87 = arith.addf %85, %86 : vector<16x128xf32>
    %88 = math.tanh %87 : vector<16x128xf32>
    %89 = arith.mulf %84, %88 : vector<16x128xf32>
    %c16 = arith.constant 16 : index
    %c0_34 = arith.constant 0 : index
    %90 = vector.load %arg11[%c16, %c0_34] : memref<128x128xf32, #tpu.memory_space<vmem>>, vector<16x128xf32>
    tpu.vector_store %arg11[%c16, %c0_34], %89 {strides = array<i32>} : memref<128x128xf32, #tpu.memory_space<vmem>>, vector<16x128xf32>,
    %91 = vector.extract_strided_slice %24 {offsets = [32, 0], sizes = [16, 512], strides = [1, 1]} : vector<128x512xf32> to vector<16x512xf32>
    %92 = arith.addf %91, %15 : vector<16x512xf32>
    %93 = arith.truncf %89 : vector<16x128xf32> to vector<16x128xbf16>
    %c0_35 = arith.constant 0 : index
    %c0_36 = arith.constant 0 : index
    %94 = vector.load %arg7[%c0_35, %c0_36] : memref<128x512xbf16, #tpu.memory_space<vmem>>, vector<128x512xbf16>
    %cst_37 = arith.constant dense<0.000000e+00> : vector<16x512xf32>
    %95 = tpu.matmul %93, %94, %cst_37 {dimension_numbers = #tpu.dot_dimension_numbers<[1], [0], [0], [1], [0, 0, 1, 1], [], []>} : vector<16x128xbf16>, vector<128x512xbf16>, vector<16x512xf32> -> vector<16x512xf32>
    %96 = arith.addf %92, %95 : vector<16x512xf32>
    %97 = vector.extract_strided_slice %96 {offsets = [0, 0], sizes = [16, 128], strides = [1, 1]} : vector<16x512xf32> to vector<16x128xf32>
    %98 = arith.negf %97 : vector<16x128xf32>
    %99 = math.exp %98 : vector<16x128xf32>
    %cst_38 = arith.constant 1.000000e+00 : f32
    %100 = vector.broadcast %cst_38 : f32 to vector<16x128xf32>
    %101 = arith.addf %100, %99 : vector<16x128xf32>
    %102 = arith.divf %100, %101 : vector<16x128xf32>
    %103 = vector.extract_strided_slice %96 {offsets = [0, 128], sizes = [16, 128], strides = [1, 1]} : vector<16x512xf32> to vector<16x128xf32>
    %104 = arith.negf %103 : vector<16x128xf32>
    %105 = math.exp %104 : vector<16x128xf32>
    %cst_39 = arith.constant 1.000000e+00 : f32
    %106 = vector.broadcast %cst_39 : f32 to vector<16x128xf32>
    %107 = arith.addf %106, %105 : vector<16x128xf32>
    %108 = arith.divf %106, %107 : vector<16x128xf32>
    %109 = vector.extract_strided_slice %96 {offsets = [0, 256], sizes = [16, 128], strides = [1, 1]} : vector<16x512xf32> to vector<16x128xf32>
    %110 = math.tanh %109 : vector<16x128xf32>
    %111 = vector.extract_strided_slice %96 {offsets = [0, 384], sizes = [16, 128], strides = [1, 1]} : vector<16x512xf32> to vector<16x128xf32>
    %112 = arith.negf %111 : vector<16x128xf32>
    %113 = math.exp %112 : vector<16x128xf32>
    %cst_40 = arith.constant 1.000000e+00 : f32
    %114 = vector.broadcast %cst_40 : f32 to vector<16x128xf32>
    %115 = arith.addf %114, %113 : vector<16x128xf32>
    %116 = arith.divf %114, %115 : vector<16x128xf32>
    %117 = arith.mulf %108, %87 : vector<16x128xf32>
    %118 = arith.mulf %102, %110 : vector<16x128xf32>
    %119 = arith.addf %117, %118 : vector<16x128xf32>
    %120 = math.tanh %119 : vector<16x128xf32>
    %121 = arith.mulf %116, %120 : vector<16x128xf32>
    %c32 = arith.constant 32 : index
    %c0_41 = arith.constant 0 : index
    %122 = vector.load %arg11[%c32, %c0_41] : memref<128x128xf32, #tpu.memory_space<vmem>>, vector<16x128xf32>
    tpu.vector_store %arg11[%c32, %c0_41], %121 {strides = array<i32>} : memref<128x128xf32, #tpu.memory_space<vmem>>, vector<16x128xf32>,
    %123 = vector.extract_strided_slice %24 {offsets = [48, 0], sizes = [16, 512], strides = [1, 1]} : vector<128x512xf32> to vector<16x512xf32>
    %124 = arith.addf %123, %15 : vector<16x512xf32>
    %125 = arith.truncf %121 : vector<16x128xf32> to vector<16x128xbf16>
    %c0_42 = arith.constant 0 : index
    %c0_43 = arith.constant 0 : index
    %126 = vector.load %arg7[%c0_42, %c0_43] : memref<128x512xbf16, #tpu.memory_space<vmem>>, vector<128x512xbf16>
    %cst_44 = arith.constant dense<0.000000e+00> : vector<16x512xf32>
    %127 = tpu.matmul %125, %126, %cst_44 {dimension_numbers = #tpu.dot_dimension_numbers<[1], [0], [0], [1], [0, 0, 1, 1], [], []>} : vector<16x128xbf16>, vector<128x512xbf16>, vector<16x512xf32> -> vector<16x512xf32>
    %128 = arith.addf %124, %127 : vector<16x512xf32>
    %129 = vector.extract_strided_slice %128 {offsets = [0, 0], sizes = [16, 128], strides = [1, 1]} : vector<16x512xf32> to vector<16x128xf32>
    %130 = arith.negf %129 : vector<16x128xf32>
    %131 = math.exp %130 : vector<16x128xf32>
    %cst_45 = arith.constant 1.000000e+00 : f32
    %132 = vector.broadcast %cst_45 : f32 to vector<16x128xf32>
    %133 = arith.addf %132, %131 : vector<16x128xf32>
    %134 = arith.divf %132, %133 : vector<16x128xf32>
    %135 = vector.extract_strided_slice %128 {offsets = [0, 128], sizes = [16, 128], strides = [1, 1]} : vector<16x512xf32> to vector<16x128xf32>
    %136 = arith.negf %135 : vector<16x128xf32>
    %137 = math.exp %136 : vector<16x128xf32>
    %cst_46 = arith.constant 1.000000e+00 : f32
    %138 = vector.broadcast %cst_46 : f32 to vector<16x128xf32>
    %139 = arith.addf %138, %137 : vector<16x128xf32>
    %140 = arith.divf %138, %139 : vector<16x128xf32>
    %141 = vector.extract_strided_slice %128 {offsets = [0, 256], sizes = [16, 128], strides = [1, 1]} : vector<16x512xf32> to vector<16x128xf32>
    %142 = math.tanh %141 : vector<16x128xf32>
    %143 = vector.extract_strided_slice %128 {offsets = [0, 384], sizes = [16, 128], strides = [1, 1]} : vector<16x512xf32> to vector<16x128xf32>
    %144 = arith.negf %143 : vector<16x128xf32>
    %145 = math.exp %144 : vector<16x128xf32>
    %cst_47 = arith.constant 1.000000e+00 : f32
    %146 = vector.broadcast %cst_47 : f32 to vector<16x128xf32>
    %147 = arith.addf %146, %145 : vector<16x128xf32>
    %148 = arith.divf %146, %147 : vector<16x128xf32>
    %149 = arith.mulf %140, %119 : vector<16x128xf32>
    %150 = arith.mulf %134, %142 : vector<16x128xf32>
    %151 = arith.addf %149, %150 : vector<16x128xf32>
    %152 = math.tanh %151 : vector<16x128xf32>
    %153 = arith.mulf %148, %152 : vector<16x128xf32>
    %c48 = arith.constant 48 : index
    %c0_48 = arith.constant 0 : index
    %154 = vector.load %arg11[%c48, %c0_48] : memref<128x128xf32, #tpu.memory_space<vmem>>, vector<16x128xf32>
    tpu.vector_store %arg11[%c48, %c0_48], %153 {strides = array<i32>} : memref<128x128xf32, #tpu.memory_space<vmem>>, vector<16x128xf32>,
    %155 = vector.extract_strided_slice %24 {offsets = [64, 0], sizes = [16, 512], strides = [1, 1]} : vector<128x512xf32> to vector<16x512xf32>
    %156 = arith.addf %155, %15 : vector<16x512xf32>
    %157 = arith.truncf %153 : vector<16x128xf32> to vector<16x128xbf16>
    %c0_49 = arith.constant 0 : index
    %c0_50 = arith.constant 0 : index
    %158 = vector.load %arg7[%c0_49, %c0_50] : memref<128x512xbf16, #tpu.memory_space<vmem>>, vector<128x512xbf16>
    %cst_51 = arith.constant dense<0.000000e+00> : vector<16x512xf32>
    %159 = tpu.matmul %157, %158, %cst_51 {dimension_numbers = #tpu.dot_dimension_numbers<[1], [0], [0], [1], [0, 0, 1, 1], [], []>} : vector<16x128xbf16>, vector<128x512xbf16>, vector<16x512xf32> -> vector<16x512xf32>
    %160 = arith.addf %156, %159 : vector<16x512xf32>
    %161 = vector.extract_strided_slice %160 {offsets = [0, 0], sizes = [16, 128], strides = [1, 1]} : vector<16x512xf32> to vector<16x128xf32>
    %162 = arith.negf %161 : vector<16x128xf32>
    %163 = math.exp %162 : vector<16x128xf32>
    %cst_52 = arith.constant 1.000000e+00 : f32
    %164 = vector.broadcast %cst_52 : f32 to vector<16x128xf32>
    %165 = arith.addf %164, %163 : vector<16x128xf32>
    %166 = arith.divf %164, %165 : vector<16x128xf32>
    %167 = vector.extract_strided_slice %160 {offsets = [0, 128], sizes = [16, 128], strides = [1, 1]} : vector<16x512xf32> to vector<16x128xf32>
    %168 = arith.negf %167 : vector<16x128xf32>
    %169 = math.exp %168 : vector<16x128xf32>
    %cst_53 = arith.constant 1.000000e+00 : f32
    %170 = vector.broadcast %cst_53 : f32 to vector<16x128xf32>
    %171 = arith.addf %170, %169 : vector<16x128xf32>
    %172 = arith.divf %170, %171 : vector<16x128xf32>
    %173 = vector.extract_strided_slice %160 {offsets = [0, 256], sizes = [16, 128], strides = [1, 1]} : vector<16x512xf32> to vector<16x128xf32>
    %174 = math.tanh %173 : vector<16x128xf32>
    %175 = vector.extract_strided_slice %160 {offsets = [0, 384], sizes = [16, 128], strides = [1, 1]} : vector<16x512xf32> to vector<16x128xf32>
    %176 = arith.negf %175 : vector<16x128xf32>
    %177 = math.exp %176 : vector<16x128xf32>
    %cst_54 = arith.constant 1.000000e+00 : f32
    %178 = vector.broadcast %cst_54 : f32 to vector<16x128xf32>
    %179 = arith.addf %178, %177 : vector<16x128xf32>
    %180 = arith.divf %178, %179 : vector<16x128xf32>
    %181 = arith.mulf %172, %151 : vector<16x128xf32>
    %182 = arith.mulf %166, %174 : vector<16x128xf32>
    %183 = arith.addf %181, %182 : vector<16x128xf32>
    %184 = math.tanh %183 : vector<16x128xf32>
    %185 = arith.mulf %180, %184 : vector<16x128xf32>
    %c64 = arith.constant 64 : index
    %c0_55 = arith.constant 0 : index
    %186 = vector.load %arg11[%c64, %c0_55] : memref<128x128xf32, #tpu.memory_space<vmem>>, vector<16x128xf32>
    tpu.vector_store %arg11[%c64, %c0_55], %185 {strides = array<i32>} : memref<128x128xf32, #tpu.memory_space<vmem>>, vector<16x128xf32>,
    %187 = vector.extract_strided_slice %24 {offsets = [80, 0], sizes = [16, 512], strides = [1, 1]} : vector<128x512xf32> to vector<16x512xf32>
    %188 = arith.addf %187, %15 : vector<16x512xf32>
    %189 = arith.truncf %185 : vector<16x128xf32> to vector<16x128xbf16>
    %c0_56 = arith.constant 0 : index
    %c0_57 = arith.constant 0 : index
    %190 = vector.load %arg7[%c0_56, %c0_57] : memref<128x512xbf16, #tpu.memory_space<vmem>>, vector<128x512xbf16>
    %cst_58 = arith.constant dense<0.000000e+00> : vector<16x512xf32>
    %191 = tpu.matmul %189, %190, %cst_58 {dimension_numbers = #tpu.dot_dimension_numbers<[1], [0], [0], [1], [0, 0, 1, 1], [], []>} : vector<16x128xbf16>, vector<128x512xbf16>, vector<16x512xf32> -> vector<16x512xf32>
    %192 = arith.addf %188, %191 : vector<16x512xf32>
    %193 = vector.extract_strided_slice %192 {offsets = [0, 0], sizes = [16, 128], strides = [1, 1]} : vector<16x512xf32> to vector<16x128xf32>
    %194 = arith.negf %193 : vector<16x128xf32>
    %195 = math.exp %194 : vector<16x128xf32>
    %cst_59 = arith.constant 1.000000e+00 : f32
    %196 = vector.broadcast %cst_59 : f32 to vector<16x128xf32>
    %197 = arith.addf %196, %195 : vector<16x128xf32>
    %198 = arith.divf %196, %197 : vector<16x128xf32>
    %199 = vector.extract_strided_slice %192 {offsets = [0, 128], sizes = [16, 128], strides = [1, 1]} : vector<16x512xf32> to vector<16x128xf32>
    %200 = arith.negf %199 : vector<16x128xf32>
    %201 = math.exp %200 : vector<16x128xf32>
    %cst_60 = arith.constant 1.000000e+00 : f32
    %202 = vector.broadcast %cst_60 : f32 to vector<16x128xf32>
    %203 = arith.addf %202, %201 : vector<16x128xf32>
    %204 = arith.divf %202, %203 : vector<16x128xf32>
    %205 = vector.extract_strided_slice %192 {offsets = [0, 256], sizes = [16, 128], strides = [1, 1]} : vector<16x512xf32> to vector<16x128xf32>
    %206 = math.tanh %205 : vector<16x128xf32>
    %207 = vector.extract_strided_slice %192 {offsets = [0, 384], sizes = [16, 128], strides = [1, 1]} : vector<16x512xf32> to vector<16x128xf32>
    %208 = arith.negf %207 : vector<16x128xf32>
    %209 = math.exp %208 : vector<16x128xf32>
    %cst_61 = arith.constant 1.000000e+00 : f32
    %210 = vector.broadcast %cst_61 : f32 to vector<16x128xf32>
    %211 = arith.addf %210, %209 : vector<16x128xf32>
    %212 = arith.divf %210, %211 : vector<16x128xf32>
    %213 = arith.mulf %204, %183 : vector<16x128xf32>
    %214 = arith.mulf %198, %206 : vector<16x128xf32>
    %215 = arith.addf %213, %214 : vector<16x128xf32>
    %216 = math.tanh %215 : vector<16x128xf32>
    %217 = arith.mulf %212, %216 : vector<16x128xf32>
    %c80 = arith.constant 80 : index
    %c0_62 = arith.constant 0 : index
    %218 = vector.load %arg11[%c80, %c0_62] : memref<128x128xf32, #tpu.memory_space<vmem>>, vector<16x128xf32>
    tpu.vector_store %arg11[%c80, %c0_62], %217 {strides = array<i32>} : memref<128x128xf32, #tpu.memory_space<vmem>>, vector<16x128xf32>,
    %219 = vector.extract_strided_slice %24 {offsets = [96, 0], sizes = [16, 512], strides = [1, 1]} : vector<128x512xf32> to vector<16x512xf32>
    %220 = arith.addf %219, %15 : vector<16x512xf32>
    %221 = arith.truncf %217 : vector<16x128xf32> to vector<16x128xbf16>
    %c0_63 = arith.constant 0 : index
    %c0_64 = arith.constant 0 : index
    %222 = vector.load %arg7[%c0_63, %c0_64] : memref<128x512xbf16, #tpu.memory_space<vmem>>, vector<128x512xbf16>
    %cst_65 = arith.constant dense<0.000000e+00> : vector<16x512xf32>
    %223 = tpu.matmul %221, %222, %cst_65 {dimension_numbers = #tpu.dot_dimension_numbers<[1], [0], [0], [1], [0, 0, 1, 1], [], []>} : vector<16x128xbf16>, vector<128x512xbf16>, vector<16x512xf32> -> vector<16x512xf32>
    %224 = arith.addf %220, %223 : vector<16x512xf32>
    %225 = vector.extract_strided_slice %224 {offsets = [0, 0], sizes = [16, 128], strides = [1, 1]} : vector<16x512xf32> to vector<16x128xf32>
    %226 = arith.negf %225 : vector<16x128xf32>
    %227 = math.exp %226 : vector<16x128xf32>
    %cst_66 = arith.constant 1.000000e+00 : f32
    %228 = vector.broadcast %cst_66 : f32 to vector<16x128xf32>
    %229 = arith.addf %228, %227 : vector<16x128xf32>
    %230 = arith.divf %228, %229 : vector<16x128xf32>
    %231 = vector.extract_strided_slice %224 {offsets = [0, 128], sizes = [16, 128], strides = [1, 1]} : vector<16x512xf32> to vector<16x128xf32>
    %232 = arith.negf %231 : vector<16x128xf32>
    %233 = math.exp %232 : vector<16x128xf32>
    %cst_67 = arith.constant 1.000000e+00 : f32
    %234 = vector.broadcast %cst_67 : f32 to vector<16x128xf32>
    %235 = arith.addf %234, %233 : vector<16x128xf32>
    %236 = arith.divf %234, %235 : vector<16x128xf32>
    %237 = vector.extract_strided_slice %224 {offsets = [0, 256], sizes = [16, 128], strides = [1, 1]} : vector<16x512xf32> to vector<16x128xf32>
    %238 = math.tanh %237 : vector<16x128xf32>
    %239 = vector.extract_strided_slice %224 {offsets = [0, 384], sizes = [16, 128], strides = [1, 1]} : vector<16x512xf32> to vector<16x128xf32>
    %240 = arith.negf %239 : vector<16x128xf32>
    %241 = math.exp %240 : vector<16x128xf32>
    %cst_68 = arith.constant 1.000000e+00 : f32
    %242 = vector.broadcast %cst_68 : f32 to vector<16x128xf32>
    %243 = arith.addf %242, %241 : vector<16x128xf32>
    %244 = arith.divf %242, %243 : vector<16x128xf32>
    %245 = arith.mulf %236, %215 : vector<16x128xf32>
    %246 = arith.mulf %230, %238 : vector<16x128xf32>
    %247 = arith.addf %245, %246 : vector<16x128xf32>
    %248 = math.tanh %247 : vector<16x128xf32>
    %249 = arith.mulf %244, %248 : vector<16x128xf32>
    %c96 = arith.constant 96 : index
    %c0_69 = arith.constant 0 : index
    %250 = vector.load %arg11[%c96, %c0_69] : memref<128x128xf32, #tpu.memory_space<vmem>>, vector<16x128xf32>
    tpu.vector_store %arg11[%c96, %c0_69], %249 {strides = array<i32>} : memref<128x128xf32, #tpu.memory_space<vmem>>, vector<16x128xf32>,
    %251 = vector.extract_strided_slice %24 {offsets = [112, 0], sizes = [16, 512], strides = [1, 1]} : vector<128x512xf32> to vector<16x512xf32>
    %252 = arith.addf %251, %15 : vector<16x512xf32>
    %253 = arith.truncf %249 : vector<16x128xf32> to vector<16x128xbf16>
    %c0_70 = arith.constant 0 : index
    %c0_71 = arith.constant 0 : index
    %254 = vector.load %arg7[%c0_70, %c0_71] : memref<128x512xbf16, #tpu.memory_space<vmem>>, vector<128x512xbf16>
    %cst_72 = arith.constant dense<0.000000e+00> : vector<16x512xf32>
    %255 = tpu.matmul %253, %254, %cst_72 {dimension_numbers = #tpu.dot_dimension_numbers<[1], [0], [0], [1], [0, 0, 1, 1], [], []>} : vector<16x128xbf16>, vector<128x512xbf16>, vector<16x512xf32> -> vector<16x512xf32>
    %256 = arith.addf %252, %255 : vector<16x512xf32>
    %257 = vector.extract_strided_slice %256 {offsets = [0, 0], sizes = [16, 128], strides = [1, 1]} : vector<16x512xf32> to vector<16x128xf32>
    %258 = arith.negf %257 : vector<16x128xf32>
    %259 = math.exp %258 : vector<16x128xf32>
    %cst_73 = arith.constant 1.000000e+00 : f32
    %260 = vector.broadcast %cst_73 : f32 to vector<16x128xf32>
    %261 = arith.addf %260, %259 : vector<16x128xf32>
    %262 = arith.divf %260, %261 : vector<16x128xf32>
    %263 = vector.extract_strided_slice %256 {offsets = [0, 128], sizes = [16, 128], strides = [1, 1]} : vector<16x512xf32> to vector<16x128xf32>
    %264 = arith.negf %263 : vector<16x128xf32>
    %265 = math.exp %264 : vector<16x128xf32>
    %cst_74 = arith.constant 1.000000e+00 : f32
    %266 = vector.broadcast %cst_74 : f32 to vector<16x128xf32>
    %267 = arith.addf %266, %265 : vector<16x128xf32>
    %268 = arith.divf %266, %267 : vector<16x128xf32>
    %269 = vector.extract_strided_slice %256 {offsets = [0, 256], sizes = [16, 128], strides = [1, 1]} : vector<16x512xf32> to vector<16x128xf32>
    %270 = math.tanh %269 : vector<16x128xf32>
    %271 = vector.extract_strided_slice %256 {offsets = [0, 384], sizes = [16, 128], strides = [1, 1]} : vector<16x512xf32> to vector<16x128xf32>
    %272 = arith.negf %271 : vector<16x128xf32>
    %273 = math.exp %272 : vector<16x128xf32>
    %cst_75 = arith.constant 1.000000e+00 : f32
    %274 = vector.broadcast %cst_75 : f32 to vector<16x128xf32>
    %275 = arith.addf %274, %273 : vector<16x128xf32>
    %276 = arith.divf %274, %275 : vector<16x128xf32>
    %277 = arith.mulf %268, %247 : vector<16x128xf32>
    %278 = arith.mulf %262, %270 : vector<16x128xf32>
    %279 = arith.addf %277, %278 : vector<16x128xf32>
    %280 = math.tanh %279 : vector<16x128xf32>
    %281 = arith.mulf %276, %280 : vector<16x128xf32>
    %c112 = arith.constant 112 : index
    %c0_76 = arith.constant 0 : index
    %282 = vector.load %arg11[%c112, %c0_76] : memref<128x128xf32, #tpu.memory_space<vmem>>, vector<16x128xf32>
    tpu.vector_store %arg11[%c112, %c0_76], %281 {strides = array<i32>} : memref<128x128xf32, #tpu.memory_space<vmem>>, vector<16x128xf32>,
    %c0_77 = arith.constant 0 : index
    %c0_78 = arith.constant 0 : index
    %283 = vector.load %arg11[%c0_77, %c0_78] : memref<128x128xf32, #tpu.memory_space<vmem>>, vector<128x128xf32>
    %284 = arith.truncf %283 : vector<128x128xf32> to vector<128x128xbf16>
    %c0_79 = arith.constant 0 : index
    %c0_80 = arith.constant 0 : index
    %285 = vector.load %arg8[%c0_79, %c0_80] : memref<128x256xbf16, #tpu.memory_space<vmem>>, vector<128x256xbf16>
    %cst_81 = arith.constant dense<0.000000e+00> : vector<128x256xf32>
    %286 = tpu.matmul %284, %285, %cst_81 {dimension_numbers = #tpu.dot_dimension_numbers<[1], [0], [0], [1], [0, 0, 1, 1], [], []>} : vector<128x128xbf16>, vector<128x256xbf16>, vector<128x256xf32> -> vector<128x256xf32>
    %c0_82 = arith.constant 0 : index
    %c0_83 = arith.constant 0 : index
    %287 = vector.load %arg9[%c0_82, %c0_83] : memref<1x256xf32, #tpu.memory_space<vmem>>, vector<1x256xf32>
    %288 = vector.broadcast %287 : vector<1x256xf32> to vector<128x256xf32>
    %289 = arith.addf %286, %288 : vector<128x256xf32>
    %290 = vector.extract_strided_slice %289 {offsets = [0, 0], sizes = [16, 256], strides = [1, 1]} : vector<128x256xf32> to vector<16x256xf32>
    %c0_84 = arith.constant 0 : index
    %c0_85 = arith.constant 0 : index
    %291 = vector.load %arg10[%c0_84, %c0_85] : memref<16x2048xf32, #tpu.memory_space<vmem>>, vector<16x256xf32>
    tpu.vector_store %arg10[%c0_84, %c0_85], %290 {strides = array<i32>} : memref<16x2048xf32, #tpu.memory_space<vmem>>, vector<16x256xf32>,
    %292 = vector.extract_strided_slice %289 {offsets = [16, 0], sizes = [16, 256], strides = [1, 1]} : vector<128x256xf32> to vector<16x256xf32>
    %c0_86 = arith.constant 0 : index
    %c256 = arith.constant 256 : index
    %293 = vector.load %arg10[%c0_86, %c256] : memref<16x2048xf32, #tpu.memory_space<vmem>>, vector<16x256xf32>
    tpu.vector_store %arg10[%c0_86, %c256], %292 {strides = array<i32>} : memref<16x2048xf32, #tpu.memory_space<vmem>>, vector<16x256xf32>,
    %294 = vector.extract_strided_slice %289 {offsets = [32, 0], sizes = [16, 256], strides = [1, 1]} : vector<128x256xf32> to vector<16x256xf32>
    %c0_87 = arith.constant 0 : index
    %c512 = arith.constant 512 : index
    %295 = vector.load %arg10[%c0_87, %c512] : memref<16x2048xf32, #tpu.memory_space<vmem>>, vector<16x256xf32>
    tpu.vector_store %arg10[%c0_87, %c512], %294 {strides = array<i32>} : memref<16x2048xf32, #tpu.memory_space<vmem>>, vector<16x256xf32>,
    %296 = vector.extract_strided_slice %289 {offsets = [48, 0], sizes = [16, 256], strides = [1, 1]} : vector<128x256xf32> to vector<16x256xf32>
    %c0_88 = arith.constant 0 : index
    %c768 = arith.constant 768 : index
    %297 = vector.load %arg10[%c0_88, %c768] : memref<16x2048xf32, #tpu.memory_space<vmem>>, vector<16x256xf32>
    tpu.vector_store %arg10[%c0_88, %c768], %296 {strides = array<i32>} : memref<16x2048xf32, #tpu.memory_space<vmem>>, vector<16x256xf32>,
    %298 = vector.extract_strided_slice %289 {offsets = [64, 0], sizes = [16, 256], strides = [1, 1]} : vector<128x256xf32> to vector<16x256xf32>
    %c0_89 = arith.constant 0 : index
    %c1024 = arith.constant 1024 : index
    %299 = vector.load %arg10[%c0_89, %c1024] : memref<16x2048xf32, #tpu.memory_space<vmem>>, vector<16x256xf32>
    tpu.vector_store %arg10[%c0_89, %c1024], %298 {strides = array<i32>} : memref<16x2048xf32, #tpu.memory_space<vmem>>, vector<16x256xf32>,
    %300 = vector.extract_strided_slice %289 {offsets = [80, 0], sizes = [16, 256], strides = [1, 1]} : vector<128x256xf32> to vector<16x256xf32>
    %c0_90 = arith.constant 0 : index
    %c1280 = arith.constant 1280 : index
    %301 = vector.load %arg10[%c0_90, %c1280] : memref<16x2048xf32, #tpu.memory_space<vmem>>, vector<16x256xf32>
    tpu.vector_store %arg10[%c0_90, %c1280], %300 {strides = array<i32>} : memref<16x2048xf32, #tpu.memory_space<vmem>>, vector<16x256xf32>,
    %302 = vector.extract_strided_slice %289 {offsets = [96, 0], sizes = [16, 256], strides = [1, 1]} : vector<128x256xf32> to vector<16x256xf32>
    %c0_91 = arith.constant 0 : index
    %c1536 = arith.constant 1536 : index
    %303 = vector.load %arg10[%c0_91, %c1536] : memref<16x2048xf32, #tpu.memory_space<vmem>>, vector<16x256xf32>
    tpu.vector_store %arg10[%c0_91, %c1536], %302 {strides = array<i32>} : memref<16x2048xf32, #tpu.memory_space<vmem>>, vector<16x256xf32>,
    %304 = vector.extract_strided_slice %289 {offsets = [112, 0], sizes = [16, 256], strides = [1, 1]} : vector<128x256xf32> to vector<16x256xf32>
    %c0_92 = arith.constant 0 : index
    %c1792 = arith.constant 1792 : index
    %305 = vector.load %arg10[%c0_92, %c1792] : memref<16x2048xf32, #tpu.memory_space<vmem>>, vector<16x256xf32>
    tpu.vector_store %arg10[%c0_92, %c1792], %304 {strides = array<i32>} : memref<16x2048xf32, #tpu.memory_space<vmem>>, vector<16x256xf32>,
    return
  }
}

</mosaic_0001>

<bundles_post_ra>
// kernel: scst_forward.1
= control target key start
LH: loop header
LB: loop body
LE: loop exit
PB: predicated region body
PF: predicated region fallthrough
CT: control target
= control target key end

     0   :  { %15 = vsyncpa [#allocation4], 0  ;;  %s8342_s0 = inlined_call_operand.vmem [shape: f32[16,3,256], index: 0, kind: input, shape index: {}]   ;;  %s8343_s1 = inlined_call_operand.vmem [shape: s32[128,1], index: 1, kind: input, shape index: {}]   ;;  %s8344_s2 = inlined_call_operand.vmem [shape: bf16[3,512], index: 2, kind: input, shape index: {}]   ;;  %s8345_s3 = inlined_call_operand.vmem [shape: f32[1,512], index: 3, kind: input, shape index: {}]   ;;  %s8346_s4 = inlined_call_operand.vmem [shape: bf16[512,512], index: 4, kind: input, shape index: {}]   ;;  %s8347_s5 = inlined_call_operand.hbm [shape: bf16[256,512], index: 5, kind: input, shape index: {}]   ;;  %s8348_s6 = inlined_call_operand.vmem [shape: f32[1,512], index: 6, kind: input, shape index: {}]   ;;  %s8349_s7 = inlined_call_operand.hbm [shape: bf16[128,512], index: 7, kind: input, shape index: {}]   ;;  %s8350_s8 = inlined_call_operand.hbm [shape: bf16[128,256], index: 8, kind: input, shape index: {}]   ;;  %s8351_s9 = inlined_call_operand.vmem [shape: f32[1,256], index: 9, kind: input, shape index: {}]   ;;  %s8352_s10 = inlined_call_operand.vmem [shape: f32[16,2048], index: 10, kind: output, shape index: {}]  }
   0x1   :  { %16 = vsyncpa [#allocation6], 0  ;;  %s6859_s13 = smov [#allocation5]   ;;  %s6860_s15 = smov [#allocation3]  }
   0x2   :  { %s46_s14 = sshll.u32 %s6859_s13, 4  ;;  %s32_s16 = sshll.u32 %s6860_s15, 4  ;;  %s47_s14 = int_to_ptr.vmem [resolvable:$true] %s46_s14  ;;  %s6925_s16 = int_to_ptr.vmem [resolvable:$true] %s32_s16 }
   0x3   :  { %s6789_s19 = scalar_lea.hbm %s8349_s7, 4096 }
   0x4   :  { %p6790_p0 = scmp.ne.s32.totalorder %s8349_s7, %s6789_s19  ;;  %p6793_p1 = scmp.lt.u32.totalorder %s6789_s19, %s8349_s7 }
   0x6   :  { %p6795_p2 = pnand %p6793_p1, %p6790_p0 }
   0x8   :  { %6798 = shalt.err (!%p6795_p2)
}
   0x9   :  { %s6799_s24 = scalar_lea.vmem %s47_s14, 4096  ;;  %p6804_p4 = scmp.lt.s32.totalorder %s47_s14, %s47_s14 }
   0xa   :  { %p6800_p3 = scmp.ne.s32.totalorder %s47_s14, %s6799_s24  ;;  %p6805_p5 = scmp.lt.s32.totalorder %s6799_s24, %s6799_s24 }
   0xc   :  { %p6806_p6 = por %p6805_p5, %p6804_p4 }
   0xe   :  { %p6807_p7 = pnand %p6806_p6, %p6800_p3 }
  0x10   :  { %6810 = shalt.err (!%p6807_p7)
}
  0x11   :  { %s6861_s25 = smov 256   ;;  %s6862_s26 = smov 16  }
  0x12   :  { %52 = dma.hbm_to_vmem [thread:$0]  %s8349_s7, 4096, %s47_s14, [#allocation6], %s6861_s25, %s6861_s25, %s6862_s26  }
  0x13   :  { %s6811_s11 = scalar_lea.hbm %s8347_s5, 8192 }
  0x14   :  { %p6812_p8 = scmp.ne.s32.totalorder %s8347_s5, %s6811_s11  ;;  %p6815_p9 = scmp.lt.u32.totalorder %s6811_s11, %s8347_s5 }
  0x16   :  { %p6817_p10 = pnand %p6815_p9, %p6812_p8 }
  0x18   :  { %6820 = shalt.err (!%p6817_p10)
}
  0x19   :  { %s6821_s18 = scalar_lea.vmem %s6925_s16, 8192  ;;  %p6826_p12 = scmp.lt.s32.totalorder %s6925_s16, %s6925_s16 }
  0x1a   :  { %p6822_p11 = scmp.ne.s32.totalorder %s6925_s16, %s6821_s18  ;;  %p6827_p13 = scmp.lt.s32.totalorder %s6821_s18, %s6821_s18 }
  0x1c   :  { %p6828_p0 = por %p6827_p13, %p6826_p12 }
  0x1e   :  { %p6829_p1 = pnand %p6828_p0, %p6822_p11 }
  0x20   :  { %6832 = shalt.err (!%p6829_p1)
}
  0x21   :  { %38 = dma.hbm_to_vmem [thread:$0]  %s8347_s5, 8192, %s6925_s16, [#allocation4], %s6861_s25, %s6861_s25, %s6862_s26  }
  0x22   :  { %s6863_s19 = smov [#allocation7]   ;;  %s6833_s23 = scalar_lea.hbm %s8350_s8, 2048 }
  0x23   :  { %s58_s20 = sshll.u32 %s6863_s19, 4  ;;  %p6834_p2 = scmp.ne.s32.totalorder %s8350_s8, %s6833_s23  ;;  %s59_s20 = int_to_ptr.vmem [resolvable:$true] %s58_s20 }
  0x24   :  { %p6837_p3 = scmp.lt.u32.totalorder %s6833_s23, %s8350_s8 }
  0x26   :  { %p6839_p4 = pnand %p6837_p3, %p6834_p2 }
  0x28   :  { %6842 = shalt.err (!%p6839_p4)
}
  0x29   :  { %s6843_s30 = scalar_lea.vmem %s59_s20, 2048  ;;  %p6848_p6 = scmp.lt.s32.totalorder %s59_s20, %s59_s20 }
  0x2a   :  { %p6844_p5 = scmp.ne.s32.totalorder %s59_s20, %s6843_s30  ;;  %p6849_p7 = scmp.lt.s32.totalorder %s6843_s30, %s6843_s30 }
  0x2c   :  { %p6850_p8 = por %p6849_p7, %p6848_p6 }
  0x2e   :  { %p6851_p9 = pnand %p6850_p8, %p6844_p5 }
  0x30   :  { %6854 = shalt.err (!%p6851_p9)
}
  0x31   :  { %s6864_s5 = smov 128   ;;  %s6865_s16 = smov 8  }
  0x32   :  { %64 = dma.hbm_to_vmem [thread:$0]  %s8350_s8, 2048, %s59_s20, [#allocation6], %s6864_s5, %s6864_s5, %s6865_s16  }
  0x33   :  { %6855 = dma.done.wait [#allocation4], 8192  }
  0x34   :  { %6856 = vsyncadd [#allocation4], 4294959104 }
  0x35   :  { %6857 = dma.done.wait [#allocation6], 6144  }
  0x36   :  { %6858 = vsyncadd [#allocation6], 4294961152  ;;  %vm141_vm0 = vcmask 1042432   ;;  %v85_v0 = vld [vmem:[%s8342_s0 + $0x40] sm:$0x77]  ;;  %vm420_vm1 = vcmask 1040384  }
  0x37   :  { %v77_v1 = vld [vmem:[%s8342_s0] sm:$0x77]  ;;  %v86_v2 = vld [vmem:[%s8342_s0 + $0x48] sm:$0x77]  ;;  %v117_v3 = vcombine.high %v85_v0, %v85_v0  ;;  %v182_v4 = vsel %vm141_vm0, %v85_v0, 0.0  ;;  %vm421_vm2 = vcmask 1041408  }
  0x38   :  { %v109_v5 = vcombine.high %v77_v1, %v77_v1  ;;  %v142_v6 = vsel %vm141_vm0, %v77_v1, 0.0  ;;  %v78_v7 = vld [vmem:[%s8342_s0 + $0x8] sm:$0x77]  ;;  %v87_v8 = vld [vmem:[%s8342_s0 + $0x50] sm:$0x77]  ;;  %v118_v9 = vcombine.high %v86_v2, %v86_v2  ;;  %v187_v10 = vsel %vm141_vm0, %v86_v2, 0.0 }
  0x39   :  { %v110_v11 = vcombine.high %v78_v7, %v78_v7  ;;  %v79_v12 = vld [vmem:[%s8342_s0 + $0x10] sm:$0x77]  ;;  %v183_v13 = vsel %vm141_vm0, %v117_v3, 0.0  ;;  %v147_v15 = vsel %vm141_vm0, %v78_v7, 0.0  ;;  %v119_v16 = vcombine.high %v87_v8, %v87_v8  ;;  %v88_v21 = vld [vmem:[%s8342_s0 + $0x58] sm:$0x77] }
  0x3a   :  { %v143_v14 = vsel %vm141_vm0, %v109_v5, 0.0  ;;  %v184_v17 = vadd.f32 %v183_v13, %v182_v4  ;;  %v188_v19 = vsel %vm141_vm0, %v118_v9, 0.0  ;;  %v80_v22 = vld [vmem:[%s8342_s0 + $0x18] sm:$0x77]  ;;  %v111_v23 = vcombine.high %v79_v12, %v79_v12  ;;  %v89_v32 = vld [vmem:[%s8342_s0 + $0x60] sm:$0x77] }
  0x3b   :  { %v144_v18 = vadd.f32 %v143_v14, %v142_v6  ;;  %v148_v20 = vsel %vm141_vm0, %v110_v11, 0.0  ;;  %v189_v24 = vadd.f32 %v188_v19, %v187_v10  ;;  %v192_v26 = vsel %vm141_vm0, %v87_v8, 0.0  ;;  %v81_v33 = vld [vmem:[%s8342_s0 + $0x20] sm:$0x77]  ;;  %v90_v38 = vld [vmem:[%s8342_s0 + $0x68] sm:$0x77] }
  0x3c   :  { %185 = vadd.xlane.f32.xlu1 %v184_v17  ;;  %v149_v25 = vadd.f32 %v148_v20, %v147_v15  ;;  %v193_v27 = vsel %vm141_vm0, %v119_v16, 0.0  ;;  %v152_v28 = vsel %vm141_vm0, %v79_v12, 0.0  ;;  %v153_v29 = vsel %vm141_vm0, %v111_v23, 0.0  ;;  %v82_v39 = vld [vmem:[%s8342_s0 + $0x28] sm:$0x77] }
  0x3d   :  { %145 = vadd.xlane.f32.xlu0 %v144_v18  ;;  %v120_v30 = vcombine.high %v88_v21, %v88_v21  ;;  %v112_v31 = vcombine.high %v80_v22, %v80_v22  ;;  %v194_v34 = vadd.f32 %v193_v27, %v192_v26  ;;  %v154_v35 = vadd.f32 %v153_v29, %v152_v28  ;;  %v91_v48 = vld [vmem:[%s8342_s0 + $0x70] sm:$0x77]  ;;  %v92_v58 = vld [vmem:[%s8342_s0 + $0x78] sm:$0x77] }
  0x3e   :  { %v197_v36 = vsel %vm141_vm0, %v88_v21, 0.0  ;;  %v121_v37 = vcombine.high %v89_v32, %v89_v32  ;;  %v157_v41 = vsel %vm141_vm0, %v80_v22, 0.0  ;;  %v113_v43 = vcombine.high %v81_v33, %v81_v33  ;;  %v83_v49 = vld [vmem:[%s8342_s0 + $0x30] sm:$0x77]  ;;  %v84_v59 = vld [vmem:[%s8342_s0 + $0x38] sm:$0x77] }
  0x3f   :  { %v198_v40 = vsel %vm141_vm0, %v120_v30, 0.0  ;;  %v158_v42 = vsel %vm141_vm0, %v112_v31, 0.0  ;;  %v202_v46 = vsel %vm141_vm0, %v89_v32, 0.0  ;;  %v162_v50 = vsel %vm141_vm0, %v81_v33, 0.0  ;;  %v255_v22 = vld [vmem:[%s8344_s2] sm:$0xff] }
  0x40   :  { %190 = vadd.xlane.f32.xlu1 %v189_v24  ;;  %v199_v44 = vadd.f32 %v198_v40, %v197_v36  ;;  %v159_v45 = vadd.f32 %v158_v42, %v157_v41  ;;  %v203_v47 = vsel %vm141_vm0, %v121_v37, 0.0  ;;  %v163_v51 = vsel %vm141_vm0, %v113_v43, 0.0  ;;  %v6101_v36 = vld [vmem:[%s8346_s4 + $0x4] ss:$16 sps:$4 sm:$0xff]   ;;  %v6106_v37 = vld [vmem:[%s8346_s4] ss:$16 sps:$4 sm:$0xff]  }
  0x41   :  { %150 = vadd.xlane.f32.xlu0 %v149_v25  ;;  %v122_v52 = vcombine.high %v90_v38, %v90_v38  ;;  %v114_v53 = vcombine.high %v82_v39, %v82_v39  ;;  %v204_v54 = vadd.f32 %v203_v47, %v202_v46  ;;  %v164_v55 = vadd.f32 %v163_v51, %v162_v50  ;;  %v6113_v40 = vld [vmem:[%s8346_s4 + $0x44] ss:$16 sps:$4 sm:$0xff]   ;;  %v6118_v41 = vld [vmem:[%s8346_s4 + $0x40] ss:$16 sps:$4 sm:$0xff]  }
  0x42   :  { %v207_v56 = vsel %vm141_vm0, %v90_v38, 0.0  ;;  %v167_v57 = vsel %vm141_vm0, %v82_v39, 0.0  ;;  %v123_v62 = vcombine.high %v91_v48, %v91_v48  ;;  %v115_v63 = vcombine.high %v83_v49, %v83_v49  ;;  %v6107_v38 = vld [vmem:[%s8346_s4 + $0x24] ss:$16 sps:$4 sm:$0xff]   ;;  %1316 = vmatprep.subr.bf16.mxu0 %v6101_v36  ;;  %v6112_v39 = vld [vmem:[%s8346_s4 + $0x20] ss:$16 sps:$4 sm:$0xff]  }
  0x43   :  { %v208_v60 = vsel %vm141_vm0, %v122_v52, 0.0  ;;  %v168_v61 = vsel %vm141_vm0, %v114_v53, 0.0  ;;  %v212_v2 = vsel %vm141_vm0, %v91_v48, 0.0  ;;  %v172_v3 = vsel %vm141_vm0, %v83_v49, 0.0  ;;  %1317 = vmatpush1.bf16.msra.mxu0 %v6106_v37  ;;  %v6119_v42 = vld [vmem:[%s8346_s4 + $0x64] ss:$16 sps:$4 sm:$0xff]  }
  0x44   :  { %195 = vadd.xlane.f32.xlu1 %v194_v34  ;;  %v209_v0 = vadd.f32 %v208_v60, %v207_v56  ;;  %v169_v1 = vadd.f32 %v168_v61, %v167_v57  ;;  %v213_v4 = vsel %vm141_vm0, %v123_v62, 0.0  ;;  %v173_v5 = vsel %vm141_vm0, %v115_v63, 0.0  ;;  %1318 = vmatprep.subr.bf16.mxu0 %v6107_v38  ;;  %v6124_v43 = vld [vmem:[%s8346_s4 + $0x60] ss:$16 sps:$4 sm:$0xff]   ;;  %v6131_v46 = vld [vmem:[%s8346_s4 + $0xa4] ss:$16 sps:$4 sm:$0xff]  }
  0x45   :  { %155 = vadd.xlane.f32.xlu0 %v154_v35  ;;  %v124_v6 = vcombine.high %v92_v58, %v92_v58  ;;  %v116_v7 = vcombine.high %v84_v59, %v84_v59  ;;  %v214_v8 = vadd.f32 %v213_v4, %v212_v2  ;;  %v174_v9 = vadd.f32 %v173_v5, %v172_v3  ;;  %v6136_v47 = vld [vmem:[%s8346_s4 + $0xa0] ss:$16 sps:$4 sm:$0xff]   ;;  %v1489_v48 = vld [vmem:[%s8343_s1 + $0x8] sm:$0xff]  ;;  %v6137_v49 = vld [vmem:[%s8346_s4 + $0xc4] ss:$16 sps:$4 sm:$0xff]  }
  0x46   :  { %v217_v10 = vsel %vm141_vm0, %v92_v58, 0.0  ;;  %v177_v12 = vsel %vm141_vm0, %v84_v59, 0.0  ;;  %v258_v16 = vlaneseq  ;;  %v6866_v17 = vmov 1983009808   ;;  %v6142_v50 = vld [vmem:[%s8346_s4 + $0xc0] ss:$16 sps:$4 sm:$0xff]  }
  0x47   :  { %v218_v11 = vsel %vm141_vm0, %v124_v6, 0.0  ;;  %v178_v13 = vsel %vm141_vm0, %v116_v7, 0.0  ;;  %v401_v18 = vunpack.c.l.s4 %v6866_v17  ;;  %v6867_v25 = vmov 65535   ;;  %1319 = vmatpush1.bf16.msra.mxu0 %v6112_v39  ;;  %v1490_v51 = vld [vmem:[%s8343_s1 + $0x10] sm:$0xff]  ;;  %v1492_v57 = vld [vmem:[%s8343_s1 + $0x20] sm:$0xff]  ;;  %v1493_v60 = vld [vmem:[%s8343_s1 + $0x28] sm:$0xff] }
  0x48   :  { %200 = vadd.xlane.f32.xlu1 %v199_v44  ;;  %v219_v14 = vadd.f32 %v218_v11, %v217_v10  ;;  %v179_v15 = vadd.f32 %v178_v13, %v177_v12  ;;  %v7049_v19 = vshrl.u32 %v258_v16, 7  ;;  %v422_v26 = vsel %vm420_vm1, 4294967295, %v6867_v25  ;;  %1320 = vmatprep.subr.bf16.mxu0 %v6113_v40  ;;  %v6125_v44 = vld [vmem:[%s8346_s4 + $0x84] ss:$16 sps:$4 sm:$0xff]   ;;  %v6148_v53 = vld [vmem:[%s8346_s4 + $0xe0] ss:$16 sps:$4 sm:$0xff]  }
  0x49   :  { %160 = vadd.xlane.f32.xlu0 %v159_v45  ;;  %v402_v20 = vunpack.c.0.s8 %v401_v18  ;;  %v7055_v27 = vsel %vm421_vm2, %v422_v26, 0  ;;  %v399_v30 = vcombine.high %v255_v22, %v255_v22  ;;  %v8353_v31 = vmov 0   ;;  %v6130_v45 = vld [vmem:[%s8346_s4 + $0x80] ss:$16 sps:$4 sm:$0xff]   ;;  %v6143_v52 = vld [vmem:[%s8346_s4 + $0xe4] ss:$16 sps:$4 sm:$0xff]  }
  0x4a   :  { %468 = vmatprep.mubr.bf16.mxu1 %v8353_v31  ;;  %6083 = vset.pattern.permute.xlu1 %v8353_v31  ;;  %v6154_v56 = vld [vmem:[%s8346_s4 + $0x100] ss:$16 sps:$4 sm:$0xff]   ;;  %v6155_v58 = vld [vmem:[%s8346_s4 + $0x124] ss:$16 sps:$4 sm:$0xff]   ;;  %v1495_v2 = vld [vmem:[%s8343_s1 + $0x38] sm:$0xff]  ;;  %v7190_v26 = vand.u32 127, %v258_v16 }
  0x4b   :  { %v405_v21 = vsub.s32 %v402_v20, %v7049_v19  ;;  %6082 = vset.pattern.permute.xlu0 %v8353_v31  ;;  %1321 = vmatpush1.bf16.msra.mxu0 %v6118_v41  ;;  %v6160_v59 = vld [vmem:[%s8346_s4 + $0x120] ss:$16 sps:$4 sm:$0xff]   ;;  %v6161_v61 = vld [vmem:[%s8346_s4 + $0x144] ss:$16 sps:$4 sm:$0xff]   ;;  %v1497_v7 = vld [vmem:[%s8343_s1 + $0x48] sm:$0xff]  ;;  %vm376_vm3 = vcmask 1041409  }
  0x4c   :  { %205 = vadd.xlane.f32.xlu1 %v204_v54  ;;  %1322 = vmatprep.subr.bf16.mxu0 %v6119_v42  ;;  %v1491_v54 = vld [vmem:[%s8343_s1 + $0x18] sm:$0xff]  ;;  %v6166_v62 = vld [vmem:[%s8346_s4 + $0x140] ss:$16 sps:$4 sm:$0xff]   ;;  %v6173_v4 = vld [vmem:[%s8346_s4 + $0x184] ss:$16 sps:$4 sm:$0xff]   ;;  %vm378_vm4 = vcmask 1042434  }
  0x4d   :  { %165 = vadd.xlane.f32.xlu0 %v164_v55  ;;  %v406_v23 = vrot.slane %v255_v22, %v405_v21  ;;  %v7060_v32 = vrot.slane %v399_v30, %v405_v21  ;;  %v6149_v55 = vld [vmem:[%s8346_s4 + $0x104] ss:$16 sps:$4 sm:$0xff]   ;;  %v6178_v5 = vld [vmem:[%s8346_s4 + $0x180] ss:$16 sps:$4 sm:$0xff]   ;;  %v1499_v11 = vld [vmem:[%s8343_s1 + $0x58] sm:$0xff]  ;;  %vm380_vm5 = vcmask 1043459  }
  0x4e   :  { %v1494_v63 = vld [vmem:[%s8343_s1 + $0x30] sm:$0xff]  ;;  %v1488_v3 = vld [vmem:[%s8343_s1] sm:$0xff]  ;;  %vm382_vm6 = vcmask 1044484   ;;  %vm384_vm7 = vcmask 1045509   ;;  %vm386_vm8 = vcmask 1046534   ;;  %vm388_vm9 = vcmask 1047559  }
  0x4f   :  { %v414_v24 = vcombine.high %v406_v23, %v406_v23  ;;  %v425_v29 = vand.u32 %v7055_v27, %v406_v23  ;;  %v415_v33 = vcombine.high %v7060_v32, %v7060_v32  ;;  %v431_v34 = vand.u32 %v7055_v27, %v7060_v32  ;;  %1323 = vmatpush1.bf16.msra.mxu0 %v6124_v43  ;;  %v1496_v6 = vld [vmem:[%s8343_s1 + $0x40] sm:$0xff]  ;;  %v1498_v10 = vld [vmem:[%s8343_s1 + $0x50] sm:$0xff]  ;;  %v6115_v32 = vld [vmem:[%s8346_s4 + $0x48] ss:$16 sps:$4 sm:$0xff]  }
  0x50   :  { %210 = vadd.xlane.f32.xlu1 %v209_v0  ;;  %1324 = vmatprep.subr.bf16.mxu0 %v6125_v44  ;;  %v6167_v0 = vld [vmem:[%s8346_s4 + $0x164] ss:$16 sps:$4 sm:$0xff]   ;;  %v7194_v43 = vsub.s32 %v7190_v26, %v7049_v19  ;;  %vm416_vm10 = vcmask 23552  }
  0x51   :  { %170 = vadd.xlane.f32.xlu0 %v169_v1  ;;  %v428_v28 = vand.u32 %v7055_v27, %v414_v24  ;;  %v434_v35 = vand.u32 %v7055_v27, %v415_v33  ;;  %v6172_v1 = vld [vmem:[%s8346_s4 + $0x160] ss:$16 sps:$4 sm:$0xff]   ;;  %v6117_v27 = vld [vmem:[%s8346_s4 + $0x4c] ss:$16 sps:$4 sm:$0xff]  }
  0x53   :  { %436 = vmatprep.subr.bf16.mxu1 %v428_v28  ;;  %1325 = vmatpush1.bf16.msra.mxu0 %v6130_v45 }
  0x54   :  { %215 = vadd.xlane.f32.xlu1 %v214_v8  ;;  %437 = vmatpush1.bf16.msra.mxu1 %v425_v29  ;;  %v6179_v8 = vld [vmem:[%s8346_s4 + $0x1a4] ss:$16 sps:$4 sm:$0xff]  }
  0x55   :  { %175 = vadd.xlane.f32.xlu0 %v174_v9  ;;  %479 = vmatprep.subr.bf16.mxu1 %v434_v35  ;;  %v6184_v9 = vld [vmem:[%s8346_s4 + $0x1a0] ss:$16 sps:$4 sm:$0xff]  }
  0x56   :  { %1326 = vmatprep.subr.bf16.mxu0 %v6131_v46 }
  0x57   :  { %1327 = vmatpush1.bf16.msra.mxu0 %v6136_v47 }
  0x58   :  { %220 = vadd.xlane.f32.xlu1 %v219_v14  ;;  %1328 = vmatprep.subr.bf16.mxu0 %v6137_v49 }
  0x59   :  { %180 = vadd.xlane.f32.xlu0 %v179_v15 }
  0x5b   :  { %1329 = vmatpush1.bf16.msra.mxu0 %v6142_v50 }
  0x5c   :  { %1330 = vmatprep.subr.bf16.mxu0 %v6143_v52 }
  0x5f   :  { %1331 = vmatpush1.bf16.msra.mxu0 %v6148_v53 }
  0x60   :  { %1332 = vmatprep.subr.bf16.mxu0 %v6149_v55 }
  0x63   :  { %1333 = vmatpush1.bf16.msra.mxu0 %v6154_v56 }
  0x64   :  { %1334 = vmatprep.subr.bf16.mxu0 %v6155_v58 }
  0x67   :  { %1335 = vmatpush1.bf16.msra.mxu0 %v6160_v59 }
  0x68   :  { %1336 = vmatprep.subr.bf16.mxu0 %v6161_v61 }
  0x69   :  { %1509 = vperm.xlu1 %6083, %v1489_v48  }
  0x6b   :  { %1337 = vmatpush1.bf16.msra.mxu0 %v6166_v62 }
  0x6c   :  { %1338 = vmatprep.subr.bf16.mxu0 %v6167_v0 }
  0x6d   :  { %1512 = vperm.xlu1 %6083, %v1490_v51  }
  0x6f   :  { %1506 = vperm.xlu0 %6082, %v1488_v3   ;;  %1339 = vmatpush1.bf16.msra.mxu0 %v6172_v1 }
  0x70   :  { %1340 = vmatprep.subr.bf16.mxu0 %v6173_v4 }
  0x71   :  { %1515 = vperm.xlu1 %6083, %v1491_v54  }
  0x73   :  { %1533 = vperm.xlu0 %6082, %v1497_v7   ;;  %1341 = vmatpush1.bf16.msra.mxu0 %v6178_v5 }
  0x74   :  { %1342 = vmatprep.subr.bf16.mxu0 %v6179_v8 }
  0x75   :  { %1518 = vperm.xlu1 %6083, %v1492_v57  }
  0x77   :  { %1539 = vperm.xlu0 %6082, %v1499_v11   ;;  %1343 = vmatpush1.bf16.msra.mxu0 %v6184_v9 }
  0x79   :  { %1521 = vperm.xlu1 %6083, %v1493_v60  }
  0x7d   :  { %1524 = vperm.xlu1 %6083, %v1494_v63  }
  0x81   :  { %1527 = vperm.xlu1 %6083, %v1495_v2  }
  0x85   :  { %1530 = vperm.xlu1 %6083, %v1496_v6  }
  0x89   :  { %1536 = vperm.xlu1 %6083, %v1498_v10  }
  0xc9   :  { %v186_v12 = vpop.xlane.xlu1 %185 }
  0xca   :  { %v146_v13 = vpop.xlane.xlu0 %145  ;;  %v231_v22 = vmul.f32 0.00390625, %v186_v12 }
  0xcb   :  { %v223_v23 = vmul.f32 0.00390625, %v146_v13 }
  0xcc   :  { %v247_v30 = vpack.c.bf16 %v231_v22, %v231_v22 }
  0xcd   :  { %v191_v14 = vpop.xlane.xlu1 %190  ;;  %v239_v33 = vpack.c.bf16 %v223_v23, %v223_v23 }
  0xce   :  { %v151_v15 = vpop.xlane.xlu0 %150  ;;  %v232_v20 = vmul.f32 0.00390625, %v191_v14  ;;  %v302_v45 = vunpack.c.l.b16 %v247_v30 }
  0xcf   :  { %v224_v21 = vmul.f32 0.00390625, %v151_v15  ;;  %v294_v46 = vunpack.c.l.b16 %v239_v33 }
  0xd0   :  { %v248_v28 = vpack.c.bf16 %v232_v20, %v232_v20  ;;  %v347_v1 = vrot.slane %v302_v45, %v7194_v43 }
  0xd1   :  { %v196_v17 = vpop.xlane.xlu1 %195  ;;  %v240_v29 = vpack.c.bf16 %v224_v21, %v224_v21  ;;  %v315_v2 = vrot.slane %v294_v46, %v7194_v43 }
  0xd2   :  { %v156_v18 = vpop.xlane.xlu0 %155  ;;  %v233_v35 = vmul.f32 0.00390625, %v196_v17  ;;  %v303_v44 = vunpack.c.l.b16 %v248_v28 }
  0xd3   :  { %v225_v36 = vmul.f32 0.00390625, %v156_v18  ;;  %v295_v16 = vunpack.c.l.b16 %v240_v29 }
  0xd4   :  { %v249_v47 = vpack.c.bf16 %v233_v35, %v233_v35  ;;  %v351_v57 = vrot.slane %v303_v44, %v7194_v43 }
  0xd5   :  { %v201_v24 = vpop.xlane.xlu1 %200  ;;  %v241_v48 = vpack.c.bf16 %v225_v36, %v225_v36  ;;  %v319_v58 = vrot.slane %v295_v16, %v7194_v43 }
  0xd6   :  { %v161_v25 = vpop.xlane.xlu0 %160  ;;  %v234_v39 = vmul.f32 0.00390625, %v201_v24  ;;  %v304_v61 = vunpack.c.l.b16 %v249_v47  ;;  %v390_v9 = vsel %vm376_vm3, %v351_v57, %v347_v1  ;;  %v6105_v57 = vld [vmem:[%s8346_s4 + $0xc] ss:$16 sps:$4 sm:$0xff]  }
  0xd7   :  { %v226_v40 = vmul.f32 0.00390625, %v161_v25  ;;  %v296_v62 = vunpack.c.l.b16 %v241_v48  ;;  %v377_v10 = vsel %vm376_vm3, %v319_v58, %v315_v2  ;;  %v6111_v58 = vld [vmem:[%s8346_s4 + $0x2c] ss:$16 sps:$4 sm:$0xff]   ;;  %v6139_v2 = vld [vmem:[%s8346_s4 + $0xc8] ss:$16 sps:$4 sm:$0xff]  }
  0xd8   :  { %v250_v51 = vpack.c.bf16 %v234_v39, %v234_v39  ;;  %v355_v13 = vrot.slane %v304_v61, %v7194_v43  ;;  %v6129_v61 = vld [vmem:[%s8346_s4 + $0x8c] ss:$16 sps:$4 sm:$0xff]  }
  0xd9   :  { %v206_v37 = vpop.xlane.xlu1 %205  ;;  %v242_v52 = vpack.c.bf16 %v226_v40, %v226_v40  ;;  %v323_v14 = vrot.slane %v296_v62, %v7194_v43  ;;  %v6127_v62 = vld [vmem:[%s8346_s4 + $0x88] ss:$16 sps:$4 sm:$0xff]   ;;  %v6141_v1 = vld [vmem:[%s8346_s4 + $0xcc] ss:$16 sps:$4 sm:$0xff]  }
  0xda   :  { %v166_v38 = vpop.xlane.xlu0 %165  ;;  %v235_v41 = vmul.f32 0.00390625, %v206_v37  ;;  %v305_v3 = vunpack.c.l.b16 %v250_v51 }
  0xdb   :  { %v227_v42 = vmul.f32 0.00390625, %v166_v38  ;;  %v297_v4 = vunpack.c.l.b16 %v242_v52  ;;  %v391_v38 = vsel %vm378_vm4, %v355_v13, %v390_v9  ;;  %v379_v39 = vsel %vm378_vm4, %v323_v14, %v377_v10  ;;  %v6165_v9 = vld [vmem:[%s8346_s4 + $0x14c] ss:$16 sps:$4 sm:$0xff]   ;;  %v6163_v10 = vld [vmem:[%s8346_s4 + $0x148] ss:$16 sps:$4 sm:$0xff]  }
  0xdc   :  { %v251_v55 = vpack.c.bf16 %v235_v41, %v235_v41  ;;  %v359_v21 = vrot.slane %v305_v3, %v7194_v43  ;;  %v6147_v3 = vld [vmem:[%s8346_s4 + $0xec] ss:$16 sps:$4 sm:$0xff]   ;;  %v6175_v14 = vld [vmem:[%s8346_s4 + $0x188] ss:$16 sps:$4 sm:$0xff]  }
  0xdd   :  { %v211_v49 = vpop.xlane.xlu1 %210  ;;  %v243_v56 = vpack.c.bf16 %v227_v42, %v227_v42  ;;  %v327_v22 = vrot.slane %v297_v4, %v7194_v43  ;;  %v6145_v4 = vld [vmem:[%s8346_s4 + $0xe8] ss:$16 sps:$4 sm:$0xff]   ;;  %v6177_v13 = vld [vmem:[%s8346_s4 + $0x18c] ss:$16 sps:$4 sm:$0xff]  }
  0xde   :  { %v171_v50 = vpop.xlane.xlu0 %170  ;;  %v236_v53 = vmul.f32 0.00390625, %v211_v49  ;;  %v306_v5 = vunpack.c.l.b16 %v251_v55  ;;  %v392_v42 = vsel %vm380_vm5, %v359_v21, %v391_v38  ;;  %v6187_v21 = vld [vmem:[%s8346_s4 + $0x1c8] ss:$16 sps:$4 sm:$0xff]   ;;  %v7355_v38 = vsub.s32 0, %v7049_v19 }
  0xdf   :  { %v228_v54 = vmul.f32 0.00390625, %v171_v50  ;;  %v298_v6 = vunpack.c.l.b16 %v243_v56  ;;  %v381_v44 = vsel %vm380_vm5, %v327_v22, %v379_v39  ;;  %v6190_v22 = vld [vmem:[%s8346_s4 + $0x1c0] ss:$16 sps:$4 sm:$0xff]  }
  0xe0   :  { %v252_v59 = vpack.c.bf16 %v236_v53, %v236_v53  ;;  %v363_v25 = vrot.slane %v306_v5, %v7194_v43  ;;  %v6153_v5 = vld [vmem:[%s8346_s4 + $0x10c] ss:$16 sps:$4 sm:$0xff]   ;;  %8360 = vst [vmem:[#allocation10_spill] sm:$0xff] %v7355_v38  ;;  %v256_v39 = vld [vmem:[%s8345_s3] sm:$0xf] }
  0xe1   :  { %v244_v60 = vpack.c.bf16 %v228_v54, %v228_v54  ;;  %v216_v63 = vpop.xlane.xlu1 %215  ;;  %v331_v28 = vrot.slane %v298_v6, %v7194_v43  ;;  %v6151_v6 = vld [vmem:[%s8346_s4 + $0x108] ss:$16 sps:$4 sm:$0xff]  }
  0xe2   :  { %v176_v0 = vpop.xlane.xlu0 %175  ;;  %v237_v7 = vmul.f32 0.00390625, %v216_v63  ;;  %v307_v11 = vunpack.c.l.b16 %v252_v59  ;;  %v393_v46 = vsel %vm382_vm6, %v363_v25, %v392_v42  ;;  %v6109_v59 = vld [vmem:[%s8346_s4 + $0x28] ss:$16 sps:$4 sm:$0xff]   ;;  %v6135_v63 = vld [vmem:[%s8346_s4 + $0xac] ss:$16 sps:$4 sm:$0xff]  }
  0xe3   :  { %v229_v8 = vmul.f32 0.00390625, %v176_v0  ;;  %v299_v12 = vunpack.c.l.b16 %v244_v60  ;;  %v383_v47 = vsel %vm382_vm6, %v331_v28, %v381_v44  ;;  %v6121_v60 = vld [vmem:[%s8346_s4 + $0x68] ss:$16 sps:$4 sm:$0xff]   ;;  %v6191_v25 = vld [vmem:[%s8346_s4 + $0x1e4] ss:$16 sps:$4 sm:$0xff]  }
  0xe4   :  { %v253_v15 = vpack.c.bf16 %v237_v7, %v237_v7  ;;  %v367_v33 = vrot.slane %v307_v11, %v7194_v43  ;;  %v6133_v0 = vld [vmem:[%s8346_s4 + $0xa8] ss:$16 sps:$4 sm:$0xff]   ;;  %v6159_v7 = vld [vmem:[%s8346_s4 + $0x12c] ss:$16 sps:$4 sm:$0xff]  }
  0xe5   :  { %v245_v17 = vpack.c.bf16 %v229_v8, %v229_v8  ;;  %v221_v18 = vpop.xlane.xlu1 %220  ;;  %v335_v35 = vrot.slane %v299_v12, %v7194_v43  ;;  %v6157_v8 = vld [vmem:[%s8346_s4 + $0x128] ss:$16 sps:$4 sm:$0xff]   ;;  %v6171_v11 = vld [vmem:[%s8346_s4 + $0x16c] ss:$16 sps:$4 sm:$0xff]  }
  0xe6   :  { %v181_v20 = vpop.xlane.xlu0 %180  ;;  %v238_v23 = vmul.f32 0.00390625, %v221_v18  ;;  %v308_v29 = vunpack.c.l.b16 %v253_v15  ;;  %v394_v48 = vsel %vm384_vm7, %v367_v33, %v393_v46  ;;  %v6169_v12 = vld [vmem:[%s8346_s4 + $0x168] ss:$16 sps:$4 sm:$0xff]   ;;  %v6183_v15 = vld [vmem:[%s8346_s4 + $0x1ac] ss:$16 sps:$4 sm:$0xff]   ;;  %v1502_v33 = vld [vmem:[%s8343_s1 + $0x70] sm:$0xff] }
  0xe7   :  { %v230_v24 = vmul.f32 0.00390625, %v181_v20  ;;  %v300_v30 = vunpack.c.l.b16 %v245_v17  ;;  %v385_v49 = vsel %vm384_vm7, %v335_v35, %v383_v47  ;;  %v6181_v17 = vld [vmem:[%s8346_s4 + $0x1a8] ss:$16 sps:$4 sm:$0xff]   ;;  %v6185_v18 = vld [vmem:[%s8346_s4 + $0x1c4] ss:$16 sps:$4 sm:$0xff]  }
  0xe8   :  { %v254_v36 = vpack.c.bf16 %v238_v23, %v238_v23  ;;  %v371_v40 = vrot.slane %v308_v29, %v7194_v43  ;;  %v6189_v20 = vld [vmem:[%s8346_s4 + $0x1cc] ss:$16 sps:$4 sm:$0xff]   ;;  %1344 = vmatprep.subr.bf16.mxu0 %v6185_v18  ;;  %v1500_v23 = vld [vmem:[%s8343_s1 + $0x60] sm:$0xff]  ;;  %v6193_v29 = vld [vmem:[%s8346_s4 + $0x1e8] ss:$16 sps:$4 sm:$0xff]  }
  0xe9   :  { %v246_v37 = vpack.c.bf16 %v230_v24, %v230_v24  ;;  %v339_v41 = vrot.slane %v300_v30, %v7194_v43  ;;  %v1501_v24 = vld [vmem:[%s8343_s1 + $0x68] sm:$0xff]  ;;  %1345 = vmatpush1.bf16.msra.mxu0 %v6190_v22  ;;  %1542 = vperm.xlu1 %6083, %v1500_v23   ;;  %v6196_v30 = vld [vmem:[%s8346_s4 + $0x1e0] ss:$16 sps:$4 sm:$0xff]   ;;  %v1503_v35 = vld [vmem:[%s8343_s1 + $0x78] sm:$0xff] }
  0xea   :  { %v309_v16 = vunpack.c.l.b16 %v254_v36  ;;  %v395_v52 = vsel %vm386_vm8, %v371_v40, %v394_v48  ;;  %1545 = vperm.xlu0 %6082, %v1501_v24   ;;  %v6195_v28 = vld [vmem:[%s8346_s4 + $0x1ec] ss:$16 sps:$4 sm:$0xff]   ;;  %1346 = vmatprep.subr.bf16.mxu0 %v6191_v25  ;;  %v6199_v36 = vld [vmem:[%s8346_s4 + $0x204] ss:$16 sps:$4 sm:$0xff]   ;;  %v7361_v40 = vsub.s32 1, %v7049_v19 }
  0xeb   :  { %v301_v45 = vunpack.c.l.b16 %v246_v37  ;;  %v387_v53 = vsel %vm386_vm8, %v339_v41, %v385_v49  ;;  %v6202_v37 = vld [vmem:[%s8346_s4 + $0x20c] ss:$16 sps:$4 sm:$0xff]   ;;  %v261_v41 = vrot.slane %v256_v39, %v7355_v38  ;;  %v8356_v49 = vsub.s32 2, %v7049_v19  ;;  %v6229_v18 = vld [vmem:[%s8346_s4 + $0x2a4] ss:$16 sps:$4 sm:$0xff]  }
  0xec   :  { %v375_v50 = vrot.slane %v309_v16, %v7194_v43  ;;  %8361 = vst [vmem:[#allocation11_spill] sm:$0xff] %v7361_v40  ;;  %v265_v44 = vrot.slane %v256_v39, %v7361_v40  ;;  %v6230_v22 = vld [vmem:[%s8346_s4 + $0x2a8] ss:$16 sps:$4 sm:$0xff]   ;;  %v6235_v23 = vld [vmem:[%s8346_s4 + $0x2c4] ss:$16 sps:$4 sm:$0xff]  }
  0xed   :  { %v343_v51 = vrot.slane %v301_v45, %v7194_v43  ;;  %v6103_v43 = vld [vmem:[%s8346_s4 + $0x8] ss:$16 sps:$4 sm:$0xff]   ;;  %1347 = vmatpush1.bf16.msra.mxu0 %v6196_v30  ;;  %1548 = vperm.xlu1 %6083, %v1502_v33   ;;  %v6238_v24 = vld [vmem:[%s8346_s4 + $0x2cc] ss:$16 sps:$4 sm:$0xff]   ;;  %v6233_v25 = vld [vmem:[%s8346_s4 + $0x2c0] ss:$16 sps:$4 sm:$0xff]  }
  0xee   :  { %v396_v54 = vsel %vm388_vm9, %v375_v50, %v395_v52  ;;  %1551 = vperm.xlu0 %6082, %v1503_v35   ;;  %1359 = vmatprep.subr.bf16.mxu0 %v6199_v36  ;;  %v8355_v52 = vsub.s32 3, %v7049_v19  ;;  %v6244_v30 = vld [vmem:[%s8346_s4 + $0x2ec] ss:$16 sps:$4 sm:$0xff]   ;;  %v6239_v33 = vld [vmem:[%s8346_s4 + $0x2e0] ss:$16 sps:$4 sm:$0xff]  }
  0xef   :  { %v389_v55 = vsel %vm388_vm9, %v343_v51, %v387_v53  ;;  %v6242_v35 = vld [vmem:[%s8346_s4 + $0x2e8] ss:$16 sps:$4 sm:$0xff]   ;;  %v6247_v36 = vld [vmem:[%s8346_s4 + $0x304] ss:$16 sps:$4 sm:$0xff]  }
  0xf0   :  { %v397_v56 = vpack.c.b16 %v396_v54, %v389_v55  ;;  %v6197_v55 = vld [vmem:[%s8346_s4 + $0x200] ss:$16 sps:$4 sm:$0xff]  }
  0xf2   :  { %5317 = vmatmul.mubr.msk.bf16.vlgmr.msra.gmra.mrb[0].mxu1 %vm416_vm10, %v397_v56 }
  0xf3   :  { %480 = vmatpush1.bf16.msra.mxu1 %v431_v34  ;;  %511 = vmatprep.mubr.bf16.mxu1 %v8353_v31  ;;  %v6123_v34 = vld [vmem:[%s8346_s4 + $0x6c] ss:$16 sps:$4 sm:$0xff]  }
  0xf4   :  { %1402 = vmatprep.subr.bf16.mxu1 %v6105_v57  ;;  %v269_v57 = vrot.slane %v256_v39, %v8356_v49 }
  0xfa   :  { %5318 = vmatmul.mubr.msk.bf16.vlgmr.msra.gmra.mrb[4].mxu1 %vm416_vm10, %v397_v56  ;;  %v6200_v56 = vld [vmem:[%s8346_s4 + $0x208] ss:$16 sps:$4 sm:$0xff]  }
  0xfb   :  { %1403 = vmatpush1.bf16.msra.mxu1 %v6103_v43  ;;  %v6205_v43 = vld [vmem:[%s8346_s4 + $0x224] ss:$16 sps:$4 sm:$0xff]  }
  0xfc   :  { %1404 = vmatprep.subr.bf16.mxu1 %v6111_v58  ;;  %v6208_v58 = vld [vmem:[%s8346_s4 + $0x22c] ss:$16 sps:$4 sm:$0xff]  }
  0xff   :  { %1405 = vmatpush1.bf16.msra.mxu1 %v6109_v59 }
 0x100   :  { %1406 = vmatprep.subr.bf16.mxu1 %v6117_v27  ;;  %v273_v27 = vrot.slane %v256_v39, %v8355_v52  ;;  %v6245_v39 = vld [vmem:[%s8346_s4 + $0x300] ss:$16 sps:$4 sm:$0xff]  }
 0x103   :  { %1407 = vmatpush1.bf16.msra.mxu1 %v6115_v32 }
 0x104   :  { %1408 = vmatprep.subr.bf16.mxu1 %v6123_v34 }
 0x107   :  { %1409 = vmatpush1.bf16.msra.mxu1 %v6121_v60  ;;  %v6203_v60 = vld [vmem:[%s8346_s4 + $0x220] ss:$16 sps:$4 sm:$0xff]  }
 0x108   :  { %1410 = vmatprep.subr.bf16.mxu1 %v6129_v61  ;;  %v6206_v61 = vld [vmem:[%s8346_s4 + $0x228] ss:$16 sps:$4 sm:$0xff]  }
 0x10b   :  { %1411 = vmatpush1.bf16.msra.mxu1 %v6127_v62 }
 0x10c   :  { %1412 = vmatprep.subr.bf16.mxu1 %v6135_v63 }
 0x10f   :  { %1413 = vmatpush1.bf16.msra.mxu1 %v6133_v0 }
 0x110   :  { %1414 = vmatprep.subr.bf16.mxu1 %v6141_v1  ;;  %v6211_v1 = vld [vmem:[%s8346_s4 + $0x244] ss:$16 sps:$4 sm:$0xff]  }
 0x113   :  { %1415 = vmatpush1.bf16.msra.mxu1 %v6139_v2  ;;  %v6214_v2 = vld [vmem:[%s8346_s4 + $0x24c] ss:$16 sps:$4 sm:$0xff]  }
 0x114   :  { %1416 = vmatprep.subr.bf16.mxu1 %v6147_v3 }
 0x117   :  { %1417 = vmatpush1.bf16.msra.mxu1 %v6145_v4 }
 0x118   :  { %1418 = vmatprep.subr.bf16.mxu1 %v6153_v5 }
 0x11b   :  { %1419 = vmatpush1.bf16.msra.mxu1 %v6151_v6 }
 0x11c   :  { %1420 = vmatprep.subr.bf16.mxu1 %v6159_v7  ;;  %v6209_v7 = vld [vmem:[%s8346_s4 + $0x240] ss:$16 sps:$4 sm:$0xff]  }
 0x11f   :  { %1421 = vmatpush1.bf16.msra.mxu1 %v6157_v8  ;;  %v6212_v8 = vld [vmem:[%s8346_s4 + $0x248] ss:$16 sps:$4 sm:$0xff]  }
 0x120   :  { %1422 = vmatprep.subr.bf16.mxu1 %v6165_v9  ;;  %v6217_v9 = vld [vmem:[%s8346_s4 + $0x264] ss:$16 sps:$4 sm:$0xff]  }
 0x123   :  { %1423 = vmatpush1.bf16.msra.mxu1 %v6163_v10  ;;  %v6220_v10 = vld [vmem:[%s8346_s4 + $0x26c] ss:$16 sps:$4 sm:$0xff]  }
 0x124   :  { %1424 = vmatprep.subr.bf16.mxu1 %v6171_v11  ;;  %v6215_v11 = vld [vmem:[%s8346_s4 + $0x260] ss:$16 sps:$4 sm:$0xff]  }
 0x127   :  { %1425 = vmatpush1.bf16.msra.mxu1 %v6169_v12  ;;  %v6218_v12 = vld [vmem:[%s8346_s4 + $0x268] ss:$16 sps:$4 sm:$0xff]  }
 0x128   :  { %1426 = vmatprep.subr.bf16.mxu1 %v6177_v13  ;;  %v6223_v13 = vld [vmem:[%s8346_s4 + $0x284] ss:$16 sps:$4 sm:$0xff]  }
 0x12b   :  { %1427 = vmatpush1.bf16.msra.mxu1 %v6175_v14  ;;  %v6226_v14 = vld [vmem:[%s8346_s4 + $0x28c] ss:$16 sps:$4 sm:$0xff]  }
 0x12c   :  { %1428 = vmatprep.subr.bf16.mxu1 %v6183_v15  ;;  %v6221_v15 = vld [vmem:[%s8346_s4 + $0x280] ss:$16 sps:$4 sm:$0xff]  }
 0x12f   :  { %1429 = vmatpush1.bf16.msra.mxu1 %v6181_v17  ;;  %v6224_v17 = vld [vmem:[%s8346_s4 + $0x288] ss:$16 sps:$4 sm:$0xff]  }
 0x130   :  { %1430 = vmatprep.subr.bf16.mxu1 %v6189_v20  ;;  %v6232_v20 = vld [vmem:[%s8346_s4 + $0x2ac] ss:$16 sps:$4 sm:$0xff]  }
 0x133   :  { %1431 = vmatpush1.bf16.msra.mxu1 %v6187_v21  ;;  %v6227_v21 = vld [vmem:[%s8346_s4 + $0x2a0] ss:$16 sps:$4 sm:$0xff]  }
 0x134   :  { %1432 = vmatprep.subr.bf16.mxu1 %v6195_v28  ;;  %v6236_v28 = vld [vmem:[%s8346_s4 + $0x2c8] ss:$16 sps:$4 sm:$0xff]  }
 0x137   :  { %1433 = vmatpush1.bf16.msra.mxu1 %v6193_v29  ;;  %v6241_v29 = vld [vmem:[%s8346_s4 + $0x2e4] ss:$16 sps:$4 sm:$0xff]  }
 0x138   :  { %1445 = vmatprep.subr.bf16.mxu1 %v6202_v37  ;;  %v6250_v37 = vld [vmem:[%s8346_s4 + $0x30c] ss:$16 sps:$4 sm:$0xff]  }
 0x1c5   :  { %v470_v42 = vpop.f32.mrb[0].mxu1 }
 0x1c6   :  { %v472_v16 = vpop.f32.mrb[1].mxu1  ;;  %v471_v46 = vadd.f32 %v470_v42, %v261_v41  ;;  %v6253_v42 = vld [vmem:[%s8346_s4 + $0x324] ss:$16 sps:$4 sm:$0xff]  }
 0x1c7   :  { %v474_v45 = vpop.f32.mrb[2].mxu1  ;;  %v473_v50 = vadd.f32 %v472_v16, %v265_v44  ;;  %v6251_v16 = vld [vmem:[%s8346_s4 + $0x320] ss:$16 sps:$4 sm:$0xff]  }
 0x1c8   :  { %v475_v47 = vadd.f32 %v474_v45, %v261_v41  ;;  %v476_v48 = vpop.f32.mrb[3].mxu1  ;;  %v6248_v41 = vld [vmem:[%s8346_s4 + $0x308] ss:$16 sps:$4 sm:$0xff]  }
 0x1c9   :  { %v477_v51 = vadd.f32 %v476_v48, %v265_v44  ;;  %v6256_v44 = vld [vmem:[%s8346_s4 + $0x32c] ss:$16 sps:$4 sm:$0xff]   ;;  %v6254_v45 = vld [vmem:[%s8346_s4 + $0x328] ss:$16 sps:$4 sm:$0xff]   ;;  %v6257_v48 = vld [vmem:[%s8346_s4 + $0x340] ss:$16 sps:$4 sm:$0xff]  }
 0x1ca   :  { %v522_v53 = vpack.c.bf16 %v475_v47, %v471_v46  ;;  %v6259_v46 = vld [vmem:[%s8346_s4 + $0x344] ss:$16 sps:$4 sm:$0xff]   ;;  %v6262_v47 = vld [vmem:[%s8346_s4 + $0x34c] ss:$16 sps:$4 sm:$0xff]  }
 0x1cb   :  { %v523_v54 = vpack.c.bf16 %v477_v51, %v473_v50  ;;  %v6260_v50 = vld [vmem:[%s8346_s4 + $0x348] ss:$16 sps:$4 sm:$0xff]   ;;  %v6265_v51 = vld [vmem:[%s8346_s4 + $0x364] ss:$16 sps:$4 sm:$0xff]  }
 0x1cd   :  { %v513_v59 = vpop.f32.mrb[4].mxu1  ;;  %1348 = vmatprep.mubr.bf16.mxu0 %v523_v54  ;;  %1434 = vmatprep.mubr.bf16.mxu1 %v523_v54  ;;  %v6263_v54 = vld [vmem:[%s8346_s4 + $0x360] ss:$16 sps:$4 sm:$0xff]  }
 0x1ce   :  { %v515_v32 = vpop.f32.mrb[5].mxu1  ;;  %1349 = vmatmul.mubr.bf16.vlgmr.msra.gmra.mrb[0].mxu0 %v522_v53  ;;  %1435 = vmatmul.mubr.bf16.vlgmr.msra.gmra.mrb[8].mxu1 %v522_v53  ;;  %v514_v62 = vadd.f32 %v513_v59, %v269_v57  ;;  %v6268_v53 = vld [vmem:[%s8346_s4 + $0x36c] ss:$16 sps:$4 sm:$0xff]   ;;  %v6277_v59 = vld [vmem:[%s8346_s4 + $0x3a4] ss:$16 sps:$4 sm:$0xff]  }
 0x1cf   :  { %1360 = vmatpush1.bf16.msra.mxu0 %v6197_v55  ;;  %1446 = vmatpush1.bf16.msra.mxu1 %v6200_v56  ;;  %v517_v34 = vpop.f32.mrb[6].mxu1  ;;  %v516_v3 = vadd.f32 %v515_v32, %v273_v27  ;;  %v6266_v55 = vld [vmem:[%s8346_s4 + $0x368] ss:$16 sps:$4 sm:$0xff]   ;;  %v6271_v56 = vld [vmem:[%s8346_s4 + $0x384] ss:$16 sps:$4 sm:$0xff]  }
 0x1d0   :  { %v518_v63 = vadd.f32 %v517_v34, %v269_v57  ;;  %v519_v0 = vpop.f32.mrb[7].mxu1  ;;  %1361 = vmatprep.subr.bf16.mxu0 %v6205_v43  ;;  %1447 = vmatprep.subr.bf16.mxu1 %v6208_v58  ;;  %v6274_v57 = vld [vmem:[%s8346_s4 + $0x38c] ss:$16 sps:$4 sm:$0xff]   ;;  %v6269_v43 = vld [vmem:[%s8346_s4 + $0x380] ss:$16 sps:$4 sm:$0xff]  }
 0x1d1   :  { %v520_v4 = vadd.f32 %v519_v0, %v273_v27  ;;  %v6272_v58 = vld [vmem:[%s8346_s4 + $0x388] ss:$16 sps:$4 sm:$0xff]   ;;  %v6280_v27 = vld [vmem:[%s8346_s4 + $0x3ac] ss:$16 sps:$4 sm:$0xff]   ;;  %v6275_v32 = vld [vmem:[%s8346_s4 + $0x3a0] ss:$16 sps:$4 sm:$0xff]  }
 0x1d2   :  { %v7395_v5 = vpack.c.bf16 %v518_v63, %v514_v62  ;;  %v6278_v34 = vld [vmem:[%s8346_s4 + $0x3a8] ss:$16 sps:$4 sm:$0xff]   ;;  %v6281_v62 = vld [vmem:[%s8346_s4 + $0x3c0] ss:$16 sps:$4 sm:$0xff]   ;;  %v6289_v0 = vld [vmem:[%s8346_s4 + $0x3e4] ss:$16 sps:$4 sm:$0xff]  }
 0x1d3   :  { %v525_v6 = vpack.c.bf16 %v520_v4, %v516_v3  ;;  %1362 = vmatpush1.bf16.msra.mxu0 %v6203_v60  ;;  %1448 = vmatpush1.bf16.msra.mxu1 %v6206_v61  ;;  %v6283_v60 = vld [vmem:[%s8346_s4 + $0x3c4] ss:$16 sps:$4 sm:$0xff]   ;;  %v6286_v61 = vld [vmem:[%s8346_s4 + $0x3cc] ss:$16 sps:$4 sm:$0xff]   ;;  %v6284_v63 = vld [vmem:[%s8346_s4 + $0x3c8] ss:$16 sps:$4 sm:$0xff]  }
 0x1d4   :  { %1363 = vmatprep.subr.bf16.mxu0 %v6211_v1  ;;  %1449 = vmatprep.subr.bf16.mxu1 %v6214_v2  ;;  %v6292_v1 = vld [vmem:[%s8346_s4 + $0x3ec] ss:$16 sps:$4 sm:$0xff]   ;;  %v6287_v2 = vld [vmem:[%s8346_s4 + $0x3e0] ss:$16 sps:$4 sm:$0xff]   ;;  %v6290_v3 = vld [vmem:[%s8346_s4 + $0x3e8] ss:$16 sps:$4 sm:$0xff]  }
 0x1d5   :  { %1391 = vmatprep.mubr.bf16.mxu0 %v525_v6  ;;  %1477 = vmatprep.mubr.bf16.mxu1 %v525_v6  ;;  %v7560_v4 = vadd.s32 128, %v7190_v26  ;;  %v6295_v6 = vld [vmem:[#allocation3 + $0x4] ss:$16 sps:$4 sm:$0xff]  }
 0x1d7   :  { %1364 = vmatpush1.bf16.msra.mxu0 %v6209_v7  ;;  %1450 = vmatpush1.bf16.msra.mxu1 %v6212_v8  ;;  %v6298_v7 = vld [vmem:[#allocation3 + $0xc] ss:$16 sps:$4 sm:$0xff]   ;;  %v7562_v8 = vpop.permute.xlu1 %1509 }
 0x1d8   :  { %1365 = vmatprep.subr.bf16.mxu0 %v6217_v9  ;;  %1451 = vmatprep.subr.bf16.mxu1 %v6220_v10  ;;  %v7564_v9 = vpop.permute.xlu0 %1506  ;;  %v6293_v10 = vld [vmem:[#allocation3] ss:$16 sps:$4 sm:$0xff]   ;;  %vm1556_vm11 = vcmp.eq.s32.totalorder %v7562_v8, %v7560_v4  ;;  %vm1555_vm14 = vcmp.eq.s32.totalorder %v7562_v8, %v7190_v26  ;;  %v7586_v8 = vld [vmem:[#allocation5 + $0x24] ss:$16 sps:$4 sm:$0xff]  }
 0x1d9   :  { %vm1554_vm12 = vcmp.eq.s32.totalorder %v7564_v9, %v7560_v4  ;;  %vm1553_vm15 = vcmp.eq.s32.totalorder %v7564_v9, %v7190_v26 }
 0x1da   :  { %vm5543_vm13 = vmpackc.low %vm1556_vm11, %vm1554_vm12 }
 0x1db   :  { %1366 = vmatpush1.bf16.msra.mxu0 %v6215_v11  ;;  %1452 = vmatpush1.bf16.msra.mxu1 %v6218_v12  ;;  %v6296_v11 = vld [vmem:[#allocation3 + $0x8] ss:$16 sps:$4 sm:$0xff]   ;;  %v6301_v12 = vld [vmem:[#allocation3 + $0x24] ss:$16 sps:$4 sm:$0xff]   ;;  %vm5545_vm2 = vmpackc.low %vm1555_vm14, %vm1553_vm15 }
 0x1dc   :  { %1367 = vmatprep.subr.bf16.mxu0 %v6223_v13  ;;  %1453 = vmatprep.subr.bf16.mxu1 %v6226_v14  ;;  %v6304_v13 = vld [vmem:[#allocation3 + $0x2c] ss:$16 sps:$4 sm:$0xff]   ;;  %v6299_v14 = vld [vmem:[#allocation3 + $0x20] ss:$16 sps:$4 sm:$0xff]  }
 0x1df   :  { %1368 = vmatpush1.bf16.msra.mxu0 %v6221_v15  ;;  %1454 = vmatpush1.bf16.msra.mxu1 %v6224_v17  ;;  %v6302_v15 = vld [vmem:[#allocation3 + $0x28] ss:$16 sps:$4 sm:$0xff]   ;;  %v6307_v17 = vld [vmem:[#allocation3 + $0x44] ss:$16 sps:$4 sm:$0xff]  }
 0x1e0   :  { %1369 = vmatprep.subr.bf16.mxu0 %v6229_v18  ;;  %1455 = vmatprep.subr.bf16.mxu1 %v6232_v20  ;;  %v6310_v18 = vld [vmem:[#allocation3 + $0x4c] ss:$16 sps:$4 sm:$0xff]   ;;  %v6869_v20 = vmov 1.0|1.0  }
 0x1e3   :  { %1370 = vmatpush1.bf16.msra.mxu0 %v6227_v21  ;;  %1456 = vmatpush1.bf16.msra.mxu1 %v6230_v22  ;;  %v6305_v21 = vld [vmem:[#allocation3 + $0x40] ss:$16 sps:$4 sm:$0xff]   ;;  %v6308_v22 = vld [vmem:[#allocation3 + $0x48] ss:$16 sps:$4 sm:$0xff]  }
 0x1e4   :  { %1371 = vmatprep.subr.bf16.mxu0 %v6235_v23  ;;  %1457 = vmatprep.subr.bf16.mxu1 %v6238_v24  ;;  %v6316_v23 = vld [vmem:[#allocation3 + $0x6c] ss:$16 sps:$4 sm:$0xff]   ;;  %v6311_v24 = vld [vmem:[#allocation3 + $0x60] ss:$16 sps:$4 sm:$0xff]  }
 0x1e7   :  { %1372 = vmatpush1.bf16.msra.mxu0 %v6233_v25  ;;  %1458 = vmatpush1.bf16.msra.mxu1 %v6236_v28  ;;  %v6314_v25 = vld [vmem:[#allocation3 + $0x68] ss:$16 sps:$4 sm:$0xff]   ;;  %v6319_v28 = vld [vmem:[#allocation3 + $0x84] ss:$16 sps:$4 sm:$0xff]  }
 0x1e8   :  { %1373 = vmatprep.subr.bf16.mxu0 %v6241_v29  ;;  %1459 = vmatprep.subr.bf16.mxu1 %v6244_v30  ;;  %v6322_v29 = vld [vmem:[#allocation3 + $0x8c] ss:$16 sps:$4 sm:$0xff]   ;;  %v6317_v30 = vld [vmem:[#allocation3 + $0x80] ss:$16 sps:$4 sm:$0xff]  }
 0x1eb   :  { %1374 = vmatpush1.bf16.msra.mxu0 %v6239_v33  ;;  %1460 = vmatpush1.bf16.msra.mxu1 %v6242_v35  ;;  %v6320_v33 = vld [vmem:[#allocation3 + $0x88] ss:$16 sps:$4 sm:$0xff]   ;;  %v6325_v35 = vld [vmem:[#allocation3 + $0xa4] ss:$16 sps:$4 sm:$0xff]  }
 0x1ec   :  { %1375 = vmatprep.subr.bf16.mxu0 %v6247_v36  ;;  %1461 = vmatprep.subr.bf16.mxu1 %v6250_v37  ;;  %v6328_v36 = vld [vmem:[#allocation3 + $0xac] ss:$16 sps:$4 sm:$0xff]   ;;  %v6323_v37 = vld [vmem:[#allocation3 + $0xa0] ss:$16 sps:$4 sm:$0xff]  }
 0x1ef   :  { %1376 = vmatpush1.bf16.msra.mxu0 %v6245_v39  ;;  %1462 = vmatpush1.bf16.msra.mxu1 %v6248_v41  ;;  %v6326_v39 = vld [vmem:[#allocation3 + $0xa8] ss:$16 sps:$4 sm:$0xff]   ;;  %v6331_v41 = vld [vmem:[#allocation3 + $0xc4] ss:$16 sps:$4 sm:$0xff]  }
 0x1f0   :  { %1377 = vmatprep.subr.bf16.mxu0 %v6253_v42  ;;  %1463 = vmatprep.subr.bf16.mxu1 %v6256_v44  ;;  %v6334_v42 = vld [vmem:[#allocation3 + $0xcc] ss:$16 sps:$4 sm:$0xff]   ;;  %v6329_v44 = vld [vmem:[#allocation3 + $0xc0] ss:$16 sps:$4 sm:$0xff]  }
 0x1f3   :  { %1378 = vmatpush1.bf16.msra.mxu0 %v6251_v16  ;;  %1464 = vmatpush1.bf16.msra.mxu1 %v6254_v45  ;;  %v6332_v16 = vld [vmem:[#allocation3 + $0xc8] ss:$16 sps:$4 sm:$0xff]   ;;  %v6337_v45 = vld [vmem:[#allocation3 + $0xe4] ss:$16 sps:$4 sm:$0xff]  }
 0x1f4   :  { %1379 = vmatprep.subr.bf16.mxu0 %v6259_v46  ;;  %1465 = vmatprep.subr.bf16.mxu1 %v6262_v47  ;;  %v6340_v46 = vld [vmem:[#allocation3 + $0xec] ss:$16 sps:$4 sm:$0xff]   ;;  %v6335_v47 = vld [vmem:[#allocation3 + $0xe0] ss:$16 sps:$4 sm:$0xff]  }
 0x1f7   :  { %1380 = vmatpush1.bf16.msra.mxu0 %v6257_v48  ;;  %1466 = vmatpush1.bf16.msra.mxu1 %v6260_v50  ;;  %v6338_v48 = vld [vmem:[#allocation3 + $0xe8] ss:$16 sps:$4 sm:$0xff]   ;;  %v6343_v50 = vld [vmem:[#allocation3 + $0x104] ss:$16 sps:$4 sm:$0xff]  }
 0x1f8   :  { %1381 = vmatprep.subr.bf16.mxu0 %v6265_v51  ;;  %1467 = vmatprep.subr.bf16.mxu1 %v6268_v53  ;;  %v6346_v51 = vld [vmem:[#allocation3 + $0x10c] ss:$16 sps:$4 sm:$0xff]   ;;  %v6341_v53 = vld [vmem:[#allocation3 + $0x100] ss:$16 sps:$4 sm:$0xff]  }
 0x1fb   :  { %1382 = vmatpush1.bf16.msra.mxu0 %v6263_v54  ;;  %1468 = vmatpush1.bf16.msra.mxu1 %v6266_v55  ;;  %v6344_v54 = vld [vmem:[#allocation3 + $0x108] ss:$16 sps:$4 sm:$0xff]   ;;  %v6349_v55 = vld [vmem:[#allocation3 + $0x124] ss:$16 sps:$4 sm:$0xff]  }
 0x1fc   :  { %1383 = vmatprep.subr.bf16.mxu0 %v6271_v56  ;;  %1469 = vmatprep.subr.bf16.mxu1 %v6274_v57  ;;  %v6352_v56 = vld [vmem:[#allocation3 + $0x12c] ss:$16 sps:$4 sm:$0xff]   ;;  %v6347_v57 = vld [vmem:[#allocation3 + $0x120] ss:$16 sps:$4 sm:$0xff]  }
 0x1ff   :  { %1384 = vmatpush1.bf16.msra.mxu0 %v6269_v43  ;;  %1470 = vmatpush1.bf16.msra.mxu1 %v6272_v58  ;;  %v6350_v43 = vld [vmem:[#allocation3 + $0x128] ss:$16 sps:$4 sm:$0xff]   ;;  %v6355_v58 = vld [vmem:[#allocation3 + $0x144] ss:$16 sps:$4 sm:$0xff]  }
 0x200   :  { %1385 = vmatprep.subr.bf16.mxu0 %v6277_v59  ;;  %1471 = vmatprep.subr.bf16.mxu1 %v6280_v27  ;;  %v6358_v59 = vld [vmem:[#allocation3 + $0x14c] ss:$16 sps:$4 sm:$0xff]   ;;  %v6353_v27 = vld [vmem:[#allocation3 + $0x140] ss:$16 sps:$4 sm:$0xff]  }
 0x203   :  { %1386 = vmatpush1.bf16.msra.mxu0 %v6275_v32  ;;  %1472 = vmatpush1.bf16.msra.mxu1 %v6278_v34  ;;  %v6356_v32 = vld [vmem:[#allocation3 + $0x148] ss:$16 sps:$4 sm:$0xff]   ;;  %v6361_v34 = vld [vmem:[#allocation3 + $0x164] ss:$16 sps:$4 sm:$0xff]  }
 0x204   :  { %1387 = vmatprep.subr.bf16.mxu0 %v6283_v60  ;;  %1473 = vmatprep.subr.bf16.mxu1 %v6286_v61  ;;  %v6364_v60 = vld [vmem:[#allocation3 + $0x16c] ss:$16 sps:$4 sm:$0xff]   ;;  %v6359_v61 = vld [vmem:[#allocation3 + $0x160] ss:$16 sps:$4 sm:$0xff]  }
 0x207   :  { %1388 = vmatpush1.bf16.msra.mxu0 %v6281_v62  ;;  %1474 = vmatpush1.bf16.msra.mxu1 %v6284_v63  ;;  %v6362_v62 = vld [vmem:[#allocation3 + $0x168] ss:$16 sps:$4 sm:$0xff]   ;;  %v6367_v63 = vld [vmem:[#allocation3 + $0x184] ss:$16 sps:$4 sm:$0xff]  }
 0x208   :  { %1389 = vmatprep.subr.bf16.mxu0 %v6289_v0  ;;  %1475 = vmatprep.subr.bf16.mxu1 %v6292_v1  ;;  %v6370_v0 = vld [vmem:[#allocation3 + $0x18c] ss:$16 sps:$4 sm:$0xff]   ;;  %v6365_v1 = vld [vmem:[#allocation3 + $0x180] ss:$16 sps:$4 sm:$0xff]  }
 0x20b   :  { %1390 = vmatpush1.bf16.msra.mxu0 %v6287_v2  ;;  %1476 = vmatpush1.bf16.msra.mxu1 %v6290_v3  ;;  %v6368_v2 = vld [vmem:[#allocation3 + $0x188] ss:$16 sps:$4 sm:$0xff]   ;;  %v1513_v3 = vpop.permute.xlu1 %1512 }
 0x20c   :  { %2049 = vmatprep.subr.bf16.mxu0 %v6295_v6  ;;  %2162 = vmatprep.subr.bf16.mxu1 %v6298_v7  ;;  %v6373_v6 = vld [vmem:[#allocation3 + $0x1a4] ss:$16 sps:$4 sm:$0xff]   ;;  %v6376_v7 = vld [vmem:[#allocation3 + $0x1ac] ss:$16 sps:$4 sm:$0xff]   ;;  %vm1558_vm0 = vcmp.eq.s32.totalorder %v1513_v3, %v7560_v4  ;;  %vm1557_vm4 = vcmp.eq.s32.totalorder %v1513_v3, %v7190_v26 }
 0x20e   :  { %1392 = vmatmul.mubr.bf16.vlgmr.msra.gmra.mrb[0].mxu0 %v7395_v5  ;;  %1478 = vmatmul.mubr.bf16.vlgmr.msra.gmra.mrb[8].mxu1 %v7395_v5  ;;  %v6313_v5 = vld [vmem:[#allocation3 + $0x64] ss:$16 sps:$4 sm:$0xff]  }
 0x20f   :  { %2050 = vmatpush1.bf16.msra.mxu0 %v6293_v10  ;;  %2163 = vmatpush1.bf16.msra.mxu1 %v6296_v11  ;;  %v6371_v10 = vld [vmem:[#allocation3 + $0x1a0] ss:$16 sps:$4 sm:$0xff]   ;;  %v6374_v11 = vld [vmem:[#allocation3 + $0x1a8] ss:$16 sps:$4 sm:$0xff]  }
 0x210   :  { %2051 = vmatprep.subr.bf16.mxu0 %v6301_v12  ;;  %2164 = vmatprep.subr.bf16.mxu1 %v6304_v13  ;;  %v6379_v12 = vld [vmem:[#allocation3 + $0x1c4] ss:$16 sps:$4 sm:$0xff]   ;;  %v6382_v13 = vld [vmem:[#allocation3 + $0x1cc] ss:$16 sps:$4 sm:$0xff]  }
 0x211   :  { %5544 = vmatprep.mubr.msk.bf16.mxu0 %vm5543_vm13, %v6869_v20  ;;  %5576 = vmatprep.mubr.msk.bf16.mxu1 %vm5543_vm13, %v6869_v20 }
 0x213   :  { %2052 = vmatpush1.bf16.msra.mxu0 %v6299_v14  ;;  %2165 = vmatpush1.bf16.msra.mxu1 %v6302_v15  ;;  %v1516_v14 = vpop.permute.xlu1 %1515  ;;  %v6377_v15 = vld [vmem:[#allocation3 + $0x1c0] ss:$16 sps:$4 sm:$0xff]  }
 0x214   :  { %2053 = vmatprep.subr.bf16.mxu0 %v6307_v17  ;;  %2166 = vmatprep.subr.bf16.mxu1 %v6310_v18  ;;  %v6380_v17 = vld [vmem:[#allocation3 + $0x1c8] ss:$16 sps:$4 sm:$0xff]   ;;  %v6385_v18 = vld [vmem:[#allocation3 + $0x1e4] ss:$16 sps:$4 sm:$0xff]   ;;  %vm1560_vm1 = vcmp.eq.s32.totalorder %v1516_v14, %v7560_v4  ;;  %vm1559_vm5 = vcmp.eq.s32.totalorder %v1516_v14, %v7190_v26 }
 0x215   :  { %vm5547_vm3 = vmpackc.low %vm1560_vm1, %vm1558_vm0 }
 0x216   :  { %vm5549_vm8 = vmpackc.low %vm1559_vm5, %vm1557_vm4 }
 0x217   :  { %2054 = vmatpush1.bf16.msra.mxu0 %v6305_v21  ;;  %2167 = vmatpush1.bf16.msra.mxu1 %v6308_v22  ;;  %v6388_v21 = vld [vmem:[#allocation3 + $0x1ec] ss:$16 sps:$4 sm:$0xff]   ;;  %v6383_v22 = vld [vmem:[#allocation3 + $0x1e0] ss:$16 sps:$4 sm:$0xff]  }
 0x218   :  { %2055 = vmatprep.subr.bf16.mxu0 %v6313_v5  ;;  %2168 = vmatprep.subr.bf16.mxu1 %v6316_v23  ;;  %v6386_v5 = vld [vmem:[#allocation3 + $0x1e8] ss:$16 sps:$4 sm:$0xff]   ;;  %v1519_v23 = vpop.permute.xlu1 %1518 }
 0x219   :  { %vm1562_vm6 = vcmp.eq.s32.totalorder %v1519_v23, %v7560_v4  ;;  %vm1561_vm10 = vcmp.eq.s32.totalorder %v1519_v23, %v7190_v26 }
 0x21b   :  { %2056 = vmatpush1.bf16.msra.mxu0 %v6311_v24  ;;  %2169 = vmatpush1.bf16.msra.mxu1 %v6314_v25  ;;  %v7578_v24 = vld [vmem:[#allocation5 + $0x4] ss:$16 sps:$4 sm:$0xff]   ;;  %v7582_v25 = vld [vmem:[#allocation5] ss:$16 sps:$4 sm:$0xff]  }
 0x21c   :  { %2057 = vmatprep.subr.bf16.mxu0 %v6319_v28  ;;  %2170 = vmatprep.subr.bf16.mxu1 %v6322_v29  ;;  %v1522_v9 = vpop.permute.xlu1 %1521  ;;  %v7593_v28 = vld [vmem:[#allocation5 + $0x20] ss:$16 sps:$4 sm:$0xff]   ;;  %v7597_v29 = vld [vmem:[#allocation5 + $0x44] ss:$16 sps:$4 sm:$0xff]  }
 0x21d   :  { %vm1564_vm7 = vcmp.eq.s32.totalorder %v1522_v9, %v7560_v4  ;;  %vm1563_vm11 = vcmp.eq.s32.totalorder %v1522_v9, %v7190_v26 }
 0x21e   :  { %vm5551_vm9 = vmpackc.low %vm1564_vm7, %vm1562_vm6 }
 0x21f   :  { %2058 = vmatpush1.bf16.msra.mxu0 %v6317_v30  ;;  %2171 = vmatpush1.bf16.msra.mxu1 %v6320_v33  ;;  %v7605_v33 = vld [vmem:[#allocation5 + $0x40] ss:$16 sps:$4 sm:$0xff]   ;;  %vm5553_vm14 = vmpackc.low %vm1563_vm11, %vm1561_vm10 }
 0x220   :  { %2059 = vmatprep.subr.bf16.mxu0 %v6325_v35  ;;  %2172 = vmatprep.subr.bf16.mxu1 %v6328_v36  ;;  %v1525_v30 = vpop.permute.xlu1 %1524  ;;  %v7609_v35 = vld [vmem:[#allocation5 + $0x64] ss:$16 sps:$4 sm:$0xff]   ;;  %v7617_v36 = vld [vmem:[#allocation5 + $0x60] ss:$16 sps:$4 sm:$0xff]  }
 0x221   :  { %vm1566_vm12 = vcmp.eq.s32.totalorder %v1525_v30, %v7560_v4  ;;  %vm1565_vm0 = vcmp.eq.s32.totalorder %v1525_v30, %v7190_v26 }
 0x223   :  { %2060 = vmatpush1.bf16.msra.mxu0 %v6323_v37  ;;  %2173 = vmatpush1.bf16.msra.mxu1 %v6326_v39  ;;  %v7621_v37 = vld [vmem:[#allocation5 + $0x84] ss:$16 sps:$4 sm:$0xff]  }
 0x224   :  { %2061 = vmatprep.subr.bf16.mxu0 %v6331_v41  ;;  %2174 = vmatprep.subr.bf16.mxu1 %v6334_v42  ;;  %v1528_v39 = vpop.permute.xlu1 %1527  ;;  %v7629_v41 = vld [vmem:[#allocation5 + $0x80] ss:$16 sps:$4 sm:$0xff]   ;;  %v7633_v42 = vld [vmem:[#allocation5 + $0xa4] ss:$16 sps:$4 sm:$0xff]  }
 0x225   :  { %vm1568_vm13 = vcmp.eq.s32.totalorder %v1528_v39, %v7560_v4  ;;  %vm1567_vm1 = vcmp.eq.s32.totalorder %v1528_v39, %v7190_v26 }
 0x226   :  { %vm5555_vm15 = vmpackc.low %vm1568_vm13, %vm1566_vm12 }
 0x227   :  { %2062 = vmatpush1.bf16.msra.mxu0 %v6329_v44  ;;  %2175 = vmatpush1.bf16.msra.mxu1 %v6332_v16  ;;  %v7641_v44 = vld [vmem:[#allocation5 + $0xa0] ss:$16 sps:$4 sm:$0xff]   ;;  %v7645_v16 = vld [vmem:[#allocation5 + $0xc4] ss:$16 sps:$4 sm:$0xff]   ;;  %vm5557_vm4 = vmpackc.low %vm1567_vm1, %vm1565_vm0 }
 0x228   :  { %2063 = vmatprep.subr.bf16.mxu0 %v6337_v45  ;;  %2176 = vmatprep.subr.bf16.mxu1 %v6340_v46  ;;  %v1531_v45 = vpop.permute.xlu1 %1530  ;;  %v1534_v46 = vpop.permute.xlu0 %1533 }
 0x229   :  { %vm1569_vm6 = vcmp.eq.s32.totalorder %v1531_v45, %v7190_v26  ;;  %vm1571_vm7 = vcmp.eq.s32.totalorder %v1534_v46, %v7190_v26 }
 0x22a   :  { %vm5561_vm10 = vmpackc.low %vm1571_vm7, %vm1569_vm6 }
 0x22b   :  { %2064 = vmatpush1.bf16.msra.mxu0 %v6335_v47  ;;  %2177 = vmatpush1.bf16.msra.mxu1 %v6338_v48  ;;  %v7653_v47 = vld [vmem:[#allocation5 + $0xc0] ss:$16 sps:$4 sm:$0xff]   ;;  %v7657_v48 = vld [vmem:[#allocation5 + $0xe4] ss:$16 sps:$4 sm:$0xff]  }
 0x22c   :  { %2065 = vmatprep.subr.bf16.mxu0 %v6343_v50  ;;  %2178 = vmatprep.subr.bf16.mxu1 %v6346_v51  ;;  %v7665_v50 = vld [vmem:[#allocation5 + $0xe0] ss:$16 sps:$4 sm:$0xff]   ;;  %v7669_v51 = vld [vmem:[#allocation5 + $0xc] ss:$16 sps:$4 sm:$0xff]  }
 0x22f   :  { %2066 = vmatpush1.bf16.msra.mxu0 %v6341_v53  ;;  %2179 = vmatpush1.bf16.msra.mxu1 %v6344_v54  ;;  %v1537_v53 = vpop.permute.xlu1 %1536  ;;  %v1540_v54 = vpop.permute.xlu0 %1539 }
 0x230   :  { %2067 = vmatprep.subr.bf16.mxu0 %v6349_v55  ;;  %2180 = vmatprep.subr.bf16.mxu1 %v6352_v56  ;;  %vm1573_vm12 = vcmp.eq.s32.totalorder %v1537_v53, %v7190_v26  ;;  %vm1575_vm13 = vcmp.eq.s32.totalorder %v1540_v54, %v7190_v26 }
 0x231   :  { %vm5565_vm0 = vmpackc.low %vm1575_vm13, %vm1573_vm12 }
 0x233   :  { %2068 = vmatpush1.bf16.msra.mxu0 %v6347_v57  ;;  %2181 = vmatpush1.bf16.msra.mxu1 %v6350_v43  ;;  %v1543_v55 = vpop.permute.xlu1 %1542  ;;  %v1546_v56 = vpop.permute.xlu0 %1545 }
 0x234   :  { %2069 = vmatprep.subr.bf16.mxu0 %v6355_v58  ;;  %2182 = vmatprep.subr.bf16.mxu1 %v6358_v59  ;;  %v7708_v58 = vld [vmem:[#allocation5 + $0x2c] ss:$16 sps:$4 sm:$0xff]   ;;  %v7712_v59 = vld [vmem:[#allocation5 + $0x28] ss:$16 sps:$4 sm:$0xff]  }
 0x237   :  { %2070 = vmatpush1.bf16.msra.mxu0 %v6353_v27  ;;  %2183 = vmatpush1.bf16.msra.mxu1 %v6356_v32  ;;  %v1549_v57 = vpop.permute.xlu1 %1548  ;;  %v1552_v43 = vpop.permute.xlu0 %1551  ;;  %v7722_v27 = vld [vmem:[#allocation5 + $0x6c] ss:$16 sps:$4 sm:$0xff]   ;;  %v7725_v32 = vld [vmem:[#allocation5 + $0x68] ss:$16 sps:$4 sm:$0xff]  }
 0x238   :  { %2071 = vmatprep.subr.bf16.mxu0 %v6361_v34  ;;  %2184 = vmatprep.subr.bf16.mxu1 %v6364_v60  ;;  %v7728_v34 = vld [vmem:[#allocation5 + $0x8c] ss:$16 sps:$4 sm:$0xff]   ;;  %v7731_v60 = vld [vmem:[#allocation5 + $0x88] ss:$16 sps:$4 sm:$0xff]  }
 0x23b   :  { %2072 = vmatpush1.bf16.msra.mxu0 %v6359_v61  ;;  %2185 = vmatpush1.bf16.msra.mxu1 %v6362_v62  ;;  %v7734_v61 = vld [vmem:[#allocation5 + $0xac] ss:$16 sps:$4 sm:$0xff]   ;;  %v7737_v62 = vld [vmem:[#allocation5 + $0xa8] ss:$16 sps:$4 sm:$0xff]  }
 0x23c   :  { %2073 = vmatprep.subr.bf16.mxu0 %v6367_v63  ;;  %2186 = vmatprep.subr.bf16.mxu1 %v6370_v0  ;;  %v7740_v63 = vld [vmem:[#allocation5 + $0xcc] ss:$16 sps:$4 sm:$0xff]   ;;  %v7743_v0 = vld [vmem:[#allocation5 + $0xc8] ss:$16 sps:$4 sm:$0xff]  }
 0x23f   :  { %2074 = vmatpush1.bf16.msra.mxu0 %v6365_v1  ;;  %2187 = vmatpush1.bf16.msra.mxu1 %v6368_v2  ;;  %v7746_v1 = vld [vmem:[#allocation5 + $0xec] ss:$16 sps:$4 sm:$0xff]   ;;  %v7749_v2 = vld [vmem:[#allocation5 + $0xe8] ss:$16 sps:$4 sm:$0xff]  }
 0x240   :  { %2075 = vmatprep.subr.bf16.mxu0 %v6373_v6  ;;  %2188 = vmatprep.subr.bf16.mxu1 %v6376_v7 }
 0x243   :  { %2076 = vmatpush1.bf16.msra.mxu0 %v6371_v10  ;;  %2189 = vmatpush1.bf16.msra.mxu1 %v6374_v11 }
 0x244   :  { %2077 = vmatprep.subr.bf16.mxu0 %v6379_v12  ;;  %2190 = vmatprep.subr.bf16.mxu1 %v6382_v13 }
 0x247   :  { %2078 = vmatpush1.bf16.msra.mxu0 %v6377_v15  ;;  %2191 = vmatpush1.bf16.msra.mxu1 %v6380_v17 }
 0x248   :  { %2079 = vmatprep.subr.bf16.mxu0 %v6385_v18  ;;  %2192 = vmatprep.subr.bf16.mxu1 %v6388_v21 }
 0x24b   :  { %2080 = vmatpush1.bf16.msra.mxu0 %v6383_v22  ;;  %2193 = vmatpush1.bf16.msra.mxu1 %v6386_v5  ;;  %v654_v22 = vld [vmem:[%s8348_s6] sm:$0xf] }
 0x24c   :  { %2475 = vmatprep.subr.bf16.mxu1 %v7578_v24  ;;  %2820 = vmatprep.subr.bf16.mxu0 %v7578_v24  ;;  %v659_v5 = vrot.slane %v654_v22, %v7355_v38  ;;  %v663_v23 = vrot.slane %v654_v22, %v7361_v40 }
 0x24e   :  { %5546 = vmatmul.mubr.msk.bf16.vlgmr.msra.gmra.mrb[4].mxu0 %vm5545_vm2, %v6869_v20  ;;  %5578 = vmatmul.mubr.msk.bf16.vlgmr.msra.gmra.mrb[12].mxu1 %vm5545_vm2, %v6869_v20  ;;  %vm1570_vm2 = vcmp.eq.s32.totalorder %v1531_v45, %v7560_v4  ;;  %v1353_v9 = vadd.f32 nan, %v663_v23 }
 0x24f   :  { %5548 = vmatprep.mubr.msk.bf16.mxu0 %vm5547_vm3, %v6869_v20  ;;  %5580 = vmatprep.mubr.msk.bf16.mxu1 %vm5547_vm3, %v6869_v20  ;;  %vm1572_vm3 = vcmp.eq.s32.totalorder %v1534_v46, %v7560_v4 }
 0x250   :  { %2476 = vmatpush1.bf16.msra.mxu1 %v7582_v25  ;;  %2821 = vmatpush1.bf16.msra.mxu0 %v7582_v25  ;;  %vm5559_vm5 = vmpackc.low %vm1572_vm3, %vm1570_vm2  ;;  %vm1577_vm2 = vcmp.eq.s32.totalorder %v1543_v55, %v7190_v26  ;;  %vm1579_vm3 = vcmp.eq.s32.totalorder %v1546_v56, %v7190_v26 }
 0x251   :  { %2477 = vmatprep.subr.bf16.mxu1 %v7586_v8  ;;  %2822 = vmatprep.subr.bf16.mxu0 %v7586_v8  ;;  %vm5569_vm6 = vmpackc.low %vm1579_vm3, %vm1577_vm2 }
 0x254   :  { %2478 = vmatpush1.bf16.msra.mxu1 %v7593_v28  ;;  %2823 = vmatpush1.bf16.msra.mxu0 %v7593_v28 }
 0x255   :  { %2479 = vmatprep.subr.bf16.mxu1 %v7597_v29  ;;  %2824 = vmatprep.subr.bf16.mxu0 %v7597_v29 }
 0x256   :  { %5550 = vmatmul.mubr.msk.bf16.gmra.mrb[8].mxu0 %vm5549_vm8, %v6869_v20  ;;  %5582 = vmatmul.mubr.msk.bf16.gmra.mrb[16].mxu1 %vm5549_vm8, %v6869_v20  ;;  %vm1574_vm8 = vcmp.eq.s32.totalorder %v1537_v53, %v7560_v4 }
 0x257   :  { %5552 = vmatprep.mubr.msk.bf16.mxu0 %vm5551_vm9, %v6869_v20  ;;  %5584 = vmatprep.mubr.msk.bf16.mxu1 %vm5551_vm9, %v6869_v20  ;;  %vm1576_vm9 = vcmp.eq.s32.totalorder %v1540_v54, %v7560_v4 }
 0x258   :  { %2480 = vmatpush1.bf16.msra.mxu1 %v7605_v33  ;;  %2825 = vmatpush1.bf16.msra.mxu0 %v7605_v33  ;;  %vm5563_vm11 = vmpackc.low %vm1576_vm9, %vm1574_vm8  ;;  %vm1581_vm8 = vcmp.eq.s32.totalorder %v1549_v57, %v7190_v26  ;;  %vm1583_vm9 = vcmp.eq.s32.totalorder %v1552_v43, %v7190_v26  ;;  %v7716_v26 = vld [vmem:[#allocation5 + $0x4c] ss:$16 sps:$4 sm:$0xff]  }
 0x259   :  { %2481 = vmatprep.subr.bf16.mxu1 %v7609_v35  ;;  %2826 = vmatprep.subr.bf16.mxu0 %v7609_v35 }
 0x25c   :  { %2482 = vmatpush1.bf16.msra.mxu1 %v7617_v36  ;;  %2827 = vmatpush1.bf16.msra.mxu0 %v7617_v36 }
 0x25d   :  { %2483 = vmatprep.subr.bf16.mxu1 %v7621_v37  ;;  %2828 = vmatprep.subr.bf16.mxu0 %v7621_v37 }
 0x25e   :  { %5554 = vmatmul.mubr.msk.bf16.gmra.mrb[12].mxu0 %vm5553_vm14, %v6869_v20  ;;  %5586 = vmatmul.mubr.msk.bf16.gmra.mrb[20].mxu1 %vm5553_vm14, %v6869_v20  ;;  %vm1578_vm14 = vcmp.eq.s32.totalorder %v1543_v55, %v7560_v4 }
 0x25f   :  { %5556 = vmatprep.mubr.msk.bf16.mxu0 %vm5555_vm15, %v6869_v20  ;;  %5588 = vmatprep.mubr.msk.bf16.mxu1 %vm5555_vm15, %v6869_v20  ;;  %vm1580_vm15 = vcmp.eq.s32.totalorder %v1546_v56, %v7560_v4 }
 0x260   :  { %2484 = vmatpush1.bf16.msra.mxu1 %v7629_v41  ;;  %2829 = vmatpush1.bf16.msra.mxu0 %v7629_v41  ;;  %vm5567_vm1 = vmpackc.low %vm1580_vm15, %vm1578_vm14 }
 0x261   :  { %2485 = vmatprep.subr.bf16.mxu1 %v7633_v42  ;;  %2830 = vmatprep.subr.bf16.mxu0 %v7633_v42 }
 0x264   :  { %2486 = vmatpush1.bf16.msra.mxu1 %v7641_v44  ;;  %2831 = vmatpush1.bf16.msra.mxu0 %v7641_v44 }
 0x265   :  { %2487 = vmatprep.subr.bf16.mxu1 %v7645_v16  ;;  %2832 = vmatprep.subr.bf16.mxu0 %v7645_v16 }
 0x266   :  { %5558 = vmatmul.mubr.msk.bf16.gmra.mrb[16].mxu0 %vm5557_vm4, %v6869_v20  ;;  %5590 = vmatmul.mubr.msk.bf16.gmra.mrb[24].mxu1 %vm5557_vm4, %v6869_v20  ;;  %vm1582_vm4 = vcmp.eq.s32.totalorder %v1549_v57, %v7560_v4 }
 0x267   :  { %5560 = vmatprep.mubr.msk.bf16.mxu0 %vm5559_vm5, %v6869_v20  ;;  %5592 = vmatprep.mubr.msk.bf16.mxu1 %vm5559_vm5, %v6869_v20  ;;  %vm1584_vm5 = vcmp.eq.s32.totalorder %v1552_v43, %v7560_v4  ;;  %v7706_v4 = vld [vmem:[#allocation5 + $0x8] ss:$16 sps:$4 sm:$0xff]  }
 0x268   :  { %2488 = vmatpush1.bf16.msra.mxu1 %v7653_v47  ;;  %2833 = vmatpush1.bf16.msra.mxu0 %v7653_v47  ;;  %vm5571_vm7 = vmpackc.low %vm1584_vm5, %vm1582_vm4 }
 0x269   :  { %2489 = vmatprep.subr.bf16.mxu1 %v7657_v48  ;;  %2834 = vmatprep.subr.bf16.mxu0 %v7657_v48 }
 0x26c   :  { %2490 = vmatpush1.bf16.msra.mxu1 %v7665_v50  ;;  %2835 = vmatpush1.bf16.msra.mxu0 %v7665_v50 }
 0x26d   :  { %2518 = vmatprep.subr.bf16.mxu1 %v7669_v51  ;;  %3165 = vmatprep.subr.bf16.mxu0 %v7578_v24  ;;  %v1351_v24 = vadd.f32 nan, %v659_v5 }
 0x26e   :  { %5562 = vmatmul.mubr.msk.bf16.gmra.mrb[20].mxu0 %vm5561_vm10, %v6869_v20  ;;  %5594 = vmatmul.mubr.msk.bf16.gmra.mrb[28].mxu1 %vm5561_vm10, %v6869_v20  ;;  %vm5573_vm10 = vmpackc.low %vm1583_vm9, %vm1581_vm8 }
 0x26f   :  { %5564 = vmatprep.mubr.msk.bf16.mxu0 %vm5563_vm11, %v6869_v20  ;;  %5596 = vmatprep.mubr.msk.bf16.mxu1 %vm5563_vm11, %v6869_v20 }
 0x276   :  { %5566 = vmatmul.mubr.msk.bf16.gmra.mrb[24].mxu0 %vm5565_vm0, %v6869_v20  ;;  %5598 = vmatmul.mubr.msk.bf16.gmra.mrb[32].mxu1 %vm5565_vm0, %v6869_v20 }
 0x277   :  { %5568 = vmatprep.mubr.msk.bf16.mxu0 %vm5567_vm1, %v6869_v20  ;;  %5600 = vmatprep.mubr.msk.bf16.mxu1 %vm5567_vm1, %v6869_v20 }
 0x27e   :  { %5570 = vmatmul.mubr.msk.bf16.gmra.mrb[28].mxu0 %vm5569_vm6, %v6869_v20  ;;  %5602 = vmatmul.mubr.msk.bf16.gmra.mrb[36].mxu1 %vm5569_vm6, %v6869_v20 }
 0x27f   :  { %5572 = vmatprep.mubr.msk.bf16.mxu0 %vm5571_vm7, %v6869_v20  ;;  %5604 = vmatprep.mubr.msk.bf16.mxu1 %vm5571_vm7, %v6869_v20 }
 0x286   :  { %5574 = vmatmul.mubr.msk.bf16.gmra.mrb[32].mxu0 %vm5573_vm10, %v6869_v20  ;;  %5606 = vmatmul.mubr.msk.bf16.gmra.mrb[40].mxu1 %vm5573_vm10, %v6869_v20  ;;  %v7719_v20 = vld [vmem:[#allocation5 + $0x48] ss:$16 sps:$4 sm:$0xff]  }
 0x287   :  { %2507 = vmatprep.mubr.bf16.mxu1 %v8353_v31  ;;  %2852 = vmatprep.mubr.bf16.mxu0 %v8353_v31 }
 0x28e   :  { %2508 = vmatmul.mubr.bf16.vlgmr.msra.gmra.mrb[44].mxu1 %v8353_v31 }
 0x28f   :  { %2519 = vmatpush1.bf16.msra.mxu1 %v7706_v4  ;;  %2550 = vmatprep.mubr.bf16.mxu1 %v8353_v31 }
 0x290   :  { %2520 = vmatprep.subr.bf16.mxu1 %v7708_v58 }
 0x293   :  { %2521 = vmatpush1.bf16.msra.mxu1 %v7712_v59 }
 0x294   :  { %2522 = vmatprep.subr.bf16.mxu1 %v7716_v26 }
 0x297   :  { %2523 = vmatpush1.bf16.msra.mxu1 %v7719_v20 }
 0x298   :  { %2524 = vmatprep.subr.bf16.mxu1 %v7722_v27 }
 0x29b   :  { %2525 = vmatpush1.bf16.msra.mxu1 %v7725_v32 }
 0x29c   :  { %2526 = vmatprep.subr.bf16.mxu1 %v7728_v34 }
 0x29f   :  { %2527 = vmatpush1.bf16.msra.mxu1 %v7731_v60 }
 0x2a0   :  { %2528 = vmatprep.subr.bf16.mxu1 %v7734_v61 }
 0x2a3   :  { %2529 = vmatpush1.bf16.msra.mxu1 %v7737_v62 }
 0x2a4   :  { %2530 = vmatprep.subr.bf16.mxu1 %v7740_v63 }
 0x2a7   :  { %2531 = vmatpush1.bf16.msra.mxu1 %v7743_v0 }
 0x2a8   :  { %2532 = vmatprep.subr.bf16.mxu1 %v7746_v1 }
 0x2ab   :  { %2533 = vmatpush1.bf16.msra.mxu1 %v7749_v2 }
 0x2ac   :  { %2863 = vmatprep.subr.bf16.mxu1 %v7669_v51 }
 0x2ae   :  { %2551 = vmatmul.mubr.bf16.vlgmr.msra.gmra.mrb[12].mxu1 %v8353_v31 }
 0x2af   :  { %2864 = vmatpush1.bf16.msra.mxu1 %v7706_v4  ;;  %2895 = vmatprep.mubr.bf16.mxu1 %v8353_v31 }
 0x2b0   :  { %2865 = vmatprep.subr.bf16.mxu1 %v7708_v58 }
 0x2b3   :  { %2866 = vmatpush1.bf16.msra.mxu1 %v7712_v59 }
 0x2b4   :  { %2867 = vmatprep.subr.bf16.mxu1 %v7716_v26 }
 0x2b7   :  { %2868 = vmatpush1.bf16.msra.mxu1 %v7719_v20 }
 0x2b8   :  { %2869 = vmatprep.subr.bf16.mxu1 %v7722_v27 }
 0x2bb   :  { %2870 = vmatpush1.bf16.msra.mxu1 %v7725_v32 }
 0x2bc   :  { %2871 = vmatprep.subr.bf16.mxu1 %v7728_v34 }
 0x2bf   :  { %2872 = vmatpush1.bf16.msra.mxu1 %v7731_v60 }
 0x2c0   :  { %2873 = vmatprep.subr.bf16.mxu1 %v7734_v61 }
 0x2c3   :  { %2874 = vmatpush1.bf16.msra.mxu1 %v7737_v62 }
 0x2c4   :  { %2875 = vmatprep.subr.bf16.mxu1 %v7740_v63 }
 0x2c7   :  { %2876 = vmatpush1.bf16.msra.mxu1 %v7743_v0 }
 0x2c8   :  { %2877 = vmatprep.subr.bf16.mxu1 %v7746_v1 }
 0x2cb   :  { %2878 = vmatpush1.bf16.msra.mxu1 %v7749_v2 }
 0x2cc   :  { %3208 = vmatprep.subr.bf16.mxu1 %v7669_v51 }
 0x2e1   :  { %v1393_v3 = vpop.f32.mrb[0].mxu0  ;;  %v1479_v6 = vpop.f32.mrb[8].mxu1 }
 0x2e2   :  { %v1395_v7 = vpop.f32.mrb[1].mxu0  ;;  %v1481_v10 = vpop.f32.mrb[9].mxu1  ;;  %v7777_v30 = vadd.f32 %v1393_v3, %v1351_v24 }
 0x2e3   :  { %v1397_v11 = vpop.f32.mrb[2].mxu0  ;;  %v1483_v12 = vpop.f32.mrb[10].mxu1  ;;  %v7779_v39 = vadd.f32 %v1395_v7, %v1353_v9 }
 0x2e4   :  { %v1399_v13 = vpop.f32.mrb[3].mxu0  ;;  %v1485_v14 = vpop.f32.mrb[11].mxu1  ;;  %v7781_v45 = vadd.f32 %v1397_v11, %v1351_v24 }
 0x2e5   :  { %v7784_v53 = vadd.f32 %v1399_v13, %v1353_v9 }
 0x321   :  { %v2083_v15 = vpop.f32.mrb[4].mxu0 }
 0x322   :  { %v2085_v17 = vpop.f32.mrb[5].mxu0  ;;  %v5935_v46 = vadd.f32 %v2083_v15, %v7777_v30  ;;  %v8362_v15 = vsub.s32 2, %v7049_v19 }
 0x323   :  { %v2087_v18 = vpop.f32.mrb[6].mxu0  ;;  %v5937_v54 = vadd.f32 %v2085_v17, %v7779_v39 }
 0x324   :  { %v2089_v21 = vpop.f32.mrb[7].mxu0  ;;  %v5939_v56 = vadd.f32 %v2087_v18, %v7781_v45  ;;  %v667_v17 = vrot.slane %v654_v22, %v8362_v15  ;;  %v8363_v18 = vsub.s32 3, %v7049_v19 }
 0x325   :  { %v5941_v5 = vadd.f32 %v2089_v21, %v7784_v53 }
 0x326   :  { %v671_v9 = vrot.slane %v654_v22, %v8363_v18 }
 0x361   :  { %v2509_v55 = vpop.f32.mrb[44].mxu1 }
 0x362   :  { %v5936_v57 = vadd.f32 %v5935_v46, %v2509_v55  ;;  %v2511_v43 = vpop.f32.mrb[45].mxu1  ;;  %v1437_v55 = vadd.f32 nan, %v667_v17 }
 0x363   :  { %v5938_v23 = vadd.f32 %v5937_v54, %v2511_v43  ;;  %v2513_v3 = vpop.f32.mrb[46].mxu1 }
 0x364   :  { %v5940_v31 = vadd.f32 %v5939_v56, %v2513_v3  ;;  %v2515_v7 = vpop.f32.mrb[47].mxu1  ;;  %v5639_v11 = vmul.f32 -1.442695, %v5936_v57  ;;  %v1439_v56 = vadd.f32 nan, %v671_v9 }
 0x365   :  { %v5942_v52 = vadd.f32 %v5941_v5, %v2515_v7  ;;  %v5641_v24 = vmul.f32 -1.442695, %v5938_v23  ;;  %v7793_v23 = vadd.f32 %v1479_v6, %v1437_v55  ;;  %v7797_v7 = vadd.f32 %v1483_v12, %v1437_v55 }
 0x366   :  { %6533 = vpow2.f32 %v5639_v11  ;;  %v5640_v13 = vmul.f32 -1.442695, %v5940_v31  ;;  %v7795_v31 = vadd.f32 %v1481_v10, %v1439_v56  ;;  %v7800_v11 = vadd.f32 %v1485_v14, %v1439_v56 }
 0x367   :  { %v5642_v49 = vmul.f32 -1.442695, %v5942_v52  ;;  %6535 = vpow2.f32 %v5641_v24 }
 0x369   :  { %6537 = vpow2.f32 %v5642_v49 }
 0x36a   :  { %6539 = vpow2.f32 %v5640_v13 }
 0x370   :  { %v6534_v21 = vpop.eup %6533 }
 0x371   :  { %v6536_v46 = vpop.eup %6535  ;;  %v2575_v43 = vadd.f32 1.0, %v6534_v21 }
 0x372   :  { %v2587_v5 = vadd.f32 1.0, %v6536_v46 }
 0x373   :  { %v6538_v54 = vpop.eup %6537  ;;  %6541 = vrcp.f32 %v2575_v43 }
 0x374   :  { %v6540_v57 = vpop.eup %6539  ;;  %v2588_v52 = vadd.f32 1.0, %v6538_v54  ;;  %6543 = vrcp.f32 %v2587_v5 }
 0x375   :  { %v2576_v49 = vadd.f32 1.0, %v6540_v57 }
 0x376   :  { %6545 = vrcp.f32 %v2588_v52 }
 0x37d   :  { %v6542_v18 = vpop.eup %6541 }
 0x37e   :  { %v6544_v9 = vpop.eup %6543 }
 0x37f   :  { %v2607_v54 = vmul.f32 0.0, %v6544_v9 }
 0x380   :  { %v6546_v14 = vpop.eup %6545 }
 0x381   :  { %v2552_v3 = vpop.f32.mrb[12].mxu1  ;;  %v2608_v57 = vmul.f32 0.0, %v6546_v14 }
 0x382   :  { %v5971_v19 = vadd.f32 %v2552_v3, %v7793_v23  ;;  %v2554_v22 = vpop.f32.mrb[13].mxu1 }
 0x383   :  { %v5972_v24 = vadd.f32 %v2554_v22, %v7795_v31  ;;  %v2556_v13 = vpop.f32.mrb[14].mxu1 }
 0x384   :  { %6547 = vtanh.f32 %v5971_v19  ;;  %v5973_v6 = vadd.f32 %v2556_v13, %v7797_v7  ;;  %v2558_v10 = vpop.f32.mrb[15].mxu1 }
 0x385   :  { %6549 = vrcp.f32 %v2576_v49  ;;  %v5643_v15 = vmul.f32 -1.442695, %v5972_v24  ;;  %v5974_v17 = vadd.f32 %v2558_v10, %v7800_v11 }
 0x386   :  { %6551 = vtanh.f32 %v5973_v6 }
 0x387   :  { %6553 = vpow2.f32 %v5643_v15  ;;  %v5644_v12 = vmul.f32 -1.442695, %v5974_v17 }
 0x389   :  { %6555 = vpow2.f32 %v5644_v12 }
 0x38e   :  { %v6548_v21 = vpop.eup %6547 }
 0x38f   :  { %v6550_v46 = vpop.eup %6549  ;;  %v2609_v55 = vmul.f32 %v6548_v21, %v6542_v18  ;;  %v8364_v18 = vmov 0  }
 0x390   :  { %v6552_v56 = vpop.eup %6551 }
 0x391   :  { %v6554_v43 = vpop.eup %6553  ;;  %v7805_v5 = vadd.f32 %v2609_v55, %v2607_v54  ;;  %v2610_v52 = vmul.f32 %v6552_v56, %v6550_v46 }
 0x392   :  { %v2601_v49 = vadd.f32 1.0, %v6554_v43 }
 0x393   :  { %v6556_v3 = vpop.eup %6555  ;;  %6557 = vtanh.f32 %v7805_v5  ;;  %v7808_v19 = vadd.f32 %v2610_v52, %v2608_v57 }
 0x394   :  { %6559 = vrcp.f32 %v2601_v49  ;;  %v2602_v22 = vadd.f32 1.0, %v6556_v3 }
 0x395   :  { %6561 = vtanh.f32 %v7808_v19 }
 0x396   :  { %6563 = vrcp.f32 %v2602_v22 }
 0x39d   :  { %v6558_v24 = vpop.eup %6557 }
 0x39e   :  { %v6560_v13 = vpop.eup %6559 }
 0x39f   :  { %v6562_v6 = vpop.eup %6561  ;;  %v2615_v15 = vmul.f32 %v6560_v13, %v6558_v24 }
 0x3a0   :  { %v6564_v10 = vpop.eup %6563 }
 0x3a1   :  { %v2616_v17 = vmul.f32 %v6564_v10, %v6562_v6 }
 0x3a3   :  { %v7811_v12 = vpack.c.bf16 %v2616_v17, %v2615_v15 }
 0x3a5   :  { %2853 = vmatmul.mubr.bf16.vlgmr.msra.gmra.mrb[8].mxu0 %v7811_v12  ;;  %2896 = vmatmul.mubr.bf16.vlgmr.msra.gmra.mrb[16].mxu1 %v7811_v12 }
 0x3a6   :  { %3166 = vmatpush1.bf16.msra.mxu0 %v7582_v25  ;;  %3209 = vmatpush1.bf16.msra.mxu1 %v7706_v4 }
 0x3a7   :  { %3167 = vmatprep.subr.bf16.mxu0 %v7586_v8  ;;  %3210 = vmatprep.subr.bf16.mxu1 %v7708_v58 }
 0x3a8   :  { %3197 = vmatprep.mubr.bf16.mxu0 %v8364_v18  ;;  %3240 = vmatprep.mubr.bf16.mxu1 %v8364_v18 }
 0x3aa   :  { %3168 = vmatpush1.bf16.msra.mxu0 %v7593_v28  ;;  %3211 = vmatpush1.bf16.msra.mxu1 %v7712_v59 }
 0x3ab   :  { %3169 = vmatprep.subr.bf16.mxu0 %v7597_v29  ;;  %3212 = vmatprep.subr.bf16.mxu1 %v7716_v26 }
 0x3ae   :  { %3170 = vmatpush1.bf16.msra.mxu0 %v7605_v33  ;;  %3213 = vmatpush1.bf16.msra.mxu1 %v7719_v20 }
 0x3af   :  { %3171 = vmatprep.subr.bf16.mxu0 %v7609_v35  ;;  %3214 = vmatprep.subr.bf16.mxu1 %v7722_v27 }
 0x3b2   :  { %3172 = vmatpush1.bf16.msra.mxu0 %v7617_v36  ;;  %3215 = vmatpush1.bf16.msra.mxu1 %v7725_v32 }
 0x3b3   :  { %3173 = vmatprep.subr.bf16.mxu0 %v7621_v37  ;;  %3216 = vmatprep.subr.bf16.mxu1 %v7728_v34 }
 0x3b6   :  { %3174 = vmatpush1.bf16.msra.mxu0 %v7629_v41  ;;  %3217 = vmatpush1.bf16.msra.mxu1 %v7731_v60 }
 0x3b7   :  { %3175 = vmatprep.subr.bf16.mxu0 %v7633_v42  ;;  %3218 = vmatprep.subr.bf16.mxu1 %v7734_v61 }
 0x3ba   :  { %3176 = vmatpush1.bf16.msra.mxu0 %v7641_v44  ;;  %3219 = vmatpush1.bf16.msra.mxu1 %v7737_v62 }
 0x3bb   :  { %3177 = vmatprep.subr.bf16.mxu0 %v7645_v16  ;;  %3220 = vmatprep.subr.bf16.mxu1 %v7740_v63 }
 0x3be   :  { %3178 = vmatpush1.bf16.msra.mxu0 %v7653_v47  ;;  %3221 = vmatpush1.bf16.msra.mxu1 %v7743_v0 }
 0x3bf   :  { %3179 = vmatprep.subr.bf16.mxu0 %v7657_v48  ;;  %3222 = vmatprep.subr.bf16.mxu1 %v7746_v1 }
 0x3c2   :  { %3180 = vmatpush1.bf16.msra.mxu0 %v7665_v50  ;;  %3223 = vmatpush1.bf16.msra.mxu1 %v7749_v2 }
 0x3c3   :  { %3553 = vmatprep.subr.bf16.mxu1 %v7669_v51 }
 0x478   :  { %v2854_v25 = vpop.f32.mrb[8].mxu0  ;;  %v2897_v8 = vpop.f32.mrb[16].mxu1 }
 0x479   :  { %v5943_v28 = vadd.f32 %v2854_v25, %v7777_v30  ;;  %v2856_v29 = vpop.f32.mrb[9].mxu0  ;;  %v2899_v33 = vpop.f32.mrb[17].mxu1  ;;  %v5975_v14 = vadd.f32 %v2897_v8, %v7793_v23 }
 0x47a   :  { %v5944_v35 = vadd.f32 %v2856_v29, %v7779_v39  ;;  %v2858_v36 = vpop.f32.mrb[10].mxu0  ;;  %v2901_v37 = vpop.f32.mrb[18].mxu1  ;;  %v5976_v9 = vadd.f32 %v2899_v33, %v7795_v31 }
 0x47b   :  { %v5677_v41 = vmul.f32 -1.442695, %v5943_v28  ;;  %v5945_v42 = vadd.f32 %v2858_v36, %v7781_v45  ;;  %v2860_v44 = vpop.f32.mrb[11].mxu0  ;;  %v2903_v16 = vpop.f32.mrb[19].mxu1  ;;  %v5977_v54 = vadd.f32 %v2901_v37, %v7797_v7 }
 0x47c   :  { %v5679_v47 = vmul.f32 -1.442695, %v5944_v35  ;;  %v5946_v48 = vadd.f32 %v2860_v44, %v7784_v53  ;;  %v5681_v21 = vmul.f32 -1.442695, %v5976_v9  ;;  %v5978_v46 = vadd.f32 %v2903_v16, %v7800_v11 }
 0x47d   :  { %6565 = vpow2.f32 %v5677_v41  ;;  %v5678_v50 = vmul.f32 -1.442695, %v5945_v42 }
 0x47e   :  { %6567 = vpow2.f32 %v5679_v47  ;;  %v5680_v51 = vmul.f32 -1.442695, %v5946_v48  ;;  %v5682_v57 = vmul.f32 -1.442695, %v5978_v46 }
 0x47f   :  { %6569 = vpow2.f32 %v5678_v50 }
 0x480   :  { %6571 = vpow2.f32 %v5680_v51 }
 0x481   :  { %6573 = vtanh.f32 %v5975_v14 }
 0x482   :  { %6575 = vpow2.f32 %v5681_v21 }
 0x483   :  { %6577 = vtanh.f32 %v5977_v54 }
 0x487   :  { %v6566_v55 = vpop.eup %6565 }
 0x488   :  { %v6568_v56 = vpop.eup %6567  ;;  %v2920_v43 = vadd.f32 1.0, %v6566_v55 }
 0x489   :  { %v2932_v52 = vadd.f32 1.0, %v6568_v56  ;;  %v6570_v49 = vpop.eup %6569 }
 0x48a   :  { %6579 = vrcp.f32 %v2920_v43  ;;  %v2921_v3 = vadd.f32 1.0, %v6570_v49  ;;  %v6572_v22 = vpop.eup %6571 }
 0x48b   :  { %6581 = vrcp.f32 %v2932_v52  ;;  %v2933_v24 = vadd.f32 1.0, %v6572_v22  ;;  %v6574_v13 = vpop.eup %6573 }
 0x48c   :  { %6583 = vpow2.f32 %v5682_v57  ;;  %v6576_v6 = vpop.eup %6575 }
 0x48d   :  { %6585 = vrcp.f32 %v2921_v3  ;;  %v6578_v10 = vpop.eup %6577  ;;  %v2946_v33 = vadd.f32 1.0, %v6576_v6 }
 0x48e   :  { %6587 = vrcp.f32 %v2933_v24 }
 0x48f   :  { %6589 = vrcp.f32 %v2946_v33 }
 0x494   :  { %v6580_v15 = vpop.eup %6579 }
 0x495   :  { %v6582_v17 = vpop.eup %6581  ;;  %v2954_v25 = vmul.f32 %v6580_v15, %v6574_v13 }
 0x496   :  { %v6584_v8 = vpop.eup %6583  ;;  %v2952_v28 = vmul.f32 %v6582_v17, %v7805_v5 }
 0x497   :  { %v6586_v29 = vpop.eup %6585  ;;  %v2947_v41 = vadd.f32 1.0, %v6584_v8 }
 0x498   :  { %v7857_v35 = vadd.f32 %v2954_v25, %v2952_v28  ;;  %v2955_v36 = vmul.f32 %v6586_v29, %v6578_v10  ;;  %v6588_v37 = vpop.eup %6587 }
 0x499   :  { %v2953_v42 = vmul.f32 %v6588_v37, %v7808_v19  ;;  %v6590_v16 = vpop.eup %6589  ;;  %v7929_v19 = vld [vmem:[#allocation5 + $0xe0] ss:$16 sps:$4 sm:$0xff]  }
 0x49a   :  { %6591 = vtanh.f32 %v7857_v35 }
 0x49b   :  { %v7861_v44 = vadd.f32 %v2955_v36, %v2953_v42  ;;  %6593 = vrcp.f32 %v2947_v41 }
 0x49d   :  { %6595 = vtanh.f32 %v7861_v44 }
 0x4a4   :  { %v6592_v47 = vpop.eup %6591 }
 0x4a5   :  { %v6594_v5 = vpop.eup %6593  ;;  %v2960_v50 = vmul.f32 %v6592_v47, %v6590_v16 }
 0x4a7   :  { %v6596_v48 = vpop.eup %6595 }
 0x4a8   :  { %v2961_v51 = vmul.f32 %v6596_v48, %v6594_v5 }
 0x4aa   :  { %v7864_v9 = vpack.c.bf16 %v2961_v51, %v2960_v50 }
 0x4ac   :  { %3198 = vmatmul.mubr.bf16.vlgmr.msra.gmra.mrb[12].mxu0 %v7864_v9  ;;  %3241 = vmatmul.mubr.bf16.vlgmr.msra.gmra.mrb[20].mxu1 %v7864_v9 }
 0x4ad   :  { %3554 = vmatpush1.bf16.msra.mxu1 %v7706_v4  ;;  %3542 = vmatprep.mubr.bf16.mxu0 %v8364_v18  ;;  %v7885_v4 = vld [vmem:[#allocation5 + $0x4] ss:$16 sps:$4 sm:$0xff]  }
 0x4ae   :  { %3555 = vmatprep.subr.bf16.mxu1 %v7708_v58  ;;  %3585 = vmatprep.mubr.bf16.mxu1 %v8364_v18  ;;  %v7887_v58 = vld [vmem:[#allocation5] ss:$16 sps:$4 sm:$0xff]  }
 0x4af   :  { %3510 = vmatprep.subr.bf16.mxu0 %v7885_v4 }
 0x4b0   :  { %3511 = vmatpush1.bf16.msra.mxu0 %v7887_v58 }
 0x4b1   :  { %3556 = vmatpush1.bf16.msra.mxu1 %v7712_v59  ;;  %v7891_v59 = vld [vmem:[#allocation5 + $0x24] ss:$16 sps:$4 sm:$0xff]  }
 0x4b2   :  { %3557 = vmatprep.subr.bf16.mxu1 %v7716_v26  ;;  %v7893_v26 = vld [vmem:[#allocation5 + $0x20] ss:$16 sps:$4 sm:$0xff]   ;;  %3512 = vmatprep.subr.bf16.mxu0 %v7891_v59 }
 0x4b4   :  { %3513 = vmatpush1.bf16.msra.mxu0 %v7893_v26 }
 0x4b5   :  { %3558 = vmatpush1.bf16.msra.mxu1 %v7719_v20  ;;  %v7897_v20 = vld [vmem:[#allocation5 + $0x44] ss:$16 sps:$4 sm:$0xff]  }
 0x4b6   :  { %3559 = vmatprep.subr.bf16.mxu1 %v7722_v27  ;;  %v7899_v27 = vld [vmem:[#allocation5 + $0x40] ss:$16 sps:$4 sm:$0xff]   ;;  %3514 = vmatprep.subr.bf16.mxu0 %v7897_v20 }
 0x4b8   :  { %3515 = vmatpush1.bf16.msra.mxu0 %v7899_v27 }
 0x4b9   :  { %3560 = vmatpush1.bf16.msra.mxu1 %v7725_v32  ;;  %v7903_v32 = vld [vmem:[#allocation5 + $0x64] ss:$16 sps:$4 sm:$0xff]  }
 0x4ba   :  { %3561 = vmatprep.subr.bf16.mxu1 %v7728_v34  ;;  %v7905_v34 = vld [vmem:[#allocation5 + $0x60] ss:$16 sps:$4 sm:$0xff]   ;;  %3516 = vmatprep.subr.bf16.mxu0 %v7903_v32 }
 0x4bc   :  { %3517 = vmatpush1.bf16.msra.mxu0 %v7905_v34 }
 0x4bd   :  { %3562 = vmatpush1.bf16.msra.mxu1 %v7731_v60  ;;  %v7909_v60 = vld [vmem:[#allocation5 + $0x84] ss:$16 sps:$4 sm:$0xff]  }
 0x4be   :  { %3563 = vmatprep.subr.bf16.mxu1 %v7734_v61  ;;  %v7911_v61 = vld [vmem:[#allocation5 + $0x80] ss:$16 sps:$4 sm:$0xff]   ;;  %3518 = vmatprep.subr.bf16.mxu0 %v7909_v60 }
 0x4c0   :  { %3519 = vmatpush1.bf16.msra.mxu0 %v7911_v61 }
 0x4c1   :  { %3564 = vmatpush1.bf16.msra.mxu1 %v7737_v62  ;;  %v7913_v62 = vld [vmem:[#allocation5 + $0xa4] ss:$16 sps:$4 sm:$0xff]  }
 0x4c2   :  { %3565 = vmatprep.subr.bf16.mxu1 %v7740_v63  ;;  %v7917_v63 = vld [vmem:[#allocation5 + $0xa0] ss:$16 sps:$4 sm:$0xff]   ;;  %3520 = vmatprep.subr.bf16.mxu0 %v7913_v62 }
 0x4c4   :  { %3521 = vmatpush1.bf16.msra.mxu0 %v7917_v63 }
 0x4c5   :  { %3566 = vmatpush1.bf16.msra.mxu1 %v7743_v0  ;;  %v7920_v0 = vld [vmem:[#allocation5 + $0xc4] ss:$16 sps:$4 sm:$0xff]  }
 0x4c6   :  { %3567 = vmatprep.subr.bf16.mxu1 %v7746_v1  ;;  %v7923_v1 = vld [vmem:[#allocation5 + $0xc0] ss:$16 sps:$4 sm:$0xff]   ;;  %3522 = vmatprep.subr.bf16.mxu0 %v7920_v0 }
 0x4c8   :  { %3523 = vmatpush1.bf16.msra.mxu0 %v7923_v1 }
 0x4c9   :  { %3568 = vmatpush1.bf16.msra.mxu1 %v7749_v2  ;;  %v7926_v2 = vld [vmem:[#allocation5 + $0xe4] ss:$16 sps:$4 sm:$0xff]  }
 0x4ca   :  { %3524 = vmatprep.subr.bf16.mxu0 %v7926_v2 }
 0x4cc   :  { %3525 = vmatpush1.bf16.msra.mxu0 %v7929_v19 }
 0x4cd   :  { %3855 = vmatprep.subr.bf16.mxu0 %v7885_v4 }
 0x57f   :  { %v3199_v14 = vpop.f32.mrb[12].mxu0  ;;  %v3242_v21 = vpop.f32.mrb[20].mxu1 }
 0x580   :  { %v5947_v46 = vadd.f32 %v3199_v14, %v7777_v30  ;;  %v3201_v54 = vpop.f32.mrb[13].mxu0  ;;  %v3244_v55 = vpop.f32.mrb[21].mxu1  ;;  %v5979_v17 = vadd.f32 %v3242_v21, %v7793_v23 }
 0x581   :  { %v5948_v56 = vadd.f32 %v3201_v54, %v7779_v39  ;;  %v3203_v43 = vpop.f32.mrb[14].mxu0  ;;  %v3246_v57 = vpop.f32.mrb[22].mxu1  ;;  %v5980_v15 = vadd.f32 %v3244_v55, %v7795_v31 }
 0x582   :  { %v5715_v52 = vmul.f32 -1.442695, %v5947_v46  ;;  %v5949_v49 = vadd.f32 %v3203_v43, %v7781_v45  ;;  %v3205_v3 = vpop.f32.mrb[15].mxu0  ;;  %v3248_v22 = vpop.f32.mrb[23].mxu1  ;;  %v5981_v28 = vadd.f32 %v3246_v57, %v7797_v7 }
 0x583   :  { %v5717_v24 = vmul.f32 -1.442695, %v5948_v56  ;;  %v5950_v13 = vadd.f32 %v3205_v3, %v7784_v53  ;;  %v5719_v25 = vmul.f32 -1.442695, %v5980_v15  ;;  %v5982_v8 = vadd.f32 %v3248_v22, %v7800_v11 }
 0x584   :  { %6597 = vpow2.f32 %v5715_v52  ;;  %v5716_v6 = vmul.f32 -1.442695, %v5949_v49 }
 0x585   :  { %6599 = vpow2.f32 %v5717_v24  ;;  %v5718_v10 = vmul.f32 -1.442695, %v5950_v13  ;;  %v5720_v37 = vmul.f32 -1.442695, %v5982_v8  ;;  %v7974_v8 = vld [vmem:[#allocation5 + $0x8] ss:$16 sps:$4 sm:$0xff]  }
 0x586   :  { %6601 = vpow2.f32 %v5716_v6 }
 0x587   :  { %6603 = vpow2.f32 %v5718_v10 }
 0x588   :  { %6605 = vtanh.f32 %v5979_v17 }
 0x589   :  { %6607 = vpow2.f32 %v5719_v25 }
 0x58a   :  { %6609 = vtanh.f32 %v5981_v28  ;;  %v7978_v28 = vld [vmem:[#allocation5 + $0x2c] ss:$16 sps:$4 sm:$0xff]  }
 0x58e   :  { %v6598_v29 = vpop.eup %6597 }
 0x58f   :  { %v6600_v33 = vpop.eup %6599  ;;  %v3265_v36 = vadd.f32 1.0, %v6598_v29  ;;  %v7980_v29 = vld [vmem:[#allocation5 + $0x28] ss:$16 sps:$4 sm:$0xff]  }
 0x590   :  { %v3277_v41 = vadd.f32 1.0, %v6600_v33  ;;  %v6602_v42 = vpop.eup %6601  ;;  %v7984_v33 = vld [vmem:[#allocation5 + $0x4c] ss:$16 sps:$4 sm:$0xff]  }
 0x591   :  { %6611 = vrcp.f32 %v3265_v36  ;;  %v3266_v16 = vadd.f32 1.0, %v6602_v42  ;;  %v6604_v47 = vpop.eup %6603  ;;  %v7986_v36 = vld [vmem:[#allocation5 + $0x48] ss:$16 sps:$4 sm:$0xff]   ;;  %v7996_v42 = vld [vmem:[#allocation5 + $0x8c] ss:$16 sps:$4 sm:$0xff]  }
 0x592   :  { %6613 = vrcp.f32 %v3277_v41  ;;  %v3278_v5 = vadd.f32 1.0, %v6604_v47  ;;  %v6606_v48 = vpop.eup %6605  ;;  %v7992_v41 = vld [vmem:[#allocation5 + $0x68] ss:$16 sps:$4 sm:$0xff]   ;;  %v8000_v47 = vld [vmem:[#allocation5 + $0xac] ss:$16 sps:$4 sm:$0xff]  }
 0x593   :  { %6615 = vpow2.f32 %v5720_v37  ;;  %v6608_v50 = vpop.eup %6607  ;;  %v7990_v37 = vld [vmem:[#allocation5 + $0x6c] ss:$16 sps:$4 sm:$0xff]  }
 0x594   :  { %6617 = vrcp.f32 %v3266_v16  ;;  %v6610_v51 = vpop.eup %6609  ;;  %v3291_v43 = vadd.f32 1.0, %v6608_v50  ;;  %v7998_v16 = vld [vmem:[#allocation5 + $0x88] ss:$16 sps:$4 sm:$0xff]  }
 0x595   :  { %6619 = vrcp.f32 %v3278_v5  ;;  %v8004_v5 = vld [vmem:[#allocation5 + $0xa8] ss:$16 sps:$4 sm:$0xff]  }
 0x596   :  { %6621 = vrcp.f32 %v3291_v43  ;;  %v8010_v50 = vld [vmem:[#allocation5 + $0xc8] ss:$16 sps:$4 sm:$0xff]  }
 0x59b   :  { %v6612_v14 = vpop.eup %6611 }
 0x59c   :  { %v6614_v21 = vpop.eup %6613  ;;  %v3299_v46 = vmul.f32 %v6612_v14, %v6606_v48  ;;  %v8007_v48 = vld [vmem:[#allocation5 + $0xcc] ss:$16 sps:$4 sm:$0xff]   ;;  %v8016_v14 = vld [vmem:[#allocation5 + $0xe8] ss:$16 sps:$4 sm:$0xff]  }
 0x59d   :  { %v6616_v54 = vpop.eup %6615  ;;  %v3297_v55 = vmul.f32 %v6614_v21, %v7857_v35 }
 0x59e   :  { %v6618_v56 = vpop.eup %6617  ;;  %v3292_v3 = vadd.f32 1.0, %v6616_v54 }
 0x59f   :  { %v7943_v57 = vadd.f32 %v3299_v46, %v3297_v55  ;;  %v3300_v52 = vmul.f32 %v6618_v56, %v6610_v51  ;;  %v6620_v49 = vpop.eup %6619  ;;  %v8013_v51 = vld [vmem:[#allocation5 + $0xec] ss:$16 sps:$4 sm:$0xff]  }
 0x5a0   :  { %v3298_v22 = vmul.f32 %v6620_v49, %v7861_v44  ;;  %v6622_v13 = vpop.eup %6621  ;;  %v7972_v44 = vld [vmem:[#allocation5 + $0xc] ss:$16 sps:$4 sm:$0xff]  }
 0x5a1   :  { %6623 = vtanh.f32 %v7943_v57  ;;  %3898 = vmatprep.subr.bf16.mxu1 %v7972_v44 }
 0x5a2   :  { %v7947_v24 = vadd.f32 %v3300_v52, %v3298_v22  ;;  %6625 = vrcp.f32 %v3292_v3 }
 0x5a4   :  { %6627 = vtanh.f32 %v7947_v24 }
 0x5ab   :  { %v6624_v6 = vpop.eup %6623 }
 0x5ac   :  { %v6626_v35 = vpop.eup %6625  ;;  %v3305_v15 = vmul.f32 %v6624_v6, %v6622_v13 }
 0x5ae   :  { %v6628_v10 = vpop.eup %6627 }
 0x5af   :  { %v3306_v17 = vmul.f32 %v6628_v10, %v6626_v35 }
 0x5b1   :  { %v7950_v25 = vpack.c.bf16 %v3306_v17, %v3305_v15 }
 0x5b3   :  { %8365 = vst [vmem:[#allocation12_spill] sm:$0xff] %v7950_v25  ;;  %3543 = vmatmul.mubr.bf16.vlgmr.msra.gmra.mrb[16].mxu0 %v7950_v25  ;;  %3586 = vmatmul.mubr.bf16.vlgmr.msra.gmra.mrb[24].mxu1 %v7950_v25 }
 0x5b4   :  { %3856 = vmatpush1.bf16.msra.mxu0 %v7887_v58  ;;  %3887 = vmatprep.mubr.bf16.mxu0 %v8364_v18 }
 0x5b5   :  { %3857 = vmatprep.subr.bf16.mxu0 %v7891_v59  ;;  %3930 = vmatprep.mubr.bf16.mxu1 %v8364_v18 }
 0x5b6   :  { %3899 = vmatpush1.bf16.msra.mxu1 %v7974_v8 }
 0x5b7   :  { %3900 = vmatprep.subr.bf16.mxu1 %v7978_v28 }
 0x5b8   :  { %3858 = vmatpush1.bf16.msra.mxu0 %v7893_v26 }
 0x5b9   :  { %3859 = vmatprep.subr.bf16.mxu0 %v7897_v20 }
 0x5ba   :  { %3901 = vmatpush1.bf16.msra.mxu1 %v7980_v29 }
 0x5bb   :  { %3902 = vmatprep.subr.bf16.mxu1 %v7984_v33 }
 0x5bc   :  { %3860 = vmatpush1.bf16.msra.mxu0 %v7899_v27 }
 0x5bd   :  { %3861 = vmatprep.subr.bf16.mxu0 %v7903_v32 }
 0x5be   :  { %3903 = vmatpush1.bf16.msra.mxu1 %v7986_v36 }
 0x5bf   :  { %3904 = vmatprep.subr.bf16.mxu1 %v7990_v37 }
 0x5c0   :  { %3862 = vmatpush1.bf16.msra.mxu0 %v7905_v34 }
 0x5c1   :  { %3863 = vmatprep.subr.bf16.mxu0 %v7909_v60 }
 0x5c2   :  { %3905 = vmatpush1.bf16.msra.mxu1 %v7992_v41 }
 0x5c3   :  { %3906 = vmatprep.subr.bf16.mxu1 %v7996_v42 }
 0x5c4   :  { %3864 = vmatpush1.bf16.msra.mxu0 %v7911_v61 }
 0x5c5   :  { %3865 = vmatprep.subr.bf16.mxu0 %v7913_v62 }
 0x5c6   :  { %3907 = vmatpush1.bf16.msra.mxu1 %v7998_v16 }
 0x5c7   :  { %3908 = vmatprep.subr.bf16.mxu1 %v8000_v47 }
 0x5c8   :  { %3866 = vmatpush1.bf16.msra.mxu0 %v7917_v63 }
 0x5c9   :  { %3867 = vmatprep.subr.bf16.mxu0 %v7920_v0 }
 0x5ca   :  { %3909 = vmatpush1.bf16.msra.mxu1 %v8004_v5 }
 0x5cb   :  { %3910 = vmatprep.subr.bf16.mxu1 %v8007_v48 }
 0x5cc   :  { %3868 = vmatpush1.bf16.msra.mxu0 %v7923_v1 }
 0x5cd   :  { %3869 = vmatprep.subr.bf16.mxu0 %v7926_v2 }
 0x5ce   :  { %3911 = vmatpush1.bf16.msra.mxu1 %v8010_v50 }
 0x5cf   :  { %3912 = vmatprep.subr.bf16.mxu1 %v8013_v51 }
 0x5d0   :  { %3870 = vmatpush1.bf16.msra.mxu0 %v7929_v19 }
 0x5d1   :  { %4200 = vmatprep.subr.bf16.mxu0 %v7885_v4 }
 0x5d2   :  { %3913 = vmatpush1.bf16.msra.mxu1 %v8016_v14 }
 0x5d3   :  { %4243 = vmatprep.subr.bf16.mxu1 %v7972_v44 }
 0x686   :  { %v3544_v21 = vpop.f32.mrb[16].mxu0  ;;  %v3587_v46 = vpop.f32.mrb[24].mxu1 }
 0x687   :  { %v5951_v54 = vadd.f32 %v3544_v21, %v7777_v30  ;;  %v3546_v55 = vpop.f32.mrb[17].mxu0  ;;  %v3589_v56 = vpop.f32.mrb[25].mxu1 }
 0x688   :  { %v5952_v43 = vadd.f32 %v3546_v55, %v7779_v39  ;;  %v3548_v52 = vpop.f32.mrb[18].mxu0  ;;  %v3591_v49 = vpop.f32.mrb[26].mxu1  ;;  %v5984_v21 = vadd.f32 %v3589_v56, %v7795_v31  ;;  %v5983_v55 = vadd.f32 %v3587_v46, %v7793_v23 }
 0x689   :  { %v5753_v3 = vmul.f32 -1.442695, %v5951_v54  ;;  %v5953_v22 = vadd.f32 %v3548_v52, %v7781_v45  ;;  %v3550_v13 = vpop.f32.mrb[19].mxu0  ;;  %v3593_v6 = vpop.f32.mrb[27].mxu1  ;;  %v5985_v52 = vadd.f32 %v3591_v49, %v7797_v7 }
 0x68a   :  { %v5755_v35 = vmul.f32 -1.442695, %v5952_v43  ;;  %v5954_v10 = vadd.f32 %v3550_v13, %v7784_v53  ;;  %v5757_v40 = vmul.f32 -1.442695, %v5984_v21  ;;  %v5986_v54 = vadd.f32 %v3593_v6, %v7800_v11 }
 0x68b   :  { %6629 = vpow2.f32 %v5753_v3  ;;  %v5754_v15 = vmul.f32 -1.442695, %v5953_v22 }
 0x68c   :  { %6631 = vpow2.f32 %v5755_v35  ;;  %v5756_v17 = vmul.f32 -1.442695, %v5954_v10  ;;  %v5758_v3 = vmul.f32 -1.442695, %v5986_v54 }
 0x68d   :  { %6633 = vpow2.f32 %v5754_v15 }
 0x68e   :  { %6635 = vpow2.f32 %v5756_v17 }
 0x68f   :  { %6637 = vtanh.f32 %v5983_v55 }
 0x690   :  { %6639 = vpow2.f32 %v5757_v40 }
 0x691   :  { %6641 = vtanh.f32 %v5985_v52 }
 0x695   :  { %v6630_v38 = vpop.eup %6629 }
 0x696   :  { %v6632_v43 = vpop.eup %6631  ;;  %v3610_v25 = vadd.f32 1.0, %v6630_v38 }
 0x697   :  { %v3622_v22 = vadd.f32 1.0, %v6632_v43  ;;  %v6634_v13 = vpop.eup %6633 }
 0x698   :  { %6643 = vrcp.f32 %v3610_v25  ;;  %v3611_v56 = vadd.f32 1.0, %v6634_v13  ;;  %v6636_v35 = vpop.eup %6635 }
 0x699   :  { %6645 = vrcp.f32 %v3622_v22  ;;  %v3623_v46 = vadd.f32 1.0, %v6636_v35  ;;  %v6638_v6 = vpop.eup %6637 }
 0x69a   :  { %6647 = vpow2.f32 %v5758_v3  ;;  %v6640_v10 = vpop.eup %6639 }
 0x69b   :  { %6649 = vrcp.f32 %v3611_v56  ;;  %v6642_v49 = vpop.eup %6641  ;;  %v3636_v54 = vadd.f32 1.0, %v6640_v10 }
 0x69c   :  { %6651 = vrcp.f32 %v3623_v46 }
 0x69d   :  { %6653 = vrcp.f32 %v3636_v54 }
 0x6a2   :  { %v6644_v15 = vpop.eup %6643 }
 0x6a3   :  { %v6646_v17 = vpop.eup %6645  ;;  %v3644_v21 = vmul.f32 %v6644_v15, %v6638_v6 }
 0x6a4   :  { %v6648_v38 = vpop.eup %6647  ;;  %v3642_v40 = vmul.f32 %v6646_v17, %v7943_v57 }
 0x6a5   :  { %v6650_v55 = vpop.eup %6649  ;;  %v3637_v22 = vadd.f32 1.0, %v6648_v38 }
 0x6a6   :  { %v8030_v52 = vadd.f32 %v3644_v21, %v3642_v40  ;;  %v3645_v25 = vmul.f32 %v6650_v55, %v6642_v49  ;;  %v6652_v43 = vpop.eup %6651 }
 0x6a7   :  { %v3643_v3 = vmul.f32 %v6652_v43, %v7947_v24  ;;  %v6654_v56 = vpop.eup %6653 }
 0x6a8   :  { %6655 = vtanh.f32 %v8030_v52 }
 0x6a9   :  { %v8034_v13 = vadd.f32 %v3645_v25, %v3643_v3  ;;  %6657 = vrcp.f32 %v3637_v22 }
 0x6ab   :  { %6659 = vtanh.f32 %v8034_v13 }
 0x6b2   :  { %v6656_v35 = vpop.eup %6655 }
 0x6b3   :  { %v6658_v57 = vpop.eup %6657  ;;  %v3650_v6 = vmul.f32 %v6656_v35, %v6654_v56 }
 0x6b5   :  { %v6660_v46 = vpop.eup %6659 }
 0x6b6   :  { %v3651_v10 = vmul.f32 %v6660_v46, %v6658_v57 }
 0x6b8   :  { %v8037_v15 = vpack.c.bf16 %v3651_v10, %v3650_v6 }
 0x6ba   :  { %3888 = vmatmul.mubr.bf16.vlgmr.msra.gmra.mrb[20].mxu0 %v8037_v15  ;;  %3931 = vmatmul.mubr.bf16.vlgmr.msra.gmra.mrb[28].mxu1 %v8037_v15 }
 0x6bb   :  { %4201 = vmatpush1.bf16.msra.mxu0 %v7887_v58  ;;  %4244 = vmatpush1.bf16.msra.mxu1 %v7974_v8 }
 0x6bc   :  { %4202 = vmatprep.subr.bf16.mxu0 %v7891_v59  ;;  %4245 = vmatprep.subr.bf16.mxu1 %v7978_v28 }
 0x6bd   :  { %4232 = vmatprep.mubr.bf16.mxu0 %v8364_v18  ;;  %4275 = vmatprep.mubr.bf16.mxu1 %v8364_v18 }
 0x6bf   :  { %4203 = vmatpush1.bf16.msra.mxu0 %v7893_v26  ;;  %4246 = vmatpush1.bf16.msra.mxu1 %v7980_v29 }
 0x6c0   :  { %4204 = vmatprep.subr.bf16.mxu0 %v7897_v20  ;;  %4247 = vmatprep.subr.bf16.mxu1 %v7984_v33 }
 0x6c3   :  { %4205 = vmatpush1.bf16.msra.mxu0 %v7899_v27  ;;  %4248 = vmatpush1.bf16.msra.mxu1 %v7986_v36 }
 0x6c4   :  { %4206 = vmatprep.subr.bf16.mxu0 %v7903_v32  ;;  %4249 = vmatprep.subr.bf16.mxu1 %v7990_v37 }
 0x6c7   :  { %4207 = vmatpush1.bf16.msra.mxu0 %v7905_v34  ;;  %4250 = vmatpush1.bf16.msra.mxu1 %v7992_v41 }
 0x6c8   :  { %4208 = vmatprep.subr.bf16.mxu0 %v7909_v60  ;;  %4251 = vmatprep.subr.bf16.mxu1 %v7996_v42 }
 0x6cb   :  { %4209 = vmatpush1.bf16.msra.mxu0 %v7911_v61  ;;  %4252 = vmatpush1.bf16.msra.mxu1 %v7998_v16 }
 0x6cc   :  { %4210 = vmatprep.subr.bf16.mxu0 %v7913_v62  ;;  %4253 = vmatprep.subr.bf16.mxu1 %v8000_v47 }
 0x6cf   :  { %4211 = vmatpush1.bf16.msra.mxu0 %v7917_v63  ;;  %4254 = vmatpush1.bf16.msra.mxu1 %v8004_v5 }
 0x6d0   :  { %4212 = vmatprep.subr.bf16.mxu0 %v7920_v0  ;;  %4255 = vmatprep.subr.bf16.mxu1 %v8007_v48 }
 0x6d3   :  { %4213 = vmatpush1.bf16.msra.mxu0 %v7923_v1  ;;  %4256 = vmatpush1.bf16.msra.mxu1 %v8010_v50 }
 0x6d4   :  { %4214 = vmatprep.subr.bf16.mxu0 %v7926_v2  ;;  %4257 = vmatprep.subr.bf16.mxu1 %v8013_v51 }
 0x6d7   :  { %4215 = vmatpush1.bf16.msra.mxu0 %v7929_v19  ;;  %4258 = vmatpush1.bf16.msra.mxu1 %v8016_v14 }
 0x6d8   :  { %4545 = vmatprep.subr.bf16.mxu0 %v7885_v4  ;;  %4588 = vmatprep.subr.bf16.mxu1 %v7972_v44 }
 0x78d   :  { %v3889_v24 = vpop.f32.mrb[20].mxu0  ;;  %v3932_v49 = vpop.f32.mrb[28].mxu1 }
 0x78e   :  { %v5955_v17 = vadd.f32 %v3889_v24, %v7777_v30  ;;  %v3891_v21 = vpop.f32.mrb[21].mxu0  ;;  %v3934_v38 = vpop.f32.mrb[29].mxu1  ;;  %v5987_v6 = vadd.f32 %v3932_v49, %v7793_v23 }
 0x78f   :  { %v5956_v40 = vadd.f32 %v3891_v21, %v7779_v39  ;;  %v3893_v55 = vpop.f32.mrb[22].mxu0  ;;  %v3936_v54 = vpop.f32.mrb[30].mxu1  ;;  %v5988_v46 = vadd.f32 %v3934_v38, %v7795_v31 }
 0x790   :  { %v5791_v25 = vmul.f32 -1.442695, %v5955_v17  ;;  %v5957_v43 = vadd.f32 %v3893_v55, %v7781_v45  ;;  %v3895_v22 = vpop.f32.mrb[23].mxu0  ;;  %v3938_v3 = vpop.f32.mrb[31].mxu1  ;;  %v5989_v17 = vadd.f32 %v3936_v54, %v7797_v7 }
 0x791   :  { %v5793_v56 = vmul.f32 -1.442695, %v5956_v40  ;;  %v5958_v4 = vadd.f32 %v3895_v22, %v7784_v53  ;;  %v5795_v10 = vmul.f32 -1.442695, %v5988_v46  ;;  %v5990_v24 = vadd.f32 %v3938_v3, %v7800_v11 }
 0x792   :  { %6661 = vpow2.f32 %v5791_v25  ;;  %v5792_v35 = vmul.f32 -1.442695, %v5957_v43 }
 0x793   :  { %6663 = vpow2.f32 %v5793_v56  ;;  %v5794_v57 = vmul.f32 -1.442695, %v5958_v4  ;;  %v5796_v25 = vmul.f32 -1.442695, %v5990_v24 }
 0x794   :  { %6665 = vpow2.f32 %v5792_v35 }
 0x795   :  { %6667 = vpow2.f32 %v5794_v57 }
 0x796   :  { %6669 = vtanh.f32 %v5987_v6 }
 0x797   :  { %6671 = vpow2.f32 %v5795_v10 }
 0x798   :  { %6673 = vtanh.f32 %v5989_v17 }
 0x79c   :  { %v6662_v21 = vpop.eup %6661 }
 0x79d   :  { %v6664_v40 = vpop.eup %6663  ;;  %v3955_v55 = vadd.f32 1.0, %v6662_v21 }
 0x79e   :  { %v3967_v43 = vadd.f32 1.0, %v6664_v40  ;;  %v6666_v22 = vpop.eup %6665 }
 0x79f   :  { %6675 = vrcp.f32 %v3955_v55  ;;  %v3956_v38 = vadd.f32 1.0, %v6666_v22  ;;  %v6668_v56 = vpop.eup %6667 }
 0x7a0   :  { %6677 = vrcp.f32 %v3967_v43  ;;  %v3968_v49 = vadd.f32 1.0, %v6668_v56  ;;  %v6670_v3 = vpop.eup %6669 }
 0x7a1   :  { %6679 = vpow2.f32 %v5796_v25  ;;  %v6672_v4 = vpop.eup %6671 }
 0x7a2   :  { %6681 = vrcp.f32 %v3956_v38  ;;  %v6674_v54 = vpop.eup %6673  ;;  %v3981_v17 = vadd.f32 1.0, %v6672_v4 }
 0x7a3   :  { %6683 = vrcp.f32 %v3968_v49 }
 0x7a4   :  { %6685 = vrcp.f32 %v3981_v17 }
 0x7a9   :  { %v6676_v35 = vpop.eup %6675 }
 0x7aa   :  { %v6678_v57 = vpop.eup %6677  ;;  %v3989_v46 = vmul.f32 %v6676_v35, %v6670_v3 }
 0x7ab   :  { %v6680_v6 = vpop.eup %6679  ;;  %v3987_v10 = vmul.f32 %v6678_v57, %v8030_v52 }
 0x7ac   :  { %v6682_v24 = vpop.eup %6681  ;;  %v3982_v43 = vadd.f32 1.0, %v6680_v6 }
 0x7ad   :  { %v8084_v21 = vadd.f32 %v3989_v46, %v3987_v10  ;;  %v3990_v40 = vmul.f32 %v6682_v24, %v6674_v54  ;;  %v6684_v55 = vpop.eup %6683 }
 0x7ae   :  { %v3988_v25 = vmul.f32 %v6684_v55, %v8034_v13  ;;  %v6686_v38 = vpop.eup %6685 }
 0x7af   :  { %6687 = vtanh.f32 %v8084_v21 }
 0x7b0   :  { %v8088_v22 = vadd.f32 %v3990_v40, %v3988_v25  ;;  %6689 = vrcp.f32 %v3982_v43 }
 0x7b2   :  { %6691 = vtanh.f32 %v8088_v22 }
 0x7b9   :  { %v6688_v56 = vpop.eup %6687 }
 0x7ba   :  { %v6690_v52 = vpop.eup %6689  ;;  %v3995_v3 = vmul.f32 %v6688_v56, %v6686_v38 }
 0x7bc   :  { %v6692_v49 = vpop.eup %6691 }
 0x7bd   :  { %v3996_v4 = vmul.f32 %v6692_v49, %v6690_v52 }
 0x7bf   :  { %v8091_v35 = vpack.c.bf16 %v3996_v4, %v3995_v3 }
 0x7c1   :  { %4233 = vmatmul.mubr.bf16.vlgmr.msra.gmra.mrb[24].mxu0 %v8091_v35  ;;  %4276 = vmatmul.mubr.bf16.vlgmr.msra.gmra.mrb[32].mxu1 %v8091_v35 }
 0x7c2   :  { %4546 = vmatpush1.bf16.msra.mxu0 %v7887_v58  ;;  %4589 = vmatpush1.bf16.msra.mxu1 %v7974_v8 }
 0x7c3   :  { %4547 = vmatprep.subr.bf16.mxu0 %v7891_v59  ;;  %4590 = vmatprep.subr.bf16.mxu1 %v7978_v28 }
 0x7c4   :  { %4577 = vmatprep.mubr.bf16.mxu0 %v8364_v18  ;;  %4620 = vmatprep.mubr.bf16.mxu1 %v8364_v18 }
 0x7c6   :  { %4548 = vmatpush1.bf16.msra.mxu0 %v7893_v26  ;;  %4591 = vmatpush1.bf16.msra.mxu1 %v7980_v29 }
 0x7c7   :  { %4549 = vmatprep.subr.bf16.mxu0 %v7897_v20  ;;  %4592 = vmatprep.subr.bf16.mxu1 %v7984_v33 }
 0x7ca   :  { %4550 = vmatpush1.bf16.msra.mxu0 %v7899_v27  ;;  %4593 = vmatpush1.bf16.msra.mxu1 %v7986_v36 }
 0x7cb   :  { %4551 = vmatprep.subr.bf16.mxu0 %v7903_v32  ;;  %4594 = vmatprep.subr.bf16.mxu1 %v7990_v37 }
 0x7ce   :  { %4552 = vmatpush1.bf16.msra.mxu0 %v7905_v34  ;;  %4595 = vmatpush1.bf16.msra.mxu1 %v7992_v41 }
 0x7cf   :  { %4553 = vmatprep.subr.bf16.mxu0 %v7909_v60  ;;  %4596 = vmatprep.subr.bf16.mxu1 %v7996_v42 }
 0x7d2   :  { %4554 = vmatpush1.bf16.msra.mxu0 %v7911_v61  ;;  %4597 = vmatpush1.bf16.msra.mxu1 %v7998_v16 }
 0x7d3   :  { %4555 = vmatprep.subr.bf16.mxu0 %v7913_v62  ;;  %4598 = vmatprep.subr.bf16.mxu1 %v8000_v47 }
 0x7d6   :  { %4556 = vmatpush1.bf16.msra.mxu0 %v7917_v63  ;;  %4599 = vmatpush1.bf16.msra.mxu1 %v8004_v5 }
 0x7d7   :  { %4557 = vmatprep.subr.bf16.mxu0 %v7920_v0  ;;  %4600 = vmatprep.subr.bf16.mxu1 %v8007_v48 }
 0x7da   :  { %4558 = vmatpush1.bf16.msra.mxu0 %v7923_v1  ;;  %4601 = vmatpush1.bf16.msra.mxu1 %v8010_v50 }
 0x7db   :  { %4559 = vmatprep.subr.bf16.mxu0 %v7926_v2  ;;  %4602 = vmatprep.subr.bf16.mxu1 %v8013_v51 }
 0x7de   :  { %4560 = vmatpush1.bf16.msra.mxu0 %v7929_v19  ;;  %4603 = vmatpush1.bf16.msra.mxu1 %v8016_v14 }
 0x7df   :  { %4933 = vmatprep.subr.bf16.mxu1 %v7972_v44 }
 0x894   :  { %v4234_v58 = vpop.f32.mrb[24].mxu0  ;;  %v4277_v59 = vpop.f32.mrb[32].mxu1 }
 0x895   :  { %v5959_v26 = vadd.f32 %v4234_v58, %v7777_v30  ;;  %v4236_v20 = vpop.f32.mrb[25].mxu0  ;;  %v4279_v27 = vpop.f32.mrb[33].mxu1  ;;  %v5991_v54 = vadd.f32 %v4277_v59, %v7793_v23 }
 0x896   :  { %v5960_v32 = vadd.f32 %v4236_v20, %v7779_v39  ;;  %v4238_v34 = vpop.f32.mrb[26].mxu0  ;;  %v4281_v60 = vpop.f32.mrb[34].mxu1  ;;  %v5992_v13 = vadd.f32 %v4279_v27, %v7795_v31 }
 0x897   :  { %v5829_v61 = vmul.f32 -1.442695, %v5959_v26  ;;  %v5961_v62 = vadd.f32 %v4238_v34, %v7781_v45  ;;  %v4240_v63 = vpop.f32.mrb[27].mxu0  ;;  %v4283_v0 = vpop.f32.mrb[35].mxu1  ;;  %v5993_v6 = vadd.f32 %v4281_v60, %v7797_v7 }
 0x898   :  { %v5831_v1 = vmul.f32 -1.442695, %v5960_v32  ;;  %v5962_v2 = vadd.f32 %v4240_v63, %v7784_v53  ;;  %v5833_v57 = vmul.f32 -1.442695, %v5992_v13  ;;  %v5994_v46 = vadd.f32 %v4283_v0, %v7800_v11 }
 0x899   :  { %6693 = vpow2.f32 %v5829_v61  ;;  %v5830_v19 = vmul.f32 -1.442695, %v5961_v62 }
 0x89a   :  { %6695 = vpow2.f32 %v5831_v1  ;;  %v5832_v44 = vmul.f32 -1.442695, %v5962_v2  ;;  %v5834_v40 = vmul.f32 -1.442695, %v5994_v46 }
 0x89b   :  { %6697 = vpow2.f32 %v5830_v19 }
 0x89c   :  { %6699 = vpow2.f32 %v5832_v44 }
 0x89d   :  { %6701 = vtanh.f32 %v5991_v54 }
 0x89e   :  { %6703 = vpow2.f32 %v5833_v57  ;;  %v6511_v57 = vld [vmem:[#allocation7 + $0x4] ss:$8 sps:$4 sm:$0xff]  }
 0x89f   :  { %6705 = vtanh.f32 %v5993_v6 }
 0x8a3   :  { %v6694_v10 = vpop.eup %6693 }
 0x8a4   :  { %v6696_v24 = vpop.eup %6695  ;;  %v4300_v17 = vadd.f32 1.0, %v6694_v10 }
 0x8a5   :  { %v4312_v55 = vadd.f32 1.0, %v6696_v24  ;;  %v6698_v43 = vpop.eup %6697 }
 0x8a6   :  { %6707 = vrcp.f32 %v4300_v17  ;;  %v4301_v25 = vadd.f32 1.0, %v6698_v43  ;;  %v6700_v38 = vpop.eup %6699 }
 0x8a7   :  { %6709 = vrcp.f32 %v4312_v55  ;;  %v4313_v56 = vadd.f32 1.0, %v6700_v38  ;;  %v6702_v52 = vpop.eup %6701 }
 0x8a8   :  { %6711 = vpow2.f32 %v5834_v40  ;;  %v6704_v49 = vpop.eup %6703 }
 0x8a9   :  { %6713 = vrcp.f32 %v4301_v25  ;;  %v6706_v3 = vpop.eup %6705  ;;  %v4326_v32 = vadd.f32 1.0, %v6704_v49 }
 0x8aa   :  { %6715 = vrcp.f32 %v4313_v56 }
 0x8ab   :  { %6717 = vrcp.f32 %v4326_v32 }
 0x8b0   :  { %v6708_v4 = vpop.eup %6707 }
 0x8b1   :  { %v6710_v58 = vpop.eup %6709  ;;  %v4334_v59 = vmul.f32 %v6708_v4, %v6702_v52 }
 0x8b2   :  { %v6712_v26 = vpop.eup %6711  ;;  %v4332_v20 = vmul.f32 %v6710_v58, %v8084_v21 }
 0x8b3   :  { %v6714_v27 = vpop.eup %6713  ;;  %v4327_v62 = vadd.f32 1.0, %v6712_v26 }
 0x8b4   :  { %v8137_v34 = vadd.f32 %v4334_v59, %v4332_v20  ;;  %v4335_v60 = vmul.f32 %v6714_v27, %v6706_v3  ;;  %v6716_v61 = vpop.eup %6715 }
 0x8b5   :  { %v4333_v63 = vmul.f32 %v6716_v61, %v8088_v22  ;;  %v6718_v1 = vpop.eup %6717  ;;  %v6506_v22 = vld [vmem:[#allocation5 + $0xe0] ss:$16 sps:$4 sm:$0xff]  }
 0x8b6   :  { %6719 = vtanh.f32 %v8137_v34 }
 0x8b7   :  { %v8141_v0 = vadd.f32 %v4335_v60, %v4333_v63  ;;  %6721 = vrcp.f32 %v4327_v62 }
 0x8b9   :  { %6723 = vtanh.f32 %v8141_v0 }
 0x8c0   :  { %v6720_v2 = vpop.eup %6719 }
 0x8c1   :  { %v6722_v21 = vpop.eup %6721  ;;  %v4340_v44 = vmul.f32 %v6720_v2, %v6718_v1 }
 0x8c3   :  { %v6724_v19 = vpop.eup %6723 }
 0x8c4   :  { %v4341_v13 = vmul.f32 %v6724_v19, %v6722_v21 }
 0x8c6   :  { %v8144_v54 = vpack.c.bf16 %v4341_v13, %v4340_v44 }
 0x8c8   :  { %4578 = vmatmul.mubr.bf16.vlgmr.msra.gmra.mrb[28].mxu0 %v8144_v54  ;;  %4621 = vmatmul.mubr.bf16.vlgmr.msra.gmra.mrb[36].mxu1 %v8144_v54 }
 0x8c9   :  { %4934 = vmatpush1.bf16.msra.mxu1 %v7974_v8  ;;  %4922 = vmatprep.mubr.bf16.mxu0 %v8364_v18  ;;  %v6487_v8 = vld [vmem:[#allocation5 + $0x4] ss:$16 sps:$4 sm:$0xff]  }
 0x8ca   :  { %4935 = vmatprep.subr.bf16.mxu1 %v7978_v28  ;;  %4965 = vmatprep.mubr.bf16.mxu1 %v8364_v18  ;;  %v6485_v28 = vld [vmem:[#allocation5] ss:$16 sps:$4 sm:$0xff]  }
 0x8cb   :  { %4890 = vmatprep.subr.bf16.mxu0 %v6487_v8 }
 0x8cc   :  { %4891 = vmatpush1.bf16.msra.mxu0 %v6485_v28 }
 0x8cd   :  { %4936 = vmatpush1.bf16.msra.mxu1 %v7980_v29  ;;  %v6490_v29 = vld [vmem:[#allocation5 + $0x24] ss:$16 sps:$4 sm:$0xff]  }
 0x8ce   :  { %4937 = vmatprep.subr.bf16.mxu1 %v7984_v33  ;;  %v6488_v33 = vld [vmem:[#allocation5 + $0x20] ss:$16 sps:$4 sm:$0xff]   ;;  %4892 = vmatprep.subr.bf16.mxu0 %v6490_v29 }
 0x8d0   :  { %4893 = vmatpush1.bf16.msra.mxu0 %v6488_v33 }
 0x8d1   :  { %4938 = vmatpush1.bf16.msra.mxu1 %v7986_v36  ;;  %v6493_v36 = vld [vmem:[#allocation5 + $0x44] ss:$16 sps:$4 sm:$0xff]  }
 0x8d2   :  { %4939 = vmatprep.subr.bf16.mxu1 %v7990_v37  ;;  %v6491_v37 = vld [vmem:[#allocation5 + $0x40] ss:$16 sps:$4 sm:$0xff]   ;;  %4894 = vmatprep.subr.bf16.mxu0 %v6493_v36 }
 0x8d4   :  { %4895 = vmatpush1.bf16.msra.mxu0 %v6491_v37 }
 0x8d5   :  { %4940 = vmatpush1.bf16.msra.mxu1 %v7992_v41  ;;  %v6496_v41 = vld [vmem:[#allocation5 + $0x64] ss:$16 sps:$4 sm:$0xff]  }
 0x8d6   :  { %4941 = vmatprep.subr.bf16.mxu1 %v7996_v42  ;;  %v6494_v42 = vld [vmem:[#allocation5 + $0x60] ss:$16 sps:$4 sm:$0xff]   ;;  %4896 = vmatprep.subr.bf16.mxu0 %v6496_v41 }
 0x8d8   :  { %4897 = vmatpush1.bf16.msra.mxu0 %v6494_v42 }
 0x8d9   :  { %4942 = vmatpush1.bf16.msra.mxu1 %v7998_v16  ;;  %v6499_v16 = vld [vmem:[#allocation5 + $0x84] ss:$16 sps:$4 sm:$0xff]  }
 0x8da   :  { %4943 = vmatprep.subr.bf16.mxu1 %v8000_v47  ;;  %v6497_v47 = vld [vmem:[#allocation5 + $0x80] ss:$16 sps:$4 sm:$0xff]   ;;  %4898 = vmatprep.subr.bf16.mxu0 %v6499_v16 }
 0x8dc   :  { %4899 = vmatpush1.bf16.msra.mxu0 %v6497_v47 }
 0x8dd   :  { %4944 = vmatpush1.bf16.msra.mxu1 %v8004_v5  ;;  %v6502_v5 = vld [vmem:[#allocation5 + $0xa4] ss:$16 sps:$4 sm:$0xff]  }
 0x8de   :  { %4945 = vmatprep.subr.bf16.mxu1 %v8007_v48  ;;  %v6500_v48 = vld [vmem:[#allocation5 + $0xa0] ss:$16 sps:$4 sm:$0xff]   ;;  %4900 = vmatprep.subr.bf16.mxu0 %v6502_v5 }
 0x8e0   :  { %4901 = vmatpush1.bf16.msra.mxu0 %v6500_v48 }
 0x8e1   :  { %4946 = vmatpush1.bf16.msra.mxu1 %v8010_v50  ;;  %v6505_v50 = vld [vmem:[#allocation5 + $0xc4] ss:$16 sps:$4 sm:$0xff]  }
 0x8e2   :  { %4947 = vmatprep.subr.bf16.mxu1 %v8013_v51  ;;  %v6503_v51 = vld [vmem:[#allocation5 + $0xc0] ss:$16 sps:$4 sm:$0xff]   ;;  %4902 = vmatprep.subr.bf16.mxu0 %v6505_v50 }
 0x8e4   :  { %4903 = vmatpush1.bf16.msra.mxu0 %v6503_v51 }
 0x8e5   :  { %4948 = vmatpush1.bf16.msra.mxu1 %v8016_v14  ;;  %v6508_v14 = vld [vmem:[#allocation5 + $0xe4] ss:$16 sps:$4 sm:$0xff]  }
 0x8e6   :  { %4904 = vmatprep.subr.bf16.mxu0 %v6508_v14 }
 0x8e8   :  { %4905 = vmatpush1.bf16.msra.mxu0 %v6506_v22 }
 0x8e9   :  { %5166 = vmatprep.subr.bf16.mxu0 %v6511_v57 }
 0x99b   :  { %v4579_v46 = vpop.f32.mrb[28].mxu0  ;;  %v4622_v6 = vpop.f32.mrb[36].mxu1 }
 0x99c   :  { %v5963_v10 = vadd.f32 %v4579_v46, %v7777_v30  ;;  %v4581_v24 = vpop.f32.mrb[29].mxu0  ;;  %v4624_v17 = vpop.f32.mrb[37].mxu1  ;;  %v5995_v26 = vadd.f32 %v4622_v6, %v7793_v23 }
 0x99d   :  { %v5964_v40 = vadd.f32 %v4581_v24, %v7779_v39  ;;  %v4583_v55 = vpop.f32.mrb[30].mxu0  ;;  %v4626_v43 = vpop.f32.mrb[38].mxu1  ;;  %v5996_v59 = vadd.f32 %v4624_v17, %v7795_v31  ;;  %v6509_v24 = vld [vmem:[#allocation7] ss:$8 sps:$4 sm:$0xff]  }
 0x99e   :  { %v5867_v25 = vmul.f32 -1.442695, %v5963_v10  ;;  %v5965_v38 = vadd.f32 %v4583_v55, %v7781_v45  ;;  %v4585_v56 = vpop.f32.mrb[31].mxu0  ;;  %v4628_v52 = vpop.f32.mrb[39].mxu1  ;;  %v5997_v32 = vadd.f32 %v4626_v43, %v7797_v7  ;;  %v6517_v55 = vld [vmem:[#allocation7 + $0x24] ss:$8 sps:$4 sm:$0xff]  }
 0x99f   :  { %v5869_v49 = vmul.f32 -1.442695, %v5964_v40  ;;  %v5966_v3 = vadd.f32 %v4585_v56, %v7784_v53  ;;  %v5871_v20 = vmul.f32 -1.442695, %v5996_v59  ;;  %v5998_v27 = vadd.f32 %v4628_v52, %v7800_v11  ;;  %v6514_v40 = vld [vmem:[#allocation7 + $0x14] ss:$8 sps:$4 sm:$0xff]  }
 0x9a0   :  { %6725 = vpow2.f32 %v5867_v25  ;;  %v5868_v4 = vmul.f32 -1.442695, %v5965_v38  ;;  %v6515_v43 = vld [vmem:[#allocation7 + $0x20] ss:$8 sps:$4 sm:$0xff]   ;;  %v6520_v25 = vld [vmem:[#allocation7 + $0x34] ss:$8 sps:$4 sm:$0xff]  }
 0x9a1   :  { %6727 = vpow2.f32 %v5869_v49  ;;  %v5870_v58 = vmul.f32 -1.442695, %v5966_v3  ;;  %v5872_v63 = vmul.f32 -1.442695, %v5998_v27  ;;  %v6518_v38 = vld [vmem:[#allocation7 + $0x30] ss:$8 sps:$4 sm:$0xff]  }
 0x9a2   :  { %6729 = vpow2.f32 %v5868_v4  ;;  %v6523_v56 = vld [vmem:[#allocation7 + $0x44] ss:$8 sps:$4 sm:$0xff]   ;;  %v6521_v52 = vld [vmem:[#allocation7 + $0x40] ss:$8 sps:$4 sm:$0xff]   ;;  %v6526_v49 = vld [vmem:[#allocation7 + $0x54] ss:$8 sps:$4 sm:$0xff]  }
 0x9a3   :  { %6731 = vpow2.f32 %v5870_v58  ;;  %v6524_v3 = vld [vmem:[#allocation7 + $0x50] ss:$8 sps:$4 sm:$0xff]   ;;  %v6529_v4 = vld [vmem:[#allocation7 + $0x64] ss:$8 sps:$4 sm:$0xff]   ;;  %v6527_v58 = vld [vmem:[#allocation7 + $0x60] ss:$8 sps:$4 sm:$0xff]  }
 0x9a4   :  { %6733 = vtanh.f32 %v5995_v26  ;;  %v6532_v59 = vld [vmem:[#allocation7 + $0x74] ss:$8 sps:$4 sm:$0xff]   ;;  %v6530_v26 = vld [vmem:[#allocation7 + $0x70] ss:$8 sps:$4 sm:$0xff]  }
 0x9a5   :  { %6735 = vpow2.f32 %v5871_v20  ;;  %v8366_v20 = vld [vmem:[#allocation12_spill] sm:$0xff] }
 0x9a6   :  { %6737 = vtanh.f32 %v5997_v32 }
 0x9aa   :  { %v6726_v60 = vpop.eup %6725 }
 0x9ab   :  { %v6728_v61 = vpop.eup %6727  ;;  %v4645_v62 = vadd.f32 1.0, %v6726_v60 }
 0x9ac   :  { %v4657_v1 = vadd.f32 1.0, %v6728_v61  ;;  %v6730_v2 = vpop.eup %6729 }
 0x9ad   :  { %6739 = vrcp.f32 %v4645_v62  ;;  %v4646_v21 = vadd.f32 1.0, %v6730_v2  ;;  %v6732_v19 = vpop.eup %6731 }
 0x9ae   :  { %6741 = vrcp.f32 %v4657_v1  ;;  %v4658_v44 = vadd.f32 1.0, %v6732_v19  ;;  %v6734_v13 = vpop.eup %6733 }
 0x9af   :  { %6743 = vpow2.f32 %v5872_v63  ;;  %v6736_v8 = vpop.eup %6735 }
 0x9b0   :  { %6745 = vrcp.f32 %v4646_v21  ;;  %v6738_v28 = vpop.eup %6737  ;;  %v4671_v16 = vadd.f32 1.0, %v6736_v8 }
 0x9b1   :  { %6747 = vrcp.f32 %v4658_v44 }
 0x9b2   :  { %6749 = vrcp.f32 %v4671_v16 }
 0x9b7   :  { %v6740_v29 = vpop.eup %6739 }
 0x9b8   :  { %v6742_v33 = vpop.eup %6741  ;;  %v4679_v36 = vmul.f32 %v6740_v29, %v6734_v13 }
 0x9b9   :  { %v6744_v37 = vpop.eup %6743  ;;  %v4677_v41 = vmul.f32 %v6742_v33, %v8137_v34 }
 0x9ba   :  { %v6746_v42 = vpop.eup %6745  ;;  %v4672_v50 = vadd.f32 1.0, %v6744_v37 }
 0x9bb   :  { %v8174_v47 = vadd.f32 %v4679_v36, %v4677_v41  ;;  %v4680_v5 = vmul.f32 %v6746_v42, %v6738_v28  ;;  %v6748_v48 = vpop.eup %6747 }
 0x9bc   :  { %v4678_v51 = vmul.f32 %v6748_v48, %v8141_v0  ;;  %v6750_v22 = vpop.eup %6749  ;;  %v6512_v0 = vld [vmem:[#allocation7 + $0x10] ss:$8 sps:$4 sm:$0xff]   ;;  %v8367_v48 = vld [vmem:[#allocation10_spill] sm:$0xff] }
 0x9bd   :  { %6751 = vtanh.f32 %v8174_v47 }
 0x9be   :  { %v8178_v14 = vadd.f32 %v4680_v5, %v4678_v51  ;;  %6753 = vrcp.f32 %v4672_v50 }
 0x9c0   :  { %6755 = vtanh.f32 %v8178_v14 }
 0x9c7   :  { %v6752_v57 = vpop.eup %6751 }
 0x9c8   :  { %v6754_v34 = vpop.eup %6753  ;;  %v4685_v6 = vmul.f32 %v6752_v57, %v6750_v22 }
 0x9ca   :  { %v6756_v46 = vpop.eup %6755 }
 0x9cb   :  { %v4686_v10 = vmul.f32 %v6756_v46, %v6754_v34  ;;  %v8368_v34 = vld [vmem:[#allocation11_spill] sm:$0xff] }
 0x9cd   :  { %v4697_v17 = vpack.c.bf16 %v4686_v10, %v4685_v6 }
 0x9cf   :  { %4923 = vmatmul.mubr.bf16.vlgmr.msra.gmra.mrb[32].mxu0 %v4697_v17  ;;  %4966 = vmatmul.mubr.bf16.vlgmr.msra.gmra.mrb[40].mxu1 %v4697_v17 }
 0x9d0   :  { %5167 = vmatpush1.bf16.msra.mxu0 %v6509_v24  ;;  %5198 = vmatprep.mubr.bf16.mxu0 %v8364_v18 }
 0x9d1   :  { %5168 = vmatprep.subr.bf16.mxu0 %v6514_v40 }
 0x9d4   :  { %5169 = vmatpush1.bf16.msra.mxu0 %v6512_v0 }
 0x9d5   :  { %5170 = vmatprep.subr.bf16.mxu0 %v6517_v55 }
 0x9d8   :  { %5171 = vmatpush1.bf16.msra.mxu0 %v6515_v43 }
 0x9d9   :  { %5172 = vmatprep.subr.bf16.mxu0 %v6520_v25 }
 0x9dc   :  { %5173 = vmatpush1.bf16.msra.mxu0 %v6518_v38 }
 0x9dd   :  { %5174 = vmatprep.subr.bf16.mxu0 %v6523_v56 }
 0x9e0   :  { %5175 = vmatpush1.bf16.msra.mxu0 %v6521_v52 }
 0x9e1   :  { %5176 = vmatprep.subr.bf16.mxu0 %v6526_v49 }
 0x9e4   :  { %5177 = vmatpush1.bf16.msra.mxu0 %v6524_v3 }
 0x9e5   :  { %5178 = vmatprep.subr.bf16.mxu0 %v6529_v4 }
 0x9e8   :  { %5179 = vmatpush1.bf16.msra.mxu0 %v6527_v58 }
 0x9e9   :  { %5180 = vmatprep.subr.bf16.mxu0 %v6532_v59 }
 0x9ec   :  { %5181 = vmatpush1.bf16.msra.mxu0 %v6530_v26 }
 0x9ef   :  { %5199 = vmatmul.mubr.bf16.vlgmr.msra.gmra.mrb[36].mxu0 %v7811_v12 }
 0x9f0   :  { %5208 = vmatprep.mubr.bf16.mxu0 %v8364_v18 }
 0x9f7   :  { %5209 = vmatmul.mubr.bf16.gmra.mrb[40].mxu0 %v7864_v9 }
 0x9f8   :  { %5218 = vmatprep.mubr.bf16.mxu0 %v8364_v18 }
 0x9ff   :  { %5219 = vmatmul.mubr.bf16.gmra.mrb[44].mxu0 %v8366_v20 }
 0xa00   :  { %5228 = vmatprep.mubr.bf16.mxu0 %v8364_v18 }
 0xa07   :  { %5229 = vmatmul.mubr.bf16.gmra.mrb[48].mxu0 %v8037_v15 }
 0xa08   :  { %5238 = vmatprep.mubr.bf16.mxu0 %v8364_v18 }
 0xa0f   :  { %5239 = vmatmul.mubr.bf16.gmra.mrb[52].mxu0 %v8091_v35 }
 0xa10   :  { %5248 = vmatprep.mubr.bf16.mxu0 %v8364_v18 }
 0xa17   :  { %5249 = vmatmul.mubr.bf16.gmra.mrb[56].mxu0 %v8144_v54 }
 0xa18   :  { %5258 = vmatprep.mubr.bf16.mxu0 %v8364_v18 }
 0xa1f   :  { %5259 = vmatmul.mubr.bf16.gmra.mrb[60].mxu0 %v4697_v17 }
 0xa20   :  { %5268 = vmatprep.mubr.bf16.mxu0 %v8364_v18 }
 0xaa2   :  { %v4924_v12 = vpop.f32.mrb[32].mxu0  ;;  %v4967_v9 = vpop.f32.mrb[40].mxu1 }
 0xaa3   :  { %v5967_v27 = vadd.f32 %v4924_v12, %v7777_v30  ;;  %v4926_v32 = vpop.f32.mrb[33].mxu0  ;;  %v4969_v60 = vpop.f32.mrb[41].mxu1 }
 0xaa4   :  { %v5968_v15 = vadd.f32 %v4926_v32, %v7779_v39  ;;  %v4928_v61 = vpop.f32.mrb[34].mxu0  ;;  %v4971_v62 = vpop.f32.mrb[42].mxu1  ;;  %v6000_v30 = vadd.f32 %v4969_v60, %v7795_v31  ;;  %v5999_v39 = vadd.f32 %v4967_v9, %v7793_v23 }
 0xaa5   :  { %v5905_v35 = vmul.f32 -1.442695, %v5967_v27  ;;  %v5969_v63 = vadd.f32 %v4928_v61, %v7781_v45  ;;  %v4930_v1 = vpop.f32.mrb[35].mxu0  ;;  %v4973_v54 = vpop.f32.mrb[43].mxu1  ;;  %v6001_v45 = vadd.f32 %v4971_v62, %v7797_v7  ;;  %v5074_v7 = vld [vmem:[%s8351_s9] sm:$0x3] }
 0xaa6   :  { %v5907_v2 = vmul.f32 -1.442695, %v5968_v15  ;;  %v5970_v21 = vadd.f32 %v4930_v1, %v7784_v53  ;;  %v5909_v44 = vmul.f32 -1.442695, %v6000_v30  ;;  %v6002_v13 = vadd.f32 %v4973_v54, %v7800_v11 }
 0xaa7   :  { %6757 = vpow2.f32 %v5905_v35  ;;  %v5906_v18 = vmul.f32 -1.442695, %v5969_v63  ;;  %v8207_v50 = vrot.slane %v5074_v7, %v8367_v48  ;;  %v8210_v46 = vrot.slane %v5074_v7, %v8368_v34 }
 0xaa8   :  { %6759 = vpow2.f32 %v5907_v2  ;;  %v5908_v19 = vmul.f32 -1.442695, %v5970_v21  ;;  %v5910_v53 = vmul.f32 -1.442695, %v6002_v13 }
 0xaa9   :  { %6761 = vpow2.f32 %v5906_v18 }
 0xaaa   :  { %6763 = vpow2.f32 %v5908_v19 }
 0xaab   :  { %6765 = vtanh.f32 %v5999_v39 }
 0xaac   :  { %6767 = vpow2.f32 %v5909_v44 }
 0xaad   :  { %6769 = vtanh.f32 %v6001_v45 }
 0xab1   :  { %v6758_v8 = vpop.eup %6757 }
 0xab2   :  { %v6760_v28 = vpop.eup %6759  ;;  %v4990_v29 = vadd.f32 1.0, %v6758_v8 }
 0xab3   :  { %v5002_v33 = vadd.f32 1.0, %v6760_v28  ;;  %v6762_v36 = vpop.eup %6761 }
 0xab4   :  { %6771 = vrcp.f32 %v4990_v29  ;;  %v4991_v31 = vadd.f32 1.0, %v6762_v36  ;;  %v6764_v37 = vpop.eup %6763 }
 0xab5   :  { %6773 = vrcp.f32 %v5002_v33  ;;  %v5003_v23 = vadd.f32 1.0, %v6764_v37  ;;  %v6766_v11 = vpop.eup %6765 }
 0xab6   :  { %6775 = vpow2.f32 %v5910_v53  ;;  %v6768_v41 = vpop.eup %6767 }
 0xab7   :  { %6777 = vrcp.f32 %v4991_v31  ;;  %v6770_v42 = vpop.eup %6769  ;;  %v5016_v22 = vadd.f32 1.0, %v6768_v41 }
 0xab8   :  { %6779 = vrcp.f32 %v5003_v23 }
 0xab9   :  { %6781 = vrcp.f32 %v5016_v22 }
 0xabe   :  { %v6772_v16 = vpop.eup %6771 }
 0xabf   :  { %v6774_v5 = vpop.eup %6773  ;;  %v5024_v51 = vmul.f32 %v6772_v16, %v6766_v11 }
 0xac0   :  { %v6776_v57 = vpop.eup %6775  ;;  %v5022_v6 = vmul.f32 %v6774_v5, %v8174_v47 }
 0xac1   :  { %v6778_v10 = vpop.eup %6777  ;;  %v5017_v55 = vadd.f32 1.0, %v6776_v57 }
 0xac2   :  { %v5025_v24 = vmul.f32 %v6778_v10, %v6770_v42  ;;  %v5200_v17 = vpop.f32.mrb[36].mxu0  ;;  %v5026_v40 = vadd.f32 %v5024_v51, %v5022_v6  ;;  %v6780_v0 = vpop.eup %6779 }
 0xac3   :  { %v5201_v43 = vadd.f32 %v5200_v17, %v8207_v50  ;;  %v5202_v25 = vpop.f32.mrb[37].mxu0  ;;  %v5023_v38 = vmul.f32 %v6780_v0, %v8178_v14  ;;  %v6782_v12 = vpop.eup %6781 }
 0xac4   :  { %v5203_v56 = vadd.f32 %v5202_v25, %v8210_v46  ;;  %v5204_v52 = vpop.f32.mrb[38].mxu0  ;;  %6783 = vtanh.f32 %v5026_v40 }
 0xac5   :  { %5279 = vst [vmem:[%s8352_s10] sm:$0xff] %v5201_v43  ;;  %v5205_v47 = vadd.f32 %v5204_v52, %v8207_v50  ;;  %v5206_v49 = vpop.f32.mrb[39].mxu0  ;;  %v5027_v4 = vadd.f32 %v5025_v24, %v5023_v38  ;;  %6785 = vrcp.f32 %v5017_v55 }
 0xac6   :  { %5280 = vst [vmem:[%s8352_s10 + $0x8] sm:$0xff] %v5203_v56  ;;  %v5207_v3 = vadd.f32 %v5206_v49, %v8210_v46 }
 0xac7   :  { %5281 = vst [vmem:[%s8352_s10 + $0x80] sm:$0xff] %v5205_v47  ;;  %6787 = vtanh.f32 %v5027_v4 }
 0xac8   :  { %5282 = vst [vmem:[%s8352_s10 + $0x88] sm:$0xff] %v5207_v3 }
 0xaca   :  { %v5210_v14 = vpop.f32.mrb[40].mxu0 }
 0xacb   :  { %v5211_v58 = vadd.f32 %v5210_v14, %v8207_v50  ;;  %v5212_v59 = vpop.f32.mrb[41].mxu0 }
 0xacc   :  { %v5213_v26 = vadd.f32 %v5212_v59, %v8210_v46  ;;  %v5214_v20 = vpop.f32.mrb[42].mxu0 }
 0xacd   :  { %5283 = vst [vmem:[%s8352_s10 + $0x10] sm:$0xff] %v5211_v58  ;;  %v5215_v9 = vadd.f32 %v5214_v20, %v8207_v50  ;;  %v5216_v27 = vpop.f32.mrb[43].mxu0 }
 0xace   :  { %v6784_v32 = vpop.eup %6783  ;;  %5284 = vst [vmem:[%s8352_s10 + $0x18] sm:$0xff] %v5213_v26  ;;  %v5217_v60 = vadd.f32 %v5216_v27, %v8210_v46 }
 0xacf   :  { %5285 = vst [vmem:[%s8352_s10 + $0x90] sm:$0xff] %v5215_v9  ;;  %v5030_v15 = vmul.f32 %v6784_v32, %v6782_v12  ;;  %v6786_v61 = vpop.eup %6785 }
 0xad0   :  { %5286 = vst [vmem:[%s8352_s10 + $0x98] sm:$0xff] %v5217_v60 }
 0xad1   :  { %v6788_v62 = vpop.eup %6787 }
 0xad2   :  { %v5220_v35 = vpop.f32.mrb[44].mxu0  ;;  %v5031_v54 = vmul.f32 %v6788_v62, %v6786_v61 }
 0xad3   :  { %v5221_v63 = vadd.f32 %v5220_v35, %v8207_v50  ;;  %v5222_v1 = vpop.f32.mrb[45].mxu0 }
 0xad4   :  { %v5223_v2 = vadd.f32 %v5222_v1, %v8210_v46  ;;  %v5224_v21 = vpop.f32.mrb[46].mxu0  ;;  %v5057_v30 = vpack.c.bf16 %v5031_v54, %v5030_v15 }
 0xad5   :  { %5287 = vst [vmem:[%s8352_s10 + $0x20] sm:$0xff] %v5221_v63  ;;  %v5225_v18 = vadd.f32 %v5224_v21, %v8207_v50  ;;  %v5226_v19 = vpop.f32.mrb[47].mxu0 }
 0xad6   :  { %5288 = vst [vmem:[%s8352_s10 + $0x28] sm:$0xff] %v5223_v2  ;;  %v5227_v39 = vadd.f32 %v5226_v19, %v8210_v46  ;;  %5269 = vmatmul.mubr.bf16.gmra.mrb[64].mxu0 %v5057_v30 }
 0xad7   :  { %5289 = vst [vmem:[%s8352_s10 + $0xa0] sm:$0xff] %v5225_v18 }
 0xad8   :  { %5290 = vst [vmem:[%s8352_s10 + $0xa8] sm:$0xff] %v5227_v39 }
 0xada   :  { %v5230_v44 = vpop.f32.mrb[48].mxu0 }
 0xadb   :  { %v5231_v13 = vadd.f32 %v5230_v44, %v8207_v50  ;;  %v5232_v45 = vpop.f32.mrb[49].mxu0 }
 0xadc   :  { %v5233_v8 = vadd.f32 %v5232_v45, %v8210_v46  ;;  %v5234_v28 = vpop.f32.mrb[50].mxu0 }
 0xadd   :  { %5291 = vst [vmem:[%s8352_s10 + $0x30] sm:$0xff] %v5231_v13  ;;  %v5235_v29 = vadd.f32 %v5234_v28, %v8207_v50  ;;  %v5236_v53 = vpop.f32.mrb[51].mxu0 }
 0xade   :  { %5292 = vst [vmem:[%s8352_s10 + $0x38] sm:$0xff] %v5233_v8  ;;  %v5237_v33 = vadd.f32 %v5236_v53, %v8210_v46 }
 0xadf   :  { %5293 = vst [vmem:[%s8352_s10 + $0xb0] sm:$0xff] %v5235_v29 }
 0xae0   :  { %5294 = vst [vmem:[%s8352_s10 + $0xb8] sm:$0xff] %v5237_v33 }
 0xae2   :  { %v5240_v36 = vpop.f32.mrb[52].mxu0 }
 0xae3   :  { %v5241_v31 = vadd.f32 %v5240_v36, %v8207_v50  ;;  %v5242_v37 = vpop.f32.mrb[53].mxu0 }
 0xae4   :  { %v5243_v23 = vadd.f32 %v5242_v37, %v8210_v46  ;;  %v5244_v11 = vpop.f32.mrb[54].mxu0 }
 0xae5   :  { %5295 = vst [vmem:[%s8352_s10 + $0x40] sm:$0xff] %v5241_v31  ;;  %v5245_v41 = vadd.f32 %v5244_v11, %v8207_v50  ;;  %v5246_v7 = vpop.f32.mrb[55].mxu0 }
 0xae6   :  { %5296 = vst [vmem:[%s8352_s10 + $0x48] sm:$0xff] %v5243_v23  ;;  %v5247_v42 = vadd.f32 %v5246_v7, %v8210_v46 }
 0xae7   :  { %5297 = vst [vmem:[%s8352_s10 + $0xc0] sm:$0xff] %v5245_v41 }
 0xae8   :  { %5298 = vst [vmem:[%s8352_s10 + $0xc8] sm:$0xff] %v5247_v42 }
 0xaea   :  { %v5250_v16 = vpop.f32.mrb[56].mxu0 }
 0xaeb   :  { %v5251_v5 = vadd.f32 %v5250_v16, %v8207_v50  ;;  %v5252_v48 = vpop.f32.mrb[57].mxu0 }
 0xaec   :  { %v5253_v51 = vadd.f32 %v5252_v48, %v8210_v46  ;;  %v5254_v22 = vpop.f32.mrb[58].mxu0 }
 0xaed   :  { %5299 = vst [vmem:[%s8352_s10 + $0x50] sm:$0xff] %v5251_v5  ;;  %v5255_v57 = vadd.f32 %v5254_v22, %v8207_v50  ;;  %v5256_v34 = vpop.f32.mrb[59].mxu0 }
 0xaee   :  { %5300 = vst [vmem:[%s8352_s10 + $0x58] sm:$0xff] %v5253_v51  ;;  %v5257_v6 = vadd.f32 %v5256_v34, %v8210_v46 }
 0xaef   :  { %5301 = vst [vmem:[%s8352_s10 + $0xd0] sm:$0xff] %v5255_v57 }
 0xaf0   :  { %5302 = vst [vmem:[%s8352_s10 + $0xd8] sm:$0xff] %v5257_v6 }
 0xaf2   :  { %v5260_v10 = vpop.f32.mrb[60].mxu0 }
 0xaf3   :  { %v5261_v24 = vadd.f32 %v5260_v10, %v8207_v50  ;;  %v5262_v17 = vpop.f32.mrb[61].mxu0 }
 0xaf4   :  { %v5263_v40 = vadd.f32 %v5262_v17, %v8210_v46  ;;  %v5264_v0 = vpop.f32.mrb[62].mxu0 }
 0xaf5   :  { %5303 = vst [vmem:[%s8352_s10 + $0x60] sm:$0xff] %v5261_v24  ;;  %v5265_v55 = vadd.f32 %v5264_v0, %v8207_v50  ;;  %v5266_v43 = vpop.f32.mrb[63].mxu0 }
 0xaf6   :  { %5304 = vst [vmem:[%s8352_s10 + $0x68] sm:$0xff] %v5263_v40  ;;  %v5267_v25 = vadd.f32 %v5266_v43, %v8210_v46 }
 0xaf7   :  { %5305 = vst [vmem:[%s8352_s10 + $0xe0] sm:$0xff] %v5265_v55 }
 0xaf8   :  { %5306 = vst [vmem:[%s8352_s10 + $0xe8] sm:$0xff] %v5267_v25 }
 0xba9   :  { %v5270_v38 = vpop.f32.mrb[64].mxu0 }
 0xbaa   :  { %v5271_v56 = vadd.f32 %v5270_v38, %v8207_v50  ;;  %v5272_v52 = vpop.f32.mrb[65].mxu0 }
 0xbab   :  { %v5273_v47 = vadd.f32 %v5272_v52, %v8210_v46  ;;  %v5274_v49 = vpop.f32.mrb[66].mxu0 }
 0xbac   :  { %5307 = vst [vmem:[%s8352_s10 + $0x70] sm:$0xff] %v5271_v56  ;;  %v5275_v3 = vadd.f32 %v5274_v49, %v8207_v50  ;;  %v5276_v4 = vpop.f32.mrb[67].mxu0 }
 0xbad   :  { %5308 = vst [vmem:[%s8352_s10 + $0x78] sm:$0xff] %v5273_v47  ;;  %v5277_v14 = vadd.f32 %v5276_v4, %v8210_v46 }
 0xbae   :  { %5309 = vst [vmem:[%s8352_s10 + $0xf0] sm:$0xff] %v5275_v3 }
 0xbaf   :  { %5310 = vst [vmem:[%s8352_s10 + $0xf8] sm:$0xff] %v5277_v14 }
 0xbb0   :  { %5315 = vsyncpa [#allocation4], 1 }
 0xbb1   :  { %5316 = vsyncpa [#allocation6], 1 }

</bundles_post_ra>
